<compile_context>
chip_gen: v6e
topology: v6e:2x2x1
jax: 0.10.0
libtpu: 0.0.40
codegen_flags: <defaults>
</compile_context>

<pallas_src>
from math import exp

import numpy as np
import jax
import jax.numpy as jnp
from jax.experimental import pallas as pl
from jax.experimental.pallas import tpu as pltpu

WINDOW_SIZE = 11
SIGMA = 1.5
PAD = WINDOW_SIZE // 2
C1 = 0.01 ** 2
C2 = 0.03 ** 2

_MXU_PRECISION = jax.lax.Precision.HIGHEST


def _gaussian_1d(window_size, sigma):
    g = np.array(
        [exp(-((x - window_size // 2) ** 2) / float(2 * sigma ** 2))
         for x in range(window_size)],
        dtype=np.float64,
    )
    return (g / g.sum()).astype(np.float32)


# Deterministic "parameter": the separable Gaussian window weights
# (outer product of G1D with itself == the 2D window in the PyTorch code).
G1D = _gaussian_1d(WINDOW_SIZE, SIGMA)


def _band_matrix(n):
    """(n, n) banded Gaussian matrix A so that X @ A is the zero-padded 1-D
    Gaussian conv of each row of X.  A is symmetric (Gaussian is symmetric),
    so A @ Y is the same conv applied down the columns of Y."""
    a = np.zeros((n, n), dtype=np.float32)
    for dst in range(n):
        for j in range(WINDOW_SIZE):
            src = dst + j - PAD
            if 0 <= src < n:
                a[src, dst] += G1D[j]
    return a


def _ssim_kernel(img1_ref, img2_ref, aw_ref, ah_ref, out_ref):
    x1 = img1_ref[...].astype(jnp.float32)   # (C, H, W)
    x2 = img2_ref[...].astype(jnp.float32)   # (C, H, W)
    C, H, W = x1.shape

    aw = aw_ref[...]                         # (W, W) band matrix (lane pass)
    ah = ah_ref[...]                         # (H, H) band matrix (sublane pass)

    # Five conv inputs for all channels, stacked along the (cheap) major axis.
    stack = jnp.concatenate(
        [x1, x2, x1 * x1, x2 * x2, x1 * x2], axis=0)      # (5C, H, W)

    # --- W-direction Gaussian pass: a single MXU matmul over every row ---
    t = jnp.dot(stack.reshape(5 * C * H, W), aw,
                preferred_element_type=jnp.float32,
                precision=_MXU_PRECISION)                 # (5C*H, W)
    t = t.reshape(5 * C, H, W)

    # --- H-direction Gaussian pass: per-plane (H,H)@(H,W) MXU matmuls ---
    res = [
        jnp.dot(ah, t[p], preferred_element_type=jnp.float32,
                precision=_MXU_PRECISION)
        for p in range(5 * C)
    ]
    mu1 = jnp.concatenate(res[0 * C:1 * C], axis=0)       # (C*H, W)
    mu2 = jnp.concatenate(res[1 * C:2 * C], axis=0)
    e11 = jnp.concatenate(res[2 * C:3 * C], axis=0)
    e22 = jnp.concatenate(res[3 * C:4 * C], axis=0)
    e12 = jnp.concatenate(res[4 * C:5 * C], axis=0)

    mu1_sq = mu1 * mu1
    mu2_sq = mu2 * mu2
    mu1_mu2 = mu1 * mu2
    sigma1_sq = e11 - mu1_sq
    sigma2_sq = e22 - mu2_sq
    sigma12 = e12 - mu1_mu2

    num = (2.0 * mu1_mu2 + C1) * (2.0 * sigma12 + C2)
    den = (mu1_sq + mu2_sq + C1) * (sigma1_sq + sigma2_sq + C2)
    ssim_map = num * pl.reciprocal(den, approx=False)     # exact; EUP path
    total = jnp.sum(ssim_map)                             # sum over C, H, W

    # Lane-dense per-batch partial-sum block; no cross-grid-step accumulation.
    out_ref[...] = jnp.zeros(out_ref.shape, jnp.float32) + total


def ssim(img1, img2, size_average=True):
    """SSIM forward pass. img1/img2: (B, C, H, W) float32 arrays."""
    assert img1.shape == img2.shape
    B, C, H, W = img1.shape

    aw = jnp.asarray(_band_matrix(W))                     # (W, W)
    ah = jnp.asarray(_band_matrix(H))                     # (H, H)

    grid_spec = pltpu.PrefetchScalarGridSpec(
        num_scalar_prefetch=0,
        grid=(B,),
        in_specs=[
            pl.BlockSpec((None, C, H, W), lambda b: (b, 0, 0, 0)),
            pl.BlockSpec((None, C, H, W), lambda b: (b, 0, 0, 0)),
            pl.BlockSpec((W, W), lambda b: (0, 0)),
            pl.BlockSpec((H, H), lambda b: (0, 0)),
        ],
        out_specs=pl.BlockSpec((1, 8, 128), lambda b: (b, 0, 0)),
    )

    sums = pl.pallas_call(
        _ssim_kernel,
        out_shape=jax.ShapeDtypeStruct((B, 8, 128), jnp.float32),
        grid_spec=grid_spec,
        compiler_params=pltpu.CompilerParams(
            dimension_semantics=("parallel",),            # batch axis parallel (v7x)
            vmem_limit_bytes=64 * 1024 * 1024,
        ),
    )(img1, img2, aw, ah)

    per_batch = sums[:, 0, 0]                             # sum of ssim_map per batch
    if size_average:
        return jnp.sum(per_batch) / float(B * C * H * W)
    return per_batch / float(C * H * W)


# ---------------- pure-JAX reference (for correctness check) ----------------
def _ssim_reference(img1, img2, size_average=True):
    g = jnp.asarray(G1D)
    H, W = img1.shape[-2], img1.shape[-1]

    def gconv(x):
        xp = jnp.pad(x, ((0, 0), (0, 0), (0, 0), (PAD, PAD)))
        acc = sum(g[i] * xp[..., :, i:i + W] for i in range(WINDOW_SIZE))
        xp2 = jnp.pad(acc, ((0, 0), (0, 0), (PAD, PAD), (0, 0)))
        acc2 = sum(g[i] * xp2[..., i:i + H, :] for i in range(WINDOW_SIZE))
        return acc2

    mu1, mu2 = gconv(img1), gconv(img2)
    mu1_sq, mu2_sq, mu1_mu2 = mu1 * mu1, mu2 * mu2, mu1 * mu2
    sigma1_sq = gconv(img1 * img1) - mu1_sq
    sigma2_sq = gconv(img2 * img2) - mu2_sq
    sigma12 = gconv(img1 * img2) - mu1_mu2
    ssim_map = ((2 * mu1_mu2 + C1) * (2 * sigma12 + C2)) / (
        (mu1_sq + mu2_sq + C1) * (sigma1_sq + sigma2_sq + C2))
    if size_average:
        return ssim_map.mean()
    return ssim_map.mean(axis=(1, 2, 3))


if __name__ == "__main__":
    key = jax.random.PRNGKey(0)
    k1, k2 = jax.random.split(key)
    B, C, H, W = 2, 4, 16, 16
    img1 = jax.random.uniform(k1, (B, C, H, W), dtype=jnp.float32)
    img2 = jax.random.uniform(k2, (B, C, H, W), dtype=jnp.float32)

    out = ssim(img1, img2, size_average=True)
    out = jax.block_until_ready(out)
    ref = _ssim_reference(img1, img2, size_average=True)
    assert jnp.allclose(out, ref, rtol=5e-4, atol=5e-5), (out, ref)

    out_b = jax.block_until_ready(ssim(img1, img2, size_average=False))
    ref_b = _ssim_reference(img1, img2, size_average=False)
    assert jnp.allclose(out_b, ref_b, rtol=5e-4, atol=5e-5), (out_b, ref_b)

    print("KERNEL_OK")
</pallas_src>

<mosaic_0001>
module attributes {stable_mosaic.version = 11 : i64} {
  func.func @_ssim_kernel(%arg0: i32, %arg1: memref<1x4x16x16xf32, #tpu.memory_space<vmem>>, %arg2: memref<1x4x16x16xf32, #tpu.memory_space<vmem>>, %arg3: memref<16x16xf32, #tpu.memory_space<vmem>>, %arg4: memref<16x16xf32, #tpu.memory_space<vmem>>, %arg5: memref<1x8x128xf32, #tpu.memory_space<vmem>>) attributes {dimension_semantics = [#tpu.dimension_semantics<parallel>], iteration_bounds = array<i64: 2>, scalar_prefetch = 0 : i64, scratch_operands = 0 : i64, tpu.core_type = #tpu.core_type<tc>, window_params = [{transform_indices = @transform_0, window_bounds = array<i64: 1, 4, 16, 16>}, {transform_indices = @transform_1, window_bounds = array<i64: 1, 4, 16, 16>}, {pipeline_mode = #tpu.pipeline_mode<synchronous>, transform_indices = @transform_2, window_bounds = array<i64: 16, 16>}, {pipeline_mode = #tpu.pipeline_mode<synchronous>, transform_indices = @transform_3, window_bounds = array<i64: 16, 16>}, {transform_indices = @transform_4, window_bounds = array<i64: 1, 8, 128>}]} {
    %c0 = arith.constant 0 : index
    %c0_0 = arith.constant 0 : index
    %c0_1 = arith.constant 0 : index
    %c0_2 = arith.constant 0 : index
    %0 = vector.load %arg1[%c0, %c0_0, %c0_1, %c0_2] : memref<1x4x16x16xf32, #tpu.memory_space<vmem>>, vector<1x4x16x16xf32>
    %1 = vector.shape_cast %0 : vector<1x4x16x16xf32> to vector<4x16x16xf32>
    %c0_3 = arith.constant 0 : index
    %c0_4 = arith.constant 0 : index
    %c0_5 = arith.constant 0 : index
    %c0_6 = arith.constant 0 : index
    %2 = vector.load %arg2[%c0_3, %c0_4, %c0_5, %c0_6] : memref<1x4x16x16xf32, #tpu.memory_space<vmem>>, vector<1x4x16x16xf32>
    %3 = vector.shape_cast %2 : vector<1x4x16x16xf32> to vector<4x16x16xf32>
    %c0_7 = arith.constant 0 : index
    %c0_8 = arith.constant 0 : index
    %4 = vector.load %arg3[%c0_7, %c0_8] : memref<16x16xf32, #tpu.memory_space<vmem>>, vector<16x16xf32>
    %c0_9 = arith.constant 0 : index
    %c0_10 = arith.constant 0 : index
    %5 = vector.load %arg4[%c0_9, %c0_10] : memref<16x16xf32, #tpu.memory_space<vmem>>, vector<16x16xf32>
    %6 = arith.mulf %1, %1 : vector<4x16x16xf32>
    %7 = arith.mulf %3, %3 : vector<4x16x16xf32>
    %8 = arith.mulf %1, %3 : vector<4x16x16xf32>
    %9 = tpu.concatenate %1, %3, %6, %7, %8 in 0 : vector<4x16x16xf32>, vector<4x16x16xf32>, vector<4x16x16xf32>, vector<4x16x16xf32>, vector<4x16x16xf32> -> vector<20x16x16xf32>
    %10 = vector.shape_cast %9 : vector<20x16x16xf32> to vector<320x16xf32>
    %cst = arith.constant dense<0.000000e+00> : vector<320x16xf32>
    %11 = tpu.matmul %10, %4, %cst {dimension_numbers = #tpu.dot_dimension_numbers<[1], [0], [0], [1], [0, 0, 1, 1], [], []>, precision = #tpu.contract_precision<fp32>} : vector<320x16xf32>, vector<16x16xf32>, vector<320x16xf32> -> vector<320x16xf32>
    %12 = vector.shape_cast %11 : vector<320x16xf32> to vector<20x16x16xf32>
    %13 = vector.extract_strided_slice %12 {offsets = [0, 0, 0], sizes = [1, 16, 16], strides = [1, 1, 1]} : vector<20x16x16xf32> to vector<1x16x16xf32>
    %14 = vector.shape_cast %13 : vector<1x16x16xf32> to vector<16x16xf32>
    %cst_11 = arith.constant dense<0.000000e+00> : vector<16x16xf32>
    %15 = tpu.matmul %5, %14, %cst_11 {dimension_numbers = #tpu.dot_dimension_numbers<[1], [0], [0], [1], [0, 0, 1, 1], [], []>, precision = #tpu.contract_precision<fp32>} : vector<16x16xf32>, vector<16x16xf32>, vector<16x16xf32> -> vector<16x16xf32>
    %16 = vector.extract_strided_slice %12 {offsets = [1, 0, 0], sizes = [1, 16, 16], strides = [1, 1, 1]} : vector<20x16x16xf32> to vector<1x16x16xf32>
    %17 = vector.shape_cast %16 : vector<1x16x16xf32> to vector<16x16xf32>
    %cst_12 = arith.constant dense<0.000000e+00> : vector<16x16xf32>
    %18 = tpu.matmul %5, %17, %cst_12 {dimension_numbers = #tpu.dot_dimension_numbers<[1], [0], [0], [1], [0, 0, 1, 1], [], []>, precision = #tpu.contract_precision<fp32>} : vector<16x16xf32>, vector<16x16xf32>, vector<16x16xf32> -> vector<16x16xf32>
    %19 = vector.extract_strided_slice %12 {offsets = [2, 0, 0], sizes = [1, 16, 16], strides = [1, 1, 1]} : vector<20x16x16xf32> to vector<1x16x16xf32>
    %20 = vector.shape_cast %19 : vector<1x16x16xf32> to vector<16x16xf32>
    %cst_13 = arith.constant dense<0.000000e+00> : vector<16x16xf32>
    %21 = tpu.matmul %5, %20, %cst_13 {dimension_numbers = #tpu.dot_dimension_numbers<[1], [0], [0], [1], [0, 0, 1, 1], [], []>, precision = #tpu.contract_precision<fp32>} : vector<16x16xf32>, vector<16x16xf32>, vector<16x16xf32> -> vector<16x16xf32>
    %22 = vector.extract_strided_slice %12 {offsets = [3, 0, 0], sizes = [1, 16, 16], strides = [1, 1, 1]} : vector<20x16x16xf32> to vector<1x16x16xf32>
    %23 = vector.shape_cast %22 : vector<1x16x16xf32> to vector<16x16xf32>
    %cst_14 = arith.constant dense<0.000000e+00> : vector<16x16xf32>
    %24 = tpu.matmul %5, %23, %cst_14 {dimension_numbers = #tpu.dot_dimension_numbers<[1], [0], [0], [1], [0, 0, 1, 1], [], []>, precision = #tpu.contract_precision<fp32>} : vector<16x16xf32>, vector<16x16xf32>, vector<16x16xf32> -> vector<16x16xf32>
    %25 = vector.extract_strided_slice %12 {offsets = [4, 0, 0], sizes = [1, 16, 16], strides = [1, 1, 1]} : vector<20x16x16xf32> to vector<1x16x16xf32>
    %26 = vector.shape_cast %25 : vector<1x16x16xf32> to vector<16x16xf32>
    %cst_15 = arith.constant dense<0.000000e+00> : vector<16x16xf32>
    %27 = tpu.matmul %5, %26, %cst_15 {dimension_numbers = #tpu.dot_dimension_numbers<[1], [0], [0], [1], [0, 0, 1, 1], [], []>, precision = #tpu.contract_precision<fp32>} : vector<16x16xf32>, vector<16x16xf32>, vector<16x16xf32> -> vector<16x16xf32>
    %28 = vector.extract_strided_slice %12 {offsets = [5, 0, 0], sizes = [1, 16, 16], strides = [1, 1, 1]} : vector<20x16x16xf32> to vector<1x16x16xf32>
    %29 = vector.shape_cast %28 : vector<1x16x16xf32> to vector<16x16xf32>
    %cst_16 = arith.constant dense<0.000000e+00> : vector<16x16xf32>
    %30 = tpu.matmul %5, %29, %cst_16 {dimension_numbers = #tpu.dot_dimension_numbers<[1], [0], [0], [1], [0, 0, 1, 1], [], []>, precision = #tpu.contract_precision<fp32>} : vector<16x16xf32>, vector<16x16xf32>, vector<16x16xf32> -> vector<16x16xf32>
    %31 = vector.extract_strided_slice %12 {offsets = [6, 0, 0], sizes = [1, 16, 16], strides = [1, 1, 1]} : vector<20x16x16xf32> to vector<1x16x16xf32>
    %32 = vector.shape_cast %31 : vector<1x16x16xf32> to vector<16x16xf32>
    %cst_17 = arith.constant dense<0.000000e+00> : vector<16x16xf32>
    %33 = tpu.matmul %5, %32, %cst_17 {dimension_numbers = #tpu.dot_dimension_numbers<[1], [0], [0], [1], [0, 0, 1, 1], [], []>, precision = #tpu.contract_precision<fp32>} : vector<16x16xf32>, vector<16x16xf32>, vector<16x16xf32> -> vector<16x16xf32>
    %34 = vector.extract_strided_slice %12 {offsets = [7, 0, 0], sizes = [1, 16, 16], strides = [1, 1, 1]} : vector<20x16x16xf32> to vector<1x16x16xf32>
    %35 = vector.shape_cast %34 : vector<1x16x16xf32> to vector<16x16xf32>
    %cst_18 = arith.constant dense<0.000000e+00> : vector<16x16xf32>
    %36 = tpu.matmul %5, %35, %cst_18 {dimension_numbers = #tpu.dot_dimension_numbers<[1], [0], [0], [1], [0, 0, 1, 1], [], []>, precision = #tpu.contract_precision<fp32>} : vector<16x16xf32>, vector<16x16xf32>, vector<16x16xf32> -> vector<16x16xf32>
    %37 = vector.extract_strided_slice %12 {offsets = [8, 0, 0], sizes = [1, 16, 16], strides = [1, 1, 1]} : vector<20x16x16xf32> to vector<1x16x16xf32>
    %38 = vector.shape_cast %37 : vector<1x16x16xf32> to vector<16x16xf32>
    %cst_19 = arith.constant dense<0.000000e+00> : vector<16x16xf32>
    %39 = tpu.matmul %5, %38, %cst_19 {dimension_numbers = #tpu.dot_dimension_numbers<[1], [0], [0], [1], [0, 0, 1, 1], [], []>, precision = #tpu.contract_precision<fp32>} : vector<16x16xf32>, vector<16x16xf32>, vector<16x16xf32> -> vector<16x16xf32>
    %40 = vector.extract_strided_slice %12 {offsets = [9, 0, 0], sizes = [1, 16, 16], strides = [1, 1, 1]} : vector<20x16x16xf32> to vector<1x16x16xf32>
    %41 = vector.shape_cast %40 : vector<1x16x16xf32> to vector<16x16xf32>
    %cst_20 = arith.constant dense<0.000000e+00> : vector<16x16xf32>
    %42 = tpu.matmul %5, %41, %cst_20 {dimension_numbers = #tpu.dot_dimension_numbers<[1], [0], [0], [1], [0, 0, 1, 1], [], []>, precision = #tpu.contract_precision<fp32>} : vector<16x16xf32>, vector<16x16xf32>, vector<16x16xf32> -> vector<16x16xf32>
    %43 = vector.extract_strided_slice %12 {offsets = [10, 0, 0], sizes = [1, 16, 16], strides = [1, 1, 1]} : vector<20x16x16xf32> to vector<1x16x16xf32>
    %44 = vector.shape_cast %43 : vector<1x16x16xf32> to vector<16x16xf32>
    %cst_21 = arith.constant dense<0.000000e+00> : vector<16x16xf32>
    %45 = tpu.matmul %5, %44, %cst_21 {dimension_numbers = #tpu.dot_dimension_numbers<[1], [0], [0], [1], [0, 0, 1, 1], [], []>, precision = #tpu.contract_precision<fp32>} : vector<16x16xf32>, vector<16x16xf32>, vector<16x16xf32> -> vector<16x16xf32>
    %46 = vector.extract_strided_slice %12 {offsets = [11, 0, 0], sizes = [1, 16, 16], strides = [1, 1, 1]} : vector<20x16x16xf32> to vector<1x16x16xf32>
    %47 = vector.shape_cast %46 : vector<1x16x16xf32> to vector<16x16xf32>
    %cst_22 = arith.constant dense<0.000000e+00> : vector<16x16xf32>
    %48 = tpu.matmul %5, %47, %cst_22 {dimension_numbers = #tpu.dot_dimension_numbers<[1], [0], [0], [1], [0, 0, 1, 1], [], []>, precision = #tpu.contract_precision<fp32>} : vector<16x16xf32>, vector<16x16xf32>, vector<16x16xf32> -> vector<16x16xf32>
    %49 = vector.extract_strided_slice %12 {offsets = [12, 0, 0], sizes = [1, 16, 16], strides = [1, 1, 1]} : vector<20x16x16xf32> to vector<1x16x16xf32>
    %50 = vector.shape_cast %49 : vector<1x16x16xf32> to vector<16x16xf32>
    %cst_23 = arith.constant dense<0.000000e+00> : vector<16x16xf32>
    %51 = tpu.matmul %5, %50, %cst_23 {dimension_numbers = #tpu.dot_dimension_numbers<[1], [0], [0], [1], [0, 0, 1, 1], [], []>, precision = #tpu.contract_precision<fp32>} : vector<16x16xf32>, vector<16x16xf32>, vector<16x16xf32> -> vector<16x16xf32>
    %52 = vector.extract_strided_slice %12 {offsets = [13, 0, 0], sizes = [1, 16, 16], strides = [1, 1, 1]} : vector<20x16x16xf32> to vector<1x16x16xf32>
    %53 = vector.shape_cast %52 : vector<1x16x16xf32> to vector<16x16xf32>
    %cst_24 = arith.constant dense<0.000000e+00> : vector<16x16xf32>
    %54 = tpu.matmul %5, %53, %cst_24 {dimension_numbers = #tpu.dot_dimension_numbers<[1], [0], [0], [1], [0, 0, 1, 1], [], []>, precision = #tpu.contract_precision<fp32>} : vector<16x16xf32>, vector<16x16xf32>, vector<16x16xf32> -> vector<16x16xf32>
    %55 = vector.extract_strided_slice %12 {offsets = [14, 0, 0], sizes = [1, 16, 16], strides = [1, 1, 1]} : vector<20x16x16xf32> to vector<1x16x16xf32>
    %56 = vector.shape_cast %55 : vector<1x16x16xf32> to vector<16x16xf32>
    %cst_25 = arith.constant dense<0.000000e+00> : vector<16x16xf32>
    %57 = tpu.matmul %5, %56, %cst_25 {dimension_numbers = #tpu.dot_dimension_numbers<[1], [0], [0], [1], [0, 0, 1, 1], [], []>, precision = #tpu.contract_precision<fp32>} : vector<16x16xf32>, vector<16x16xf32>, vector<16x16xf32> -> vector<16x16xf32>
    %58 = vector.extract_strided_slice %12 {offsets = [15, 0, 0], sizes = [1, 16, 16], strides = [1, 1, 1]} : vector<20x16x16xf32> to vector<1x16x16xf32>
    %59 = vector.shape_cast %58 : vector<1x16x16xf32> to vector<16x16xf32>
    %cst_26 = arith.constant dense<0.000000e+00> : vector<16x16xf32>
    %60 = tpu.matmul %5, %59, %cst_26 {dimension_numbers = #tpu.dot_dimension_numbers<[1], [0], [0], [1], [0, 0, 1, 1], [], []>, precision = #tpu.contract_precision<fp32>} : vector<16x16xf32>, vector<16x16xf32>, vector<16x16xf32> -> vector<16x16xf32>
    %61 = vector.extract_strided_slice %12 {offsets = [16, 0, 0], sizes = [1, 16, 16], strides = [1, 1, 1]} : vector<20x16x16xf32> to vector<1x16x16xf32>
    %62 = vector.shape_cast %61 : vector<1x16x16xf32> to vector<16x16xf32>
    %cst_27 = arith.constant dense<0.000000e+00> : vector<16x16xf32>
    %63 = tpu.matmul %5, %62, %cst_27 {dimension_numbers = #tpu.dot_dimension_numbers<[1], [0], [0], [1], [0, 0, 1, 1], [], []>, precision = #tpu.contract_precision<fp32>} : vector<16x16xf32>, vector<16x16xf32>, vector<16x16xf32> -> vector<16x16xf32>
    %64 = vector.extract_strided_slice %12 {offsets = [17, 0, 0], sizes = [1, 16, 16], strides = [1, 1, 1]} : vector<20x16x16xf32> to vector<1x16x16xf32>
    %65 = vector.shape_cast %64 : vector<1x16x16xf32> to vector<16x16xf32>
    %cst_28 = arith.constant dense<0.000000e+00> : vector<16x16xf32>
    %66 = tpu.matmul %5, %65, %cst_28 {dimension_numbers = #tpu.dot_dimension_numbers<[1], [0], [0], [1], [0, 0, 1, 1], [], []>, precision = #tpu.contract_precision<fp32>} : vector<16x16xf32>, vector<16x16xf32>, vector<16x16xf32> -> vector<16x16xf32>
    %67 = vector.extract_strided_slice %12 {offsets = [18, 0, 0], sizes = [1, 16, 16], strides = [1, 1, 1]} : vector<20x16x16xf32> to vector<1x16x16xf32>
    %68 = vector.shape_cast %67 : vector<1x16x16xf32> to vector<16x16xf32>
    %cst_29 = arith.constant dense<0.000000e+00> : vector<16x16xf32>
    %69 = tpu.matmul %5, %68, %cst_29 {dimension_numbers = #tpu.dot_dimension_numbers<[1], [0], [0], [1], [0, 0, 1, 1], [], []>, precision = #tpu.contract_precision<fp32>} : vector<16x16xf32>, vector<16x16xf32>, vector<16x16xf32> -> vector<16x16xf32>
    %70 = vector.extract_strided_slice %12 {offsets = [19, 0, 0], sizes = [1, 16, 16], strides = [1, 1, 1]} : vector<20x16x16xf32> to vector<1x16x16xf32>
    %71 = vector.shape_cast %70 : vector<1x16x16xf32> to vector<16x16xf32>
    %cst_30 = arith.constant dense<0.000000e+00> : vector<16x16xf32>
    %72 = tpu.matmul %5, %71, %cst_30 {dimension_numbers = #tpu.dot_dimension_numbers<[1], [0], [0], [1], [0, 0, 1, 1], [], []>, precision = #tpu.contract_precision<fp32>} : vector<16x16xf32>, vector<16x16xf32>, vector<16x16xf32> -> vector<16x16xf32>
    %73 = tpu.concatenate %15, %18, %21, %24 in 0 : vector<16x16xf32>, vector<16x16xf32>, vector<16x16xf32>, vector<16x16xf32> -> vector<64x16xf32>
    %74 = tpu.concatenate %27, %30, %33, %36 in 0 : vector<16x16xf32>, vector<16x16xf32>, vector<16x16xf32>, vector<16x16xf32> -> vector<64x16xf32>
    %75 = tpu.concatenate %39, %42, %45, %48 in 0 : vector<16x16xf32>, vector<16x16xf32>, vector<16x16xf32>, vector<16x16xf32> -> vector<64x16xf32>
    %76 = tpu.concatenate %51, %54, %57, %60 in 0 : vector<16x16xf32>, vector<16x16xf32>, vector<16x16xf32>, vector<16x16xf32> -> vector<64x16xf32>
    %77 = tpu.concatenate %63, %66, %69, %72 in 0 : vector<16x16xf32>, vector<16x16xf32>, vector<16x16xf32>, vector<16x16xf32> -> vector<64x16xf32>
    %78 = arith.mulf %73, %73 : vector<64x16xf32>
    %79 = arith.mulf %74, %74 : vector<64x16xf32>
    %80 = arith.mulf %73, %74 : vector<64x16xf32>
    %81 = arith.subf %75, %78 : vector<64x16xf32>
    %82 = arith.subf %76, %79 : vector<64x16xf32>
    %83 = arith.subf %77, %80 : vector<64x16xf32>
    %cst_31 = arith.constant 2.000000e+00 : f32
    %84 = vector.broadcast %cst_31 : f32 to vector<64x16xf32>
    %85 = arith.mulf %84, %80 : vector<64x16xf32>
    %cst_32 = arith.constant 9.99999974E-5 : f32
    %86 = vector.broadcast %cst_32 : f32 to vector<64x16xf32>
    %87 = arith.addf %85, %86 : vector<64x16xf32>
    %cst_33 = arith.constant 2.000000e+00 : f32
    %88 = vector.broadcast %cst_33 : f32 to vector<64x16xf32>
    %89 = arith.mulf %88, %83 : vector<64x16xf32>
    %cst_34 = arith.constant 8.99999984E-4 : f32
    %90 = vector.broadcast %cst_34 : f32 to vector<64x16xf32>
    %91 = arith.addf %89, %90 : vector<64x16xf32>
    %92 = arith.mulf %87, %91 : vector<64x16xf32>
    %93 = arith.addf %78, %79 : vector<64x16xf32>
    %cst_35 = arith.constant 9.99999974E-5 : f32
    %94 = vector.broadcast %cst_35 : f32 to vector<64x16xf32>
    %95 = arith.addf %93, %94 : vector<64x16xf32>
    %96 = arith.addf %81, %82 : vector<64x16xf32>
    %cst_36 = arith.constant 8.99999984E-4 : f32
    %97 = vector.broadcast %cst_36 : f32 to vector<64x16xf32>
    %98 = arith.addf %96, %97 : vector<64x16xf32>
    %99 = arith.mulf %95, %98 : vector<64x16xf32>
    %100 = tpu.reciprocal %99 : vector<64x16xf32> -> vector<64x16xf32>
    %101 = arith.mulf %92, %100 : vector<64x16xf32>
    %102 = vector.shape_cast %101 : vector<64x16xf32> to vector<1x64x16xf32>
    %cst_37 = arith.constant dense<0.000000e+00> : vector<1xf32>
    %103 = vector.multi_reduction <add>, %102, %cst_37 [1, 2] : vector<1x64x16xf32> to vector<1xf32>
    %104 = vector.shape_cast %103 : vector<1xf32> to vector<1x1x1xf32>
    %105 = vector.extract %104[0, 0, 0] : f32 from vector<1x1x1xf32>
    %cst_38 = arith.constant 0.000000e+00 : f32
    %106 = vector.broadcast %cst_38 : f32 to vector<1x8x128xf32>
    %107 = vector.broadcast %105 : f32 to vector<1x8x128xf32>
    %108 = arith.addf %106, %107 : vector<1x8x128xf32>
    %c0_39 = arith.constant 0 : index
    %c0_40 = arith.constant 0 : index
    %c0_41 = arith.constant 0 : index
    %109 = vector.load %arg5[%c0_39, %c0_40, %c0_41] : memref<1x8x128xf32, #tpu.memory_space<vmem>>, vector<1x8x128xf32>
    tpu.vector_store %arg5[%c0_39, %c0_40, %c0_41], %108 {strides = array<i32>} : memref<1x8x128xf32, #tpu.memory_space<vmem>>, vector<1x8x128xf32>,
    return
  }
  func.func @transform_0(%arg0: i32) -> (i32, i32, i32, i32) {
    %c0_i32 = arith.constant 0 : i32
    %c0_i32_0 = arith.constant 0 : i32
    %c0_i32_1 = arith.constant 0 : i32
    %c0_i32_2 = arith.constant 0 : i32
    return %arg0, %c0_i32, %c0_i32_0, %c0_i32_1 : i32, i32, i32, i32
  }
  func.func @transform_1(%arg0: i32) -> (i32, i32, i32, i32) {
    %c0_i32 = arith.constant 0 : i32
    %c0_i32_0 = arith.constant 0 : i32
    %c0_i32_1 = arith.constant 0 : i32
    %c0_i32_2 = arith.constant 0 : i32
    return %arg0, %c0_i32, %c0_i32_0, %c0_i32_1 : i32, i32, i32, i32
  }
  func.func @transform_2(%arg0: i32) -> (i32, i32) {
    %c0_i32 = arith.constant 0 : i32
    %c0_i32_0 = arith.constant 0 : i32
    %c0_i32_1 = arith.constant 0 : i32
    return %c0_i32, %c0_i32_0 : i32, i32
  }
  func.func @transform_3(%arg0: i32) -> (i32, i32) {
    %c0_i32 = arith.constant 0 : i32
    %c0_i32_0 = arith.constant 0 : i32
    %c0_i32_1 = arith.constant 0 : i32
    return %c0_i32, %c0_i32_0 : i32, i32
  }
  func.func @transform_4(%arg0: i32) -> (i32, i32, i32) {
    %c0_i32 = arith.constant 0 : i32
    %c0_i32_0 = arith.constant 0 : i32
    %c0_i32_1 = arith.constant 0 : i32
    return %arg0, %c0_i32, %c0_i32_0 : i32, i32, i32
  }
}

</mosaic_0001>

<bundles_post_ra>
// kernel: tpu_custom_call.1
= control target key start
LH: loop header
LB: loop body
LE: loop exit
PB: predicated region body
PF: predicated region fallthrough
CT: control target
= control target key end

     0   :  { %s17620_s0 = inlined_call_operand.hbm [shape: f32[2,4,16,16], index: 0, kind: input, shape index: {}]   ;;  %s17621_s1 = inlined_call_operand.hbm [shape: f32[2,4,16,16], index: 1, kind: input, shape index: {}]   ;;  %s17622_s2 = inlined_call_operand.hbm [shape: f32[16,16], index: 2, kind: input, shape index: {}]   ;;  %s17623_s3 = inlined_call_operand.hbm [shape: f32[16,16], index: 3, kind: input, shape index: {}]   ;;  %s17624_s4 = inlined_call_operand.hbm [shape: f32[2,8,128], index: 4, kind: output, shape index: {}]  }
   0x1   :  { %17721 = sst [smem:[#allocation68_spill]] %s17620_s0 }
   0x2   :  { %9 = vsyncpa [#allocation3], 0 }
   0x3   :  { %11 = vsyncpa [#allocation3 + $0x1], 0 }
   0x4   :  { %12 = vsyncpa [#allocation6], 0 }
   0x5   :  { %14 = vsyncpa [#allocation6 + $0x1], 0 }
   0x6   :  { %15 = vsyncpa [#allocation9], 0 }
   0x7   :  { %16 = vsyncpa [#allocation4], 0 }
   0x8   :  { %18 = vsyncpa [#allocation4 + $0x1], 0  ;;  %s15218_s15 = smov 0   ;;  %s15220_s16 = smov 0  }
   0x9   :  { %s15222_s17 = smov 0   ;;  %s15224_s18 = smov 0  }
   0xa LB: > { %s15239_s19 = sadd.s32 4294967295, %s15184_s18   ;;  %s12929_s20 = sadd.s32 4294967294, %s15184_s18   ;;  %s15184_s18 = sphi %s15224_s18, %s17972_s18   ;;  %s15180_s17 = sphi %s15222_s17, %s17971_s17   ;;  %s15176_s16 = sphi %s15220_s16, %s17970_s16   ;;  %s15172_s15 = sphi %s15218_s15, %s17969_s15  }
   0xb   : > { %p44_p0 = scmp.ne.s32.totalorder %s15176_s16, %s15172_s15  ;;  %p17629_p1 = scmp.eq.s32.totalorder %s15239_s19, 0 }
   0xc   : > { %p136_p2 = scmp.eq.s32.totalorder %s15239_s19, 1  ;;  %p142_p3 = scmp.eq.s32.totalorder %s12929_s20, 1 }
   0xd   : > { %p15248_p4 = por %p17629_p1, %p44_p0  ;;  %p12930_p5 = scmp.ge.s32.totalorder %s15184_s18, 1 }
   0xe   : > { %p15253_p6 = por %p142_p3, %p44_p0  ;;  %p149_p7 = scmp.lt.s32.totalorder %s15184_s18, 3 }
   0xf   : > { %s17722_s21 = scalar_select %p15248_p4, 1, 0 }
  0x10   : > { %s17723_s22 = scalar_select %p15253_p6, 1, 0 }
  0x11   : > { %p15258_p8 = pnand %p12930_p5, %p149_p7  ;;  %s15186_s24 = smov [#allocation7]  }
  0x12   : > { %s161_s25 = sshll.u32 %s15186_s24, 4  ;;  %s15187_s27 = smov [#allocation8]   ;;  %s162_s25 = int_to_ptr.vmem [resolvable:$true] %s161_s25 }
  0x13   : > { %p14924_p9 = pneg %p15258_p8  ;;  %s174_s28 = sshll.u32 %s15187_s27, 4  ;;  %s175_s28 = int_to_ptr.vmem [resolvable:$true] %s174_s28 }
  0x14   : > { %s15011_s29 = scalar_lea.vmem %s162_s25, 256  ;;  %p15019_p5 = scmp.lt.s32.totalorder %s162_s25, %s162_s25 }
  0x15   : > { %p15267_p11 = pnand %p14924_p9, %p17629_p1  ;;  %p15012_p13 = scmp.ne.s32.totalorder %s162_s25, %s15011_s29 }
  0x16   : > { %p15020_p7 = scmp.lt.s32.totalorder %s15011_s29, %s15011_s29 }
  0x17   : > { %p15002_p12 = pneg %p15267_p11 }
  0x18   : > { %p15021_p10 = por %p15020_p7, %p15019_p5 }
  0x19   : > { %p15014_p0 = pnand %p15012_p13, %p15002_p12 }
  0x1b   : > { %p15015_p3 = pneg %p15014_p0 }
  0x1d   : > { %p15022_p9 = pnand %p15021_p10, %p15015_p3 }
  0x1f   : > { %15025 = shalt.err (!%p15022_p9)
}
  0x20   : > { %s17625_s30 = smov 128   ;;  %s17627_s5 = smov 8  }
  0x21   : > { %14927 = dma.hbm_to_vmem [thread:$0]  (!%p15267_p11), %s17622_s2, 256, %s162_s25, [#allocation6], %s17625_s30, %s17625_s30, %s17627_s5  }
  0x22   : > { %s15037_s8 = scalar_lea.vmem %s175_s28, 256  ;;  %p15045_p10 = scmp.lt.s32.totalorder %s175_s28, %s175_s28 }
  0x23   : > { %p15038_p13 = scmp.ne.s32.totalorder %s175_s28, %s15037_s8  ;;  %p15046_p3 = scmp.lt.s32.totalorder %s15037_s8, %s15037_s8 }
  0x25   : > { %p15040_p0 = pnand %p15038_p13, %p15002_p12  ;;  %p15047_p7 = por %p15046_p3, %p15045_p10 }
  0x27   : > { %p15041_p5 = pneg %p15040_p0 }
  0x29   : > { %p15048_p9 = pnand %p15047_p7, %p15041_p5 }
  0x2b   : > { %15051 = shalt.err (!%p15048_p9)
}
  0x2c   : > { %14930 = dma.hbm_to_vmem [thread:$0]  (!%p15267_p11), %s17623_s3, 256, %s175_s28, [#allocation9], %s17625_s30, %s17625_s30, %s17627_s5  }
  0x2d   : > { %s15296_s11 = sadd.s32 1, %s15184_s18   ;;  %s31_s12 = sadd.s32 1, %s15180_s17 }
  0x2e   : > { %s28_s13 = ssub.s32 %s15184_s18, %s15296_s11  ;;  %p38_p12 = scmp.ne.s32.totalorder %s15180_s17, %s15176_s16 }
  0x2f   : > { %p29_p13 = scmp.eq.s32.totalorder %s28_s13, 0  ;;  %p39_p0 = scmp.eq.s32.totalorder %s15184_s18, 0 }
  0x30   : > { %p15306_p5 = por %p136_p2, %p38_p12  ;;  %p14944_p10 = scmp.lt.s32.totalorder %s15184_s18, 2 }
  0x31   : > { %s15312_s20 = scalar_select %p29_p13, %s15180_s17, %s31_s12  }
  0x32   : > { %s17726_s14 = scalar_select %p15306_p5, 1, 0 }
  0x33   : > { %p40_p3 = por %p39_p0, %p38_p12  ;;  %s188_s24 = sand.u32 1, %s15180_s17  }
  0x34   : > { %s12934_s25 = sshll.u32 %s188_s24, 6  ;;  %s12950_s26 = sshll.u32 %s15184_s18, 10 }
  0x35   : > { %s17727_s0 = sld [smem:[#allocation68_spill]]  ;;  %s192_s6 = scalar_lea.vmem [#allocation2], %s12934_s25 }
  0x36   : > { %s199_s7 = sshll.u32 %s192_s6, 4  ;;  %p15323_p2 = pnand %p14944_p10, %p40_p3  ;;  %s15321_s7 = int_to_ptr.vmem [resolvable:$true] %s199_s7 }
  0x37   : > { %s15330_s12 = scalar_lea.hbm %s17621_s1, %s12950_s26  ;;  %s213_s13 = scalar_lea.vmem [#allocation5], %s12934_s25 }
  0x38   : > { %s15332_s27 = sshll.u32 %s213_s13, 4  ;;  %s15334_s28 = scalar_lea.sflag [#allocation3], %s188_s24  ;;  %s15365_s27 = int_to_ptr.vmem [resolvable:$true] %s15332_s27 }
  0x39   : > { %p15054_p7 = pneg %p15323_p2 }
  0x3b   : > { %s15319_s29 = scalar_lea.hbm %s17727_s0, %s12950_s26  ;;  %s15057_s9 = scalar_lea.hbm %s17727_s0, 2048 }
  0x3c   : > { %s15052_s30 = scalar_lea.hbm %s15319_s29, 1024  ;;  %p15058_p13 = scmp.lt.s32.totalorder %s15319_s29, %s17727_s0 }
  0x3d   : > { %p15053_p11 = scmp.ne.s32.totalorder %s15319_s29, %s15052_s30  ;;  %p15059_p0 = scmp.lt.s32.totalorder %s15057_s9, %s15052_s30 }
  0x3f   : > { %p15055_p9 = pnand %p15054_p7, %p15053_p11  ;;  %p15060_p10 = por %p15059_p0, %p15058_p13 }
  0x41   : > { %p15056_p12 = pneg %p15055_p9 }
  0x43   : > { %p15061_p3 = pnand %p15060_p10, %p15056_p12 }
  0x45   : > { %15064 = shalt.err (!%p15061_p3)
}
  0x46   : > { %s15065_s24 = scalar_lea.vmem %s15321_s7, 1024  ;;  %s15190_s5 = smov [#allocation2]  }
  0x47   : > { %p15066_p1 = scmp.ne.s32.totalorder %s15321_s7, %s15065_s24  ;;  %s15070_s25 = sshll.u32 %s15190_s5, 4  ;;  %s15071_s25 = int_to_ptr.vmem [resolvable:$false] %s15070_s25 }
  0x48   : > { %s15072_s13 = scalar_lea.vmem %s15071_s25, 2048  ;;  %p15073_p6 = scmp.lt.s32.totalorder %s15321_s7, %s15071_s25 }
  0x49   : > { %p15068_p11 = pnand %p15066_p1, %p15054_p7  ;;  %p15074_p5 = scmp.lt.s32.totalorder %s15072_s13, %s15065_s24 }
  0x4b   : > { %p15069_p9 = pneg %p15068_p11  ;;  %p15075_p4 = por %p15074_p5, %p15073_p6 }
  0x4d   : > { %p15076_p13 = pnand %p15075_p4, %p15069_p9 }
  0x4f   : > { %15079 = shalt.err (!%p15076_p13)
}
  0x50   : > { %s17729_s30 = smov 8   ;;  %s17730_s6 = smov 128  }
  0x51   : > { %14934 = dma.hbm_to_vmem [thread:$0]  (!%p15323_p2), %s15319_s29, 1024, %s15321_s7, %s15334_s28, %s17730_s6, %s17730_s6, %s17729_s30  }
  0x52   : > { %s209_s9 = sand.u32 1, %s15184_s18   ;;  %s15080_s26 = scalar_lea.hbm %s15330_s12, 1024 }
  0x53   : > { %s210_s10 = scalar_lea.sflag [#allocation6], %s209_s9  ;;  %p15081_p1 = scmp.ne.s32.totalorder %s15330_s12, %s15080_s26 }
  0x54   : > { %s15085_s25 = scalar_lea.hbm %s17621_s1, 2048  ;;  %p15086_p5 = scmp.lt.s32.totalorder %s15330_s12, %s17621_s1 }
  0x55   : > { %p15083_p4 = pnand %p15081_p1, %p15054_p7  ;;  %p15087_p12 = scmp.lt.s32.totalorder %s15085_s25, %s15080_s26 }
  0x57   : > { %p15084_p6 = pneg %p15083_p4  ;;  %p15088_p0 = por %p15087_p12, %p15086_p5 }
  0x59   : > { %p15089_p10 = pnand %p15088_p0, %p15084_p6 }
  0x5b   : > { %15092 = shalt.err (!%p15089_p10)
}
  0x5c   : > { %s15093_s29 = scalar_lea.vmem %s15365_s27, 1024  ;;  %s15191_s7 = smov [#allocation5]  }
  0x5d   : > { %p15094_p3 = scmp.ne.s32.totalorder %s15365_s27, %s15093_s29  ;;  %s15098_s28 = sshll.u32 %s15191_s7, 4  ;;  %s15099_s28 = int_to_ptr.vmem [resolvable:$false] %s15098_s28 }
  0x5e   : > { %s15100_s9 = scalar_lea.vmem %s15099_s28, 2048  ;;  %p15101_p13 = scmp.lt.s32.totalorder %s15365_s27, %s15099_s28 }
  0x5f   : > { %p15096_p11 = pnand %p15094_p3, %p15054_p7  ;;  %p15102_p1 = scmp.lt.s32.totalorder %s15100_s9, %s15093_s29 }
  0x61   : > { %p15097_p9 = pneg %p15096_p11  ;;  %p15103_p4 = por %p15102_p1, %p15101_p13 }
  0x63   : > { %p15104_p5 = pnand %p15103_p4, %p15097_p9 }
  0x65   : > { %15107 = shalt.err (!%p15104_p5)
}
  0x66   : > { %14937 = dma.hbm_to_vmem [thread:$0]  (!%p15323_p2), %s15330_s12, 1024, %s15365_s27, %s210_s10, %s17730_s6, %s17730_s6, %s17729_s30  }
  0x67   : > { %232 = sbr.rel (%p15258_p8) target bundleno = 1285 (0x505), region = 36 }
  0x6c   : > { %s15396_s0 = sand.u32 1, %s15176_s16   ;;  %p17731_p7 = scmp.ne.s32.totalorder %s17722_s21, 0 }
  0x6d   : > { %s12941_s26 = sshll.u32 %s15396_s0, 6  ;;  %s235_s24 = scalar_lea.sflag [#allocation3], %s15396_s0 }
  0x6e   : > { %s15400_s5 = scalar_lea.vmem [#allocation2], %s12941_s26 }
  0x6f   : > { %15151 = dma.done.wait (%p17731_p7), %s235_s24, 1024  }
  0x70   : > { %15153 = vsyncadd (%p17731_p7), %s235_s24, 4294966272  ;;  %s243_s8 = sand.u32 1, %s15239_s19   ;;  %s15407_s12 = scalar_lea.vmem [#allocation5], %s12941_s26 }
  0x71   : > { %s244_s23 = scalar_lea.sflag [#allocation6], %s243_s8 }
  0x72   : > { %15155 = dma.done.wait (%p17731_p7), %s244_s23, 1024  }
  0x73   : > { %15157 = vsyncadd (%p17731_p7), %s244_s23, 4294966272  ;;  %p17732_p8 = scmp.eq.s32.totalorder %s15239_s19, 0 }
  0x75   : > { %15159 = dma.done.wait (%p17732_p8), [#allocation6], 256   ;;  %p17733_p2 = pmov %p17732_p8 }
  0x77   : > { %15161 = vsyncadd (%p17733_p2), [#allocation6], 4294967040  ;;  %p17734_p6 = pmov %p17733_p2 }
  0x78   : > { %p17735_p12 = pmov %p17733_p2 }
  0x79   : > { %15163 = dma.done.wait (%p17734_p6), [#allocation9], 256  }
  0x7a   : > { %15165 = vsyncadd (%p17735_p12), [#allocation9], 4294967040  ;;  %vm329_vm0 = vcmask 130048   ;;  %v302_v0 = vld [vmem:[#allocation7 + $0x8] sm:$0xff]  ;;  %v301_v1 = vld [vmem:[#allocation7] sm:$0xff]  ;;  %s12945_s21 = sshll.u32 %s15396_s0, 3 }
  0x7b   : > { %v15422_v2 = vld [vmem:[%s15400_s5] sm:$0xff]  ;;  %v15424_v3 = vand.u32 4294901760, %v302_v0  ;;  %v15426_v4 = vand.u32 4294901760, %v301_v1  ;;  %v15431_v6 = vld [vmem:[%s15400_s5 + $0x8] sm:$0xff]  ;;  %v15434_v7 = vld [vmem:[%s15400_s5 + $0x10] sm:$0xff]  ;;  %s284_s27 = scalar_lea.vmem [#allocation10], %s12945_s21 }
  0x7c   : > { %v331_v5 = vsel %vm329_vm0, %v15422_v2, 0  ;;  %v15438_v8 = vmul.f32 %v15422_v2, %v15422_v2  ;;  %v334_v10 = vsel %vm329_vm0, %v15431_v6, 0  ;;  %v337_v11 = vsel %vm329_vm0, %v15434_v7, 0  ;;  %v15447_v12 = vld [vmem:[%s15400_s5 + $0x18] sm:$0xff]  ;;  %v15450_v13 = vld [vmem:[%s15400_s5 + $0x20] sm:$0xff]  ;;  %v15453_v14 = vld [vmem:[%s15400_s5 + $0x28] sm:$0xff] }
  0x7d   : > { %v15440_v9 = vand.u32 4294901760, %v331_v5  ;;  %13684 = vmatprep.subr.mxu0 %v15424_v3  ;;  %v15457_v15 = vsub.f32 %v302_v0, %v15424_v3  ;;  %v15459_v16 = vand.u32 4294901760, %v334_v10  ;;  %v15462_v17 = vsub.f32 %v301_v1, %v15426_v4  ;;  %v15518_v39 = vld [vmem:[%s15400_s5 + $0x30] sm:$0xff]  ;;  %v15521_v40 = vld [vmem:[%s15400_s5 + $0x38] sm:$0xff]  ;;  %v15524_v42 = vld [vmem:[%s15407_s12] sm:$0xff]  ;;  %s12817_s30 = sshll.u32 %s284_s27, 4  ;;  %s17580_s30 = int_to_ptr.vmem [resolvable:$true] %s12817_s30 }
  0x7e   : > { %v15464_v18 = vand.u32 4294901760, %v337_v11  ;;  %13685 = vmatpush3.msra.mxu0 %v15424_v3  ;;  %v340_v20 = vsel %vm329_vm0, %v15447_v12, 0  ;;  %v343_v21 = vsel %vm329_vm0, %v15450_v13, 0  ;;  %v346_v22 = vsel %vm329_vm0, %v15453_v14, 0  ;;  %v15536_v50 = vld [vmem:[%s15407_s12 + $0x8] sm:$0xff]  ;;  %v15539_v51 = vld [vmem:[%s15407_s12 + $0x10] sm:$0xff] }
  0x7f   : > { %17736 = vst [vmem:[#allocation16_spill] sm:$0xff] %v15440_v9  ;;  %17737 = vst [vmem:[#allocation17_spill] sm:$0xff] %v15459_v16  ;;  %v15468_v19 = vsub.f32 %v331_v5, %v15440_v9  ;;  %13752 = vmatprep.mubr.f32.mxu1 %v15440_v9  ;;  %13686 = vmatprep.subr.mxu0 %v15426_v4  ;;  %v15479_v23 = vand.u32 4294901760, %v15457_v15  ;;  %v15482_v24 = vsub.f32 %v334_v10, %v15459_v16  ;;  %v15557_v60 = vld [vmem:[%s15407_s12 + $0x18] sm:$0xff]  ;;  %v15568_v1 = vld [vmem:[%s15407_s12 + $0x20] sm:$0xff]  ;;  %s12947_s6 = sshll.u32 %s15239_s19, 7 }
  0x80   : > { %17738 = vst [vmem:[#allocation18_spill] sm:$0xff] %v15464_v18  ;;  %v15485_v25 = vand.u32 4294901760, %v15462_v17  ;;  %v15488_v26 = vsub.f32 %v337_v11, %v15464_v18  ;;  %13687 = vmatpush3.msra.mxu0 %v15426_v4  ;;  %v15492_v28 = vand.u32 4294901760, %v340_v20  ;;  %v15494_v29 = vand.u32 4294901760, %v343_v21  ;;  %v15571_v5 = vld [vmem:[%s15407_s12 + $0x28] sm:$0xff]  ;;  %s12815_s29 = scalar_lea.hbm %s17624_s4, %s12947_s6  ;;  %s12804_s7 = scalar_lea.sflag [#allocation4], %s15396_s0 }
  0x81   : > { %v17642_v27 = vand.u32 4294901760, %v15468_v19  ;;  %v15496_v30 = vand.u32 4294901760, %v346_v22  ;;  %v949_v31 = vsub.f32 %v15457_v15, %v15479_v23  ;;  %v17641_v32 = vand.u32 4294901760, %v15482_v24  ;;  %13812 = vmatprep.subr.mxu0 %v15457_v15  ;;  %s15108_s28 = scalar_lea.vmem %s17580_s30, 128  ;;  %p17966_p10 = scmp.ne.s32.totalorder %s17726_s14, 0 }
  0x82   : > { %17739 = vst [vmem:[#allocation19_spill] sm:$0xff] %v15492_v28  ;;  %17740 = vst [vmem:[#allocation20_spill] sm:$0xff] %v15494_v29  ;;  %v956_v33 = vsub.f32 %v15462_v17, %v15485_v25  ;;  %v17640_v34 = vand.u32 4294901760, %v15488_v26  ;;  %v15509_v36 = vsub.f32 %v340_v20, %v15492_v28  ;;  %v15512_v37 = vsub.f32 %v343_v21, %v15494_v29  ;;  %p15109_p0 = scmp.ne.s32.totalorder %s17580_s30, %s15108_s28  ;;  %s15192_s9 = smov [#allocation10]  }
  0x83   : > { %17741 = vst [vmem:[#allocation21_spill] sm:$0xff] %v15496_v30  ;;  %v520_v35 = vsub.f32 %v15468_v19, %v17642_v27  ;;  %v15515_v38 = vsub.f32 %v346_v22, %v15496_v30  ;;  %v950_v41 = vand.u32 4294901760, %v949_v31  ;;  %v530_v43 = vsub.f32 %v15482_v24, %v17641_v32  ;;  %s15112_s19 = sshll.u32 %s15192_s9, 4  ;;  %s15113_s19 = int_to_ptr.vmem [resolvable:$false] %s15112_s19 }
  0x84   : > { %v957_v44 = vand.u32 4294901760, %v956_v33  ;;  %v540_v45 = vsub.f32 %v15488_v26, %v17640_v34  ;;  %v17639_v47 = vand.u32 4294901760, %v15509_v36  ;;  %v17635_v48 = vand.u32 4294901760, %v15512_v37  ;;  %p15110_p3 = pnand %p15109_p0, %p17966_p10  ;;  %s15114_s26 = scalar_lea.vmem %s15113_s19, 256 }
  0x85   : > { %v521_v46 = vand.u32 4294901760, %v520_v35  ;;  %v17634_v49 = vand.u32 4294901760, %v15515_v38  ;;  %13748 = vmatprep.subr.mxu1 %v950_v41  ;;  %v531_v52 = vand.u32 4294901760, %v530_v43  ;;  %v349_v54 = vsel %vm329_vm0, %v15518_v39, 0  ;;  %p15115_p9 = scmp.lt.s32.totalorder %s17580_s30, %s15113_s19  ;;  %p15116_p13 = scmp.lt.s32.totalorder %s15114_s26, %s15108_s28 }
  0x86   : > { %v541_v53 = vand.u32 4294901760, %v540_v45  ;;  %v352_v55 = vsel %vm329_vm0, %v15521_v40, 0  ;;  %13749 = vmatpush3.msra.mxu1 %v950_v41  ;;  %v550_v56 = vsub.f32 %v15509_v36, %v17639_v47  ;;  %v560_v57 = vsub.f32 %v15512_v37, %v17635_v48  ;;  %p15111_p11 = pneg %p15110_p3 }
  0x87   : > { %13688 = vmatprep.mubr.f32.mxu0 %v521_v46  ;;  %v570_v58 = vsub.f32 %v15515_v38, %v17634_v49  ;;  %v15554_v59 = vand.u32 4294901760, %v349_v54  ;;  %13750 = vmatprep.subr.mxu1 %v957_v44  ;;  %v15559_v61 = vand.u32 4294901760, %v352_v55  ;;  %v355_v62 = vsel %vm329_vm0, %v15524_v42, 0  ;;  %p15117_p1 = por %p15116_p13, %p15115_p9 }
  0x88   : > { %13689 = vmatmul.mubr.f32.vlgmr.msra.gmra.mxu0 %v531_v52  ;;  %v358_v63 = vsel %vm329_vm0, %v15536_v50, 0  ;;  %v361_v0 = vsel %vm329_vm0, %v15539_v51, 0  ;;  %13751 = vmatpush3.msra.mxu1 %v957_v44  ;;  %v551_v10 = vand.u32 4294901760, %v550_v56  ;;  %v561_v11 = vand.u32 4294901760, %v560_v57 }
  0x89   : > { %17742 = vst [vmem:[#allocation22_spill] sm:$0xff] %v15554_v59  ;;  %17743 = vst [vmem:[#allocation23_spill] sm:$0xff] %v15559_v61  ;;  %13691 = vmatprep.mubr.f32.mxu0 %v541_v53  ;;  %v571_v20 = vand.u32 4294901760, %v570_v58  ;;  %v15574_v21 = vsub.f32 %v349_v54, %v15554_v59  ;;  %13753 = vmatmul.mubr.f32.vlgmr.msra.gmra.mxu1 %v15459_v16  ;;  %v15578_v22 = vsub.f32 %v352_v55, %v15559_v61  ;;  %p15118_p4 = pnand %p15117_p1, %p15111_p11 }
  0x8a   : > { %v15580_v31 = vand.u32 4294901760, %v355_v62  ;;  %v15582_v33 = vand.u32 4294901760, %v358_v63  ;;  %v15584_v35 = vand.u32 4294901760, %v361_v0  ;;  %13813 = vmatpush3.msra.mxu0 %v15457_v15  ;;  %13755 = vmatprep.mubr.f32.mxu1 %v15464_v18  ;;  %v364_v43 = vsel %vm329_vm0, %v15557_v60, 0 }
  0x8b   : > { %v17632_v41 = vand.u32 4294901760, %v15574_v21  ;;  %v367_v44 = vsel %vm329_vm0, %v15568_v1, 0  ;;  %v370_v45 = vsel %vm329_vm0, %v15571_v5, 0  ;;  %13814 = vmatprep.subr.mxu0 %v15462_v17  ;;  %v17633_v46 = vand.u32 4294901760, %v15578_v22  ;;  %13876 = vmatprep.subr.mxu1 %v15424_v3 }
  0x8c   : > { %17744 = vst [vmem:[#allocation24_spill] sm:$0xff] %v15580_v31  ;;  %17745 = vst [vmem:[#allocation25_spill] sm:$0xff] %v15582_v33  ;;  %13692 = vmatmul.mubr.f32.gmra.mxu0 %v551_v10  ;;  %v15598_v15 = vsub.f32 %v355_v62, %v15580_v31  ;;  %v15601_v52 = vsub.f32 %v358_v63, %v15582_v33  ;;  %v15604_v53 = vsub.f32 %v361_v0, %v15584_v35  ;;  %v15625_v10 = vld [vmem:[%s15407_s12 + $0x30] sm:$0xff] }
  0x8d   : > { %17746 = vst [vmem:[#allocation26_spill] sm:$0xff] %v15584_v35  ;;  %13694 = vmatprep.mubr.f32.mxu0 %v561_v11  ;;  %v580_v54 = vsub.f32 %v15574_v21, %v17632_v41  ;;  %v15610_v55 = vand.u32 4294901760, %v364_v43  ;;  %v15612_v56 = vand.u32 4294901760, %v367_v44  ;;  %v15614_v57 = vand.u32 4294901760, %v370_v45  ;;  %13815 = vmatpush3.msra.mxu0 %v15462_v17 }
  0x8e   : > { %13756 = vmatmul.mubr.f32.gmra.mxu1 %v15492_v28  ;;  %v590_v58 = vsub.f32 %v15578_v22, %v17633_v46  ;;  %v17636_v62 = vand.u32 4294901760, %v15598_v15  ;;  %v17637_v63 = vand.u32 4294901760, %v15601_v52  ;;  %v17638_v0 = vand.u32 4294901760, %v15604_v53  ;;  %13940 = vmatprep.subr.mxu0 %v15479_v23 }
  0x8f   : > { %17747 = vst [vmem:[#allocation27_spill] sm:$0xff] %v15610_v55  ;;  %17748 = vst [vmem:[#allocation28_spill] sm:$0xff] %v15612_v56  ;;  %13758 = vmatprep.mubr.f32.mxu1 %v15494_v29  ;;  %v581_v17 = vand.u32 4294901760, %v580_v54  ;;  %v15630_v11 = vsub.f32 %v364_v43, %v15610_v55  ;;  %v15633_v41 = vsub.f32 %v367_v44, %v15612_v56  ;;  %13877 = vmatpush3.msra.mxu1 %v15424_v3  ;;  %v15649_v44 = vld [vmem:[%s15407_s12 + $0x38] sm:$0xff] }
  0x90   : > { %17749 = vst [vmem:[#allocation29_spill] sm:$0xff] %v15614_v57  ;;  %v15636_v46 = vsub.f32 %v370_v45, %v15614_v57  ;;  %13695 = vmatmul.mubr.f32.gmra.mxu0 %v571_v20  ;;  %v591_v49 = vand.u32 4294901760, %v590_v58  ;;  %v600_v48 = vsub.f32 %v15598_v15, %v17636_v62  ;;  %v610_v54 = vsub.f32 %v15601_v52, %v17637_v63 }
  0x91   : > { %v620_v43 = vsub.f32 %v15604_v53, %v17638_v0  ;;  %13878 = vmatprep.subr.mxu1 %v15426_v4  ;;  %13697 = vmatprep.mubr.f32.mxu0 %v581_v17  ;;  %v17643_v20 = vand.u32 4294901760, %v15630_v11  ;;  %v17646_v45 = vand.u32 4294901760, %v15633_v41  ;;  %v373_v62 = vsel %vm329_vm0, %v15625_v10, 0 }
  0x92   : > { %17750 = vst [vmem:[#allocation30_spill] sm:$0xff] %v15636_v46  ;;  %13879 = vmatpush3.msra.mxu1 %v15426_v4  ;;  %v601_v63 = vand.u32 4294901760, %v600_v48  ;;  %v611_v0 = vand.u32 4294901760, %v610_v54  ;;  %v15659_v47 = vand.u32 4294901760, %v373_v62  ;;  %v376_v27 = vsel %vm329_vm0, %v15649_v44, 0 }
  0x93   : > { %13759 = vmatmul.mubr.f32.gmra.mxu1 %v15496_v30  ;;  %14004 = vmatprep.subr.mxu1 %v15424_v3  ;;  %v621_v17 = vand.u32 4294901760, %v620_v43  ;;  %v630_v34 = vsub.f32 %v15630_v11, %v17643_v20  ;;  %v640_v32 = vsub.f32 %v15633_v41, %v17646_v45  ;;  %v15674_v54 = vand.u32 4294901760, %v376_v27 }
  0x94   : > { %17751 = vst [vmem:[#allocation31_spill] sm:$0xff] %v15659_v47  ;;  %13761 = vmatprep.mubr.f32.mxu1 %v15554_v59  ;;  %13698 = vmatmul.mubr.f32.gmra.mxu0 %v591_v49  ;;  %v15672_v48 = vsub.f32 %v373_v62, %v15659_v47  ;;  %v379_v43 = vsel %vm329_vm0, %v15438_v8, 0  ;;  %v306_v58 = vmul.f32 %v15431_v6, %v15431_v6  ;;  %v17754_v45 = vand.u32 4294901760, %v15636_v46 }
  0x95   : > { %17753 = vst [vmem:[#allocation33_spill] sm:$0xff] %v15674_v54  ;;  %13700 = vmatprep.mubr.f32.mxu0 %v601_v63  ;;  %v631_v20 = vand.u32 4294901760, %v630_v34  ;;  %v641_v59 = vand.u32 4294901760, %v640_v32  ;;  %v15683_v29 = vand.u32 4294901760, %v379_v43  ;;  %v15688_v62 = vsub.f32 %v376_v27, %v15674_v54 }
  0x96   : > { %17752 = vst [vmem:[#allocation32_spill] sm:$0xff] %v15672_v48  ;;  %v650_v30 = vsub.f32 %v15636_v46, %v17754_v45  ;;  %v382_v8 = vsel %vm329_vm0, %v306_v58, 0  ;;  %v307_v63 = vmul.f32 %v15434_v7, %v15434_v7  ;;  %v308_v45 = vmul.f32 %v15447_v12, %v15447_v12 }
  0x97   : > { %17755 = vst [vmem:[#allocation34_spill] sm:$0xff] %v15683_v29  ;;  %13762 = vmatmul.mubr.f32.gmra.mxu1 %v15559_v61  ;;  %17756 = vst [vmem:[#allocation35_spill] sm:$0xff] %v15688_v62  ;;  %v15695_v32 = vsub.f32 %v379_v43, %v15683_v29  ;;  %v15697_v34 = vand.u32 4294901760, %v382_v8  ;;  %v309_v49 = vmul.f32 %v15450_v13, %v15450_v13  ;;  %v17759_v27 = vand.u32 4294901760, %v15672_v48 }
  0x98   : > { %13764 = vmatprep.mubr.f32.mxu1 %v15580_v31  ;;  %13701 = vmatmul.mubr.f32.gmra.mxu0 %v611_v0  ;;  %v17667_v61 = vand.u32 4294901760, %v15688_v62  ;;  %v385_v31 = vsel %vm329_vm0, %v307_v63, 0  ;;  %v310_v43 = vmul.f32 %v15453_v14, %v15453_v14  ;;  %v388_v0 = vsel %vm329_vm0, %v308_v45, 0 }
  0x99   : > { %17757 = vst [vmem:[#allocation36_spill] sm:$0xff] %v15695_v32  ;;  %17758 = vst [vmem:[#allocation37_spill] sm:$0xff] %v15697_v34  ;;  %v660_v58 = vsub.f32 %v15672_v48, %v17759_v27  ;;  %13703 = vmatprep.mubr.f32.mxu0 %v621_v17  ;;  %v17670_v28 = vand.u32 4294901760, %v15695_v32  ;;  %v15712_v18 = vsub.f32 %v382_v8, %v15697_v34  ;;  %v15714_v16 = vand.u32 4294901760, %v385_v31 }
  0x9a   : > { %v651_v27 = vand.u32 4294901760, %v650_v30  ;;  %v15718_v9 = vand.u32 4294901760, %v388_v0  ;;  %v391_v63 = vsel %vm329_vm0, %v309_v49, 0  ;;  %v670_v17 = vsub.f32 %v15688_v62, %v17667_v61 }
  0x9b   : > { %17760 = vst [vmem:[#allocation38_spill] sm:$0xff] %v15712_v18  ;;  %17761 = vst [vmem:[#allocation39_spill] sm:$0xff] %v15714_v16  ;;  %13765 = vmatmul.mubr.f32.gmra.mxu1 %v15582_v33  ;;  %v680_v8 = vsub.f32 %v15695_v32, %v17670_v28  ;;  %v15729_v48 = vsub.f32 %v385_v31, %v15714_v16  ;;  %v15731_v45 = vand.u32 4294901760, %v391_v63  ;;  %v661_v33 = vand.u32 4294901760, %v660_v58 }
  0x9c   : > { %17762 = vst [vmem:[#allocation40_spill] sm:$0xff] %v15718_v9  ;;  %13767 = vmatprep.mubr.f32.mxu1 %v15584_v35  ;;  %13704 = vmatmul.mubr.f32.gmra.mxu0 %v631_v20  ;;  %v15735_v49 = vsub.f32 %v388_v0, %v15718_v9  ;;  %v394_v35 = vsel %vm329_vm0, %v310_v43, 0  ;;  %v311_v61 = vmul.f32 %v15518_v39, %v15518_v39 }
  0x9d   : > { %17763 = vst [vmem:[#allocation41_spill] sm:$0xff] %v15729_v48  ;;  %17764 = vst [vmem:[#allocation42_spill] sm:$0xff] %v15731_v45  ;;  %13706 = vmatprep.mubr.f32.mxu0 %v641_v59  ;;  %v15742_v31 = vsub.f32 %v391_v63, %v15731_v45  ;;  %v15746_v30 = vand.u32 4294901760, %v394_v35  ;;  %v312_v43 = vmul.f32 %v15521_v40, %v15521_v40  ;;  %v671_v59 = vand.u32 4294901760, %v670_v17 }
  0x9e   : > { %17765 = vst [vmem:[#allocation43_spill] sm:$0xff] %v15735_v49  ;;  %v397_v0 = vsel %vm329_vm0, %v311_v61, 0  ;;  %v681_v58 = vand.u32 4294901760, %v680_v8  ;;  %v17767_v63 = vand.u32 4294901760, %v15712_v18  ;;  %v313_v61 = vmul.f32 %v15524_v42, %v15524_v42 }
  0x9f   : > { %17766 = vst [vmem:[#allocation44_spill] sm:$0xff] %v15742_v31  ;;  %13768 = vmatmul.mubr.f32.gmra.mxu1 %v15610_v55  ;;  %v15752_v32 = vand.u32 4294901760, %v397_v0  ;;  %v15758_v20 = vsub.f32 %v394_v35, %v15746_v30  ;;  %v400_v55 = vsel %vm329_vm0, %v312_v43, 0  ;;  %v17771_v35 = vand.u32 4294901760, %v15735_v49 }
  0xa0   : > { %13770 = vmatprep.mubr.f32.mxu1 %v15612_v56  ;;  %13707 = vmatmul.mubr.f32.gmra.mxu0 %v651_v27  ;;  %v690_v28 = vsub.f32 %v15712_v18, %v17767_v63  ;;  %v17769_v56 = vand.u32 4294901760, %v15729_v48  ;;  %v15770_v62 = vand.u32 4294901760, %v400_v55  ;;  %v403_v63 = vsel %vm329_vm0, %v313_v61, 0 }
  0xa1   : > { %17768 = vst [vmem:[#allocation45_spill] sm:$0xff] %v15758_v20  ;;  %13709 = vmatprep.mubr.f32.mxu0 %v661_v33  ;;  %v15768_v27 = vsub.f32 %v397_v0, %v15752_v32  ;;  %v710_v43 = vsub.f32 %v15735_v49, %v17771_v35  ;;  %v314_v33 = vmul.f32 %v15536_v50, %v15536_v50 }
  0xa2   : > { %v700_v17 = vsub.f32 %v15729_v48, %v17769_v56  ;;  %v15783_v8 = vsub.f32 %v400_v55, %v15770_v62  ;;  %v15785_v48 = vand.u32 4294901760, %v403_v63  ;;  %v315_v61 = vmul.f32 %v15539_v51, %v15539_v51 }
  0xa3   : > { %17770 = vst [vmem:[#allocation46_spill] sm:$0xff] %v15768_v27  ;;  %13771 = vmatmul.mubr.f32.gmra.mxu1 %v15614_v57  ;;  %v691_v57 = vand.u32 4294901760, %v690_v28  ;;  %v406_v35 = vsel %vm329_vm0, %v314_v33, 0  ;;  %v316_v49 = vmul.f32 %v15557_v60, %v15557_v60  ;;  %v17773_v56 = vand.u32 4294901760, %v15742_v31 }
  0xa4   : > { %13773 = vmatprep.mubr.f32.mxu1 %v15659_v47  ;;  %17772 = vst [vmem:[#allocation47_spill] sm:$0xff] %v15783_v8  ;;  %13710 = vmatmul.mubr.f32.gmra.mxu0 %v671_v59  ;;  %v701_v47 = vand.u32 4294901760, %v700_v17  ;;  %v15796_v55 = vsub.f32 %v403_v63, %v15785_v48  ;;  %v15798_v18 = vand.u32 4294901760, %v406_v35  ;;  %v711_v28 = vand.u32 4294901760, %v710_v43 }
  0xa5   : > { %13712 = vmatprep.mubr.f32.mxu0 %v681_v58  ;;  %v720_v0 = vsub.f32 %v15742_v31, %v17773_v56  ;;  %v409_v59 = vsel %vm329_vm0, %v315_v61, 0  ;;  %v412_v33 = vsel %vm329_vm0, %v316_v49, 0  ;;  %v317_v58 = vmul.f32 %v15568_v1, %v15568_v1 }
  0xa6   : > { %17774 = vst [vmem:[#allocation48_spill] sm:$0xff] %v15796_v55  ;;  %v17775_v17 = vand.u32 4294901760, %v15758_v20  ;;  %v17776_v63 = vand.u32 4294901760, %v15768_v27  ;;  %v15814_v43 = vsub.f32 %v406_v35, %v15798_v18  ;;  %v15816_v49 = vand.u32 4294901760, %v409_v59 }
  0xa7   : > { %13774 = vmatmul.mubr.f32.gmra.mxu1 %v15674_v54  ;;  %v15818_v61 = vand.u32 4294901760, %v412_v33  ;;  %v318_v46 = vmul.f32 %v15571_v5, %v15571_v5 }
  0xa8   : > { %13776 = vmatprep.mubr.f32.mxu1 %v15683_v29  ;;  %v730_v56 = vsub.f32 %v15758_v20, %v17775_v17  ;;  %v740_v31 = vsub.f32 %v15768_v27, %v17776_v63  ;;  %13713 = vmatmul.mubr.f32.gmra.mxu0 %v691_v57  ;;  %v415_v29 = vsel %vm329_vm0, %v317_v58, 0  ;;  %v321_v17 = vmul.f32 %v15524_v42, %v15422_v2 }
  0xa9   : > { %13715 = vmatprep.mubr.f32.mxu0 %v701_v47  ;;  %v721_v63 = vand.u32 4294901760, %v720_v0  ;;  %v15826_v27 = vand.u32 4294901760, %v415_v29  ;;  %v15831_v35 = vsub.f32 %v409_v59, %v15816_v49  ;;  %v418_v58 = vsel %vm329_vm0, %v318_v46, 0 }
  0xaa   : > { %v319_v20 = vmul.f32 %v15625_v10, %v15625_v10  ;;  %v731_v2 = vand.u32 4294901760, %v730_v56  ;;  %v15838_v42 = vsub.f32 %v412_v33, %v15818_v61  ;;  %v15840_v47 = vand.u32 4294901760, %v418_v58 }
  0xab   : > { %13777 = vmatmul.mubr.f32.gmra.mxu1 %v15697_v34  ;;  %v741_v0 = vand.u32 4294901760, %v740_v31  ;;  %v17777_v57 = vand.u32 4294901760, %v15783_v8  ;;  %v320_v46 = vmul.f32 %v15649_v44, %v15649_v44  ;;  %v15853_v34 = vsub.f32 %v415_v29, %v15826_v27 }
  0xac   : > { %13779 = vmatprep.mubr.f32.mxu1 %v15714_v16  ;;  %13716 = vmatmul.mubr.f32.gmra.mxu0 %v711_v28  ;;  %v421_v54 = vsel %vm329_vm0, %v319_v20, 0  ;;  %v17778_v16 = vand.u32 4294901760, %v15796_v55  ;;  %v17779_v28 = vand.u32 4294901760, %v15814_v43  ;;  %v15866_v33 = vsub.f32 %v418_v58, %v15840_v47 }
  0xad   : > { %v750_v59 = vsub.f32 %v15783_v8, %v17777_v57  ;;  %13718 = vmatprep.mubr.f32.mxu0 %v721_v63  ;;  %v15855_v31 = vand.u32 4294901760, %v421_v54  ;;  %v424_v57 = vsel %vm329_vm0, %v320_v46, 0  ;;  %v427_v63 = vsel %vm329_vm0, %v321_v17, 0 }
  0xae   : > { %v760_v56 = vsub.f32 %v15796_v55, %v17778_v16  ;;  %v770_v20 = vsub.f32 %v15814_v43, %v17779_v28  ;;  %v15871_v55 = vand.u32 4294901760, %v424_v57  ;;  %v15873_v8 = vand.u32 4294901760, %v427_v63 }
  0xaf   : > { %13780 = vmatmul.mubr.f32.gmra.mxu1 %v15718_v9  ;;  %v15869_v29 = vsub.f32 %v421_v54, %v15855_v31  ;;  %v751_v9 = vand.u32 4294901760, %v750_v59  ;;  %v322_v46 = vmul.f32 %v15536_v50, %v15431_v6  ;;  %v17780_v28 = vand.u32 4294901760, %v15831_v35 }
  0xb0   : > { %13782 = vmatprep.mubr.f32.mxu1 %v15731_v45  ;;  %13719 = vmatmul.mubr.f32.gmra.mxu0 %v731_v2  ;;  %v761_v17 = vand.u32 4294901760, %v760_v56  ;;  %v17715_v58 = vand.u32 4294901760, %v15853_v34  ;;  %v771_v54 = vand.u32 4294901760, %v770_v20  ;;  %v323_v2 = vmul.f32 %v15539_v51, %v15434_v7 }
  0xb1   : > { %13721 = vmatprep.mubr.f32.mxu0 %v741_v0  ;;  %v780_v16 = vsub.f32 %v15831_v35, %v17780_v28  ;;  %v430_v45 = vsel %vm329_vm0, %v322_v46, 0  ;;  %v324_v59 = vmul.f32 %v15557_v60, %v15447_v12  ;;  %v17781_v6 = vand.u32 4294901760, %v15838_v42 }
  0xb2   : > { %v17713_v0 = vand.u32 4294901760, %v15866_v33  ;;  %v17714_v56 = vand.u32 4294901760, %v15869_v29  ;;  %v15894_v20 = vsub.f32 %v424_v57, %v15871_v55  ;;  %v15897_v46 = vsub.f32 %v427_v63, %v15873_v8 }
  0xb3   : > { %13783 = vmatmul.mubr.f32.gmra.mxu1 %v15746_v30  ;;  %v790_v50 = vsub.f32 %v15838_v42, %v17781_v6  ;;  %v15899_v7 = vand.u32 4294901760, %v430_v45  ;;  %v433_v12 = vsel %vm329_vm0, %v323_v2, 0  ;;  %v325_v51 = vmul.f32 %v15568_v1, %v15450_v13 }
  0xb4   : > { %13785 = vmatprep.mubr.f32.mxu1 %v15752_v32  ;;  %13722 = vmatmul.mubr.f32.gmra.mxu0 %v751_v9  ;;  %v781_v60 = vand.u32 4294901760, %v780_v16  ;;  %v800_v28 = vsub.f32 %v15853_v34, %v17715_v58  ;;  %v15907_v6 = vand.u32 4294901760, %v433_v12  ;;  %v436_v9 = vsel %vm329_vm0, %v324_v59, 0 }
  0xb5   : > { %13724 = vmatprep.mubr.f32.mxu0 %v761_v17  ;;  %v439_v57 = vsel %vm329_vm0, %v325_v51, 0  ;;  %v326_v63 = vmul.f32 %v15571_v5, %v15453_v14  ;;  %v791_v13 = vand.u32 4294901760, %v790_v50  ;;  %v810_v1 = vsub.f32 %v15866_v33, %v17713_v0 }
  0xb6   : > { %v820_v16 = vsub.f32 %v15869_v29, %v17714_v56  ;;  %v17719_v17 = vand.u32 4294901760, %v15894_v20  ;;  %v17716_v2 = vand.u32 4294901760, %v15897_v46  ;;  %v15924_v59 = vsub.f32 %v430_v45, %v15899_v7 }
  0xb7   : > { %13786 = vmatmul.mubr.f32.gmra.mxu1 %v15770_v62  ;;  %v15926_v14 = vand.u32 4294901760, %v436_v9  ;;  %v327_v5 = vmul.f32 %v15625_v10, %v15518_v39  ;;  %v801_v50 = vand.u32 4294901760, %v800_v28  ;;  %v15931_v51 = vsub.f32 %v433_v12, %v15907_v6 }
  0xb8   : > { %13788 = vmatprep.mubr.f32.mxu1 %v15785_v48  ;;  %13725 = vmatmul.mubr.f32.gmra.mxu0 %v771_v54  ;;  %v15933_v0 = vand.u32 4294901760, %v439_v57  ;;  %v442_v56 = vsel %vm329_vm0, %v326_v63, 0  ;;  %v328_v45 = vmul.f32 %v15649_v44, %v15521_v40  ;;  %v811_v58 = vand.u32 4294901760, %v810_v1 }
  0xb9   : > { %13727 = vmatprep.mubr.f32.mxu0 %v781_v60  ;;  %v445_v54 = vsel %vm329_vm0, %v327_v5, 0  ;;  %v821_v39 = vand.u32 4294901760, %v820_v16  ;;  %v830_v10 = vsub.f32 %v15894_v20, %v17719_v17  ;;  %v840_v12 = vsub.f32 %v15897_v46, %v17716_v2 }
  0xba   : > { %v17717_v60 = vand.u32 4294901760, %v15924_v59  ;;  %v15949_v28 = vsub.f32 %v436_v9, %v15926_v14  ;;  %v15951_v63 = vand.u32 4294901760, %v442_v56  ;;  %v17718_v40 = vand.u32 4294901760, %v15931_v51 }
  0xbb   : > { %13789 = vmatmul.mubr.f32.gmra.mxu1 %v15798_v18  ;;  %v15955_v44 = vsub.f32 %v439_v57, %v15933_v0  ;;  %v15957_v1 = vand.u32 4294901760, %v445_v54  ;;  %v831_v16 = vand.u32 4294901760, %v830_v10  ;;  %v841_v2 = vand.u32 4294901760, %v840_v12 }
  0xbc   : > { %13791 = vmatprep.mubr.f32.mxu1 %v15816_v49  ;;  %13728 = vmatmul.mubr.f32.gmra.mxu0 %v791_v13  ;;  %v448_v13 = vsel %vm329_vm0, %v328_v45, 0  ;;  %v850_v9 = vsub.f32 %v15924_v59, %v17717_v60  ;;  %v869_v5 = vand.u32 4294901760, %v15949_v28  ;;  %v860_v45 = vsub.f32 %v15931_v51, %v17718_v40 }
  0xbd   : > { %13730 = vmatprep.mubr.f32.mxu0 %v801_v50  ;;  %v15967_v50 = vsub.f32 %v442_v56, %v15951_v63  ;;  %v15969_v57 = vand.u32 4294901760, %v448_v13  ;;  %v17720_v10 = vand.u32 4294901760, %v15955_v44 }
  0xbe   : > { %v851_v56 = vand.u32 4294901760, %v850_v9  ;;  %v861_v40 = vand.u32 4294901760, %v860_v45 }
  0xbf   : > { %13792 = vmatmul.mubr.f32.gmra.mxu1 %v15818_v61  ;;  %v889_v12 = vand.u32 4294901760, %v15967_v50  ;;  %v15985_v60 = vsub.f32 %v448_v13, %v15969_v57 }
  0xc0   : > { %13794 = vmatprep.mubr.f32.mxu1 %v15826_v27  ;;  %13731 = vmatmul.mubr.f32.gmra.mxu0 %v811_v58  ;;  %v15976_v58 = vsub.f32 %v445_v54, %v15957_v1  ;;  %v880_v54 = vsub.f32 %v15955_v44, %v17720_v10 }
  0xc1   : > { %13733 = vmatprep.mubr.f32.mxu0 %v821_v39  ;;  %v870_v39 = vsub.f32 %v15949_v28, %v869_v5  ;;  %v890_v9 = vsub.f32 %v15967_v50, %v889_v12  ;;  %v909_v13 = vand.u32 4294901760, %v15985_v60 }
  0xc2   : > { %v899_v17 = vand.u32 4294901760, %v15976_v58 }
  0xc3   : > { %13795 = vmatmul.mubr.f32.gmra.mxu1 %v15840_v47  ;;  %v891_v10 = vand.u32 4294901760, %v890_v9  ;;  %v17800_v9 = vld [vmem:[#allocation36_spill] sm:$0xff] }
  0xc4   : > { %13797 = vmatprep.mubr.f32.mxu1 %v15855_v31  ;;  %13734 = vmatmul.mubr.f32.gmra.mxu0 %v831_v16  ;;  %v871_v16 = vand.u32 4294901760, %v870_v39  ;;  %v900_v45 = vsub.f32 %v15976_v58, %v899_v17 }
  0xc5   : > { %13736 = vmatprep.mubr.f32.mxu0 %v841_v2  ;;  %v881_v2 = vand.u32 4294901760, %v880_v54  ;;  %v17782_v54 = vand.u32 4294901760, %v15468_v19 }
  0xc6   : > { %v901_v39 = vand.u32 4294901760, %v900_v45  ;;  %v17804_v45 = vld [vmem:[#allocation41_spill] sm:$0xff] }
  0xc7   : > { %13798 = vmatmul.mubr.f32.gmra.mxu1 %v15871_v55 }
  0xc8   : > { %13800 = vmatprep.mubr.f32.mxu1 %v15873_v8  ;;  %13737 = vmatmul.mubr.f32.gmra.mxu0 %v851_v56  ;;  %v910_v56 = vsub.f32 %v15985_v60, %v909_v13 }
  0xc9   : > { %13739 = vmatprep.mubr.f32.mxu0 %v861_v40 }
  0xca   : > { %v911_v40 = vand.u32 4294901760, %v910_v56 }
  0xcb   : > { %13801 = vmatmul.mubr.f32.gmra.mxu1 %v15899_v7 }
  0xcc   : > { %13803 = vmatprep.mubr.f32.mxu1 %v15907_v6  ;;  %13740 = vmatmul.mubr.f32.gmra.mxu0 %v871_v16  ;;  %v17784_v16 = vand.u32 4294901760, %v15488_v26 }
  0xcd   : > { %13742 = vmatprep.mubr.f32.mxu0 %v881_v2  ;;  %v17803_v2 = vld [vmem:[#allocation38_spill] sm:$0xff] }
  0xce   : > { %v17805_v56 = vand.u32 4294901760, %v17803_v2 }
  0xcf   : > { %13804 = vmatmul.mubr.f32.gmra.mxu1 %v15926_v14 }
  0xd0   : > { %13806 = vmatprep.mubr.f32.mxu1 %v15933_v0  ;;  %13743 = vmatmul.mubr.f32.gmra.mxu0 %v891_v10  ;;  %v17783_v10 = vand.u32 4294901760, %v15482_v24 }
  0xd1   : > { %13745 = vmatprep.mubr.f32.mxu0 %v901_v39  ;;  %v17806_v39 = vand.u32 4294901760, %v17804_v45 }
  0xd3   : > { %13807 = vmatmul.mubr.f32.gmra.mxu1 %v15951_v63 }
  0xd4   : > { %13809 = vmatprep.mubr.f32.mxu1 %v15957_v1  ;;  %13746 = vmatmul.mubr.f32.gmra.mxu0 %v911_v40  ;;  %v17807_v40 = vld [vmem:[#allocation43_spill] sm:$0xff] }
  0xd5   : > { %13816 = vmatprep.mubr.f32.mxu0 %v15468_v19  ;;  %v17785_v19 = vand.u32 4294901760, %v15509_v36 }
  0xd7   : > { %13810 = vmatmul.mubr.f32.gmra.mxu1 %v15969_v57 }
  0xd8   : > { %13880 = vmatprep.mubr.f32.mxu1 %v17782_v54  ;;  %13817 = vmatmul.mubr.f32.vlgmr.msra.gmra.mxu0 %v15482_v24  ;;  %v17787_v24 = vand.u32 4294901760, %v15515_v38  ;;  %v17808_v54 = vld [vmem:[#allocation44_spill] sm:$0xff] }
  0xd9   : > { %13819 = vmatprep.mubr.f32.mxu0 %v15488_v26  ;;  %13941 = vmatpush3.msra.mxu0 %v15479_v23  ;;  %v17786_v23 = vand.u32 4294901760, %v15512_v37  ;;  %v17790_v26 = vand.u32 4294901760, %v15598_v15 }
  0xda   : > { %13942 = vmatprep.subr.mxu0 %v15485_v25 }
  0xdb   : > { %13881 = vmatmul.mubr.f32.vlgmr.msra.gmra.mxu1 %v17783_v10  ;;  %13943 = vmatpush3.msra.mxu0 %v15485_v25  ;;  %v17789_v25 = vand.u32 4294901760, %v15578_v22  ;;  %v17809_v10 = vand.u32 4294901760, %v17807_v40 }
  0xdc   : > { %13883 = vmatprep.mubr.f32.mxu1 %v17784_v16  ;;  %13820 = vmatmul.mubr.f32.gmra.mxu0 %v15509_v36  ;;  %v17792_v36 = vand.u32 4294901760, %v15604_v53  ;;  %v17810_v16 = vand.u32 4294901760, %v17808_v54 }
  0xdd   : > { %14005 = vmatpush3.msra.mxu1 %v15424_v3  ;;  %13822 = vmatprep.mubr.f32.mxu0 %v15512_v37  ;;  %v17788_v3 = vand.u32 4294901760, %v15574_v21  ;;  %v17793_v37 = vand.u32 4294901760, %v15630_v11 }
  0xde   : > { %14006 = vmatprep.subr.mxu1 %v15426_v4 }
  0xdf   : > { %13884 = vmatmul.mubr.f32.gmra.mxu1 %v17785_v19  ;;  %v17811_v19 = vld [vmem:[#allocation45_spill] sm:$0xff] }
  0xe0   : > { %13886 = vmatprep.mubr.f32.mxu1 %v17786_v23  ;;  %14007 = vmatpush3.msra.mxu1 %v15426_v4  ;;  %v17791_v4 = vand.u32 4294901760, %v15601_v52  ;;  %v17812_v23 = vld [vmem:[#allocation46_spill] sm:$0xff] }
  0xe1   : > { %13823 = vmatmul.mubr.f32.gmra.mxu0 %v15515_v38  ;;  %v17794_v38 = vand.u32 4294901760, %v15633_v41 }
  0xe2   : > { %13825 = vmatprep.mubr.f32.mxu0 %v15574_v21  ;;  %v17795_v21 = vld [vmem:[#allocation30_spill] sm:$0xff] }
  0xe3   : > { %13887 = vmatmul.mubr.f32.gmra.mxu1 %v17787_v24  ;;  %v17813_v24 = vand.u32 4294901760, %v17811_v19 }
  0xe4   : > { %13889 = vmatprep.mubr.f32.mxu1 %v17788_v3  ;;  %v17814_v3 = vand.u32 4294901760, %v17812_v23 }
  0xe5   : > { %13826 = vmatmul.mubr.f32.gmra.mxu0 %v15578_v22  ;;  %v17796_v22 = vld [vmem:[#allocation32_spill] sm:$0xff] }
  0xe6   : > { %13828 = vmatprep.mubr.f32.mxu0 %v15598_v15  ;;  %v17797_v15 = vand.u32 4294901760, %v17795_v21 }
  0xe7   : > { %13890 = vmatmul.mubr.f32.gmra.mxu1 %v17789_v25  ;;  %v17815_v25 = vld [vmem:[#allocation47_spill] sm:$0xff] }
  0xe8   : > { %13892 = vmatprep.mubr.f32.mxu1 %v17790_v26  ;;  %v17816_v26 = vld [vmem:[#allocation48_spill] sm:$0xff] }
  0xe9   : > { %13829 = vmatmul.mubr.f32.gmra.mxu0 %v15601_v52  ;;  %v17798_v52 = vand.u32 4294901760, %v17796_v22 }
  0xea   : > { %13831 = vmatprep.mubr.f32.mxu0 %v15604_v53  ;;  %v17799_v53 = vld [vmem:[#allocation35_spill] sm:$0xff] }
  0xeb   : > { %13893 = vmatmul.mubr.f32.gmra.mxu1 %v17791_v4  ;;  %v17817_v4 = vand.u32 4294901760, %v17815_v25 }
  0xec   : > { %13895 = vmatprep.mubr.f32.mxu1 %v17792_v36  ;;  %v17818_v36 = vand.u32 4294901760, %v17816_v26 }
  0xed   : > { %13832 = vmatmul.mubr.f32.gmra.mxu0 %v15630_v11  ;;  %v17801_v11 = vand.u32 4294901760, %v17799_v53 }
  0xee   : > { %13834 = vmatprep.mubr.f32.mxu0 %v15633_v41  ;;  %v17802_v41 = vand.u32 4294901760, %v17800_v9 }
  0xef   : > { %13896 = vmatmul.mubr.f32.gmra.mxu1 %v17793_v37  ;;  %v17819_v37 = vand.u32 4294901760, %v15814_v43 }
  0xf0   : > { %13898 = vmatprep.mubr.f32.mxu1 %v17794_v38  ;;  %v17820_v38 = vand.u32 4294901760, %v15831_v35 }
  0xf1   : > { %13835 = vmatmul.mubr.f32.gmra.mxu0 %v17795_v21  ;;  %v17821_v21 = vand.u32 4294901760, %v15838_v42 }
  0xf2   : > { %13837 = vmatprep.mubr.f32.mxu0 %v17796_v22  ;;  %v17822_v22 = vand.u32 4294901760, %v15853_v34 }
  0xf3   : > { %13899 = vmatmul.mubr.f32.gmra.mxu1 %v17797_v15  ;;  %v17842_v15 = vld [vmem:[#allocation28_spill] sm:$0xff] }
  0xf4   : > { %13901 = vmatprep.mubr.f32.mxu1 %v17798_v52  ;;  %v17843_v52 = vld [vmem:[#allocation29_spill] sm:$0xff] }
  0xf5   : > { %13838 = vmatmul.mubr.f32.gmra.mxu0 %v17799_v53  ;;  %v17844_v53 = vld [vmem:[#allocation31_spill] sm:$0xff] }
  0xf6   : > { %13840 = vmatprep.mubr.f32.mxu0 %v17800_v9  ;;  %v17845_v9 = vld [vmem:[#allocation33_spill] sm:$0xff] }
  0xf7   : > { %13902 = vmatmul.mubr.f32.gmra.mxu1 %v17801_v11  ;;  %v17846_v11 = vld [vmem:[#allocation34_spill] sm:$0xff] }
  0xf8   : > { %13904 = vmatprep.mubr.f32.mxu1 %v17802_v41 }
  0xf9   : > { %13841 = vmatmul.mubr.f32.gmra.mxu0 %v17803_v2  ;;  %v17847_v2 = vld [vmem:[#allocation37_spill] sm:$0xff] }
  0xfa   : > { %13843 = vmatprep.mubr.f32.mxu0 %v17804_v45  ;;  %v17848_v45 = vld [vmem:[#allocation39_spill] sm:$0xff] }
  0xfb   : > { %13905 = vmatmul.mubr.f32.gmra.mxu1 %v17805_v56 }
  0xfc   : > { %13907 = vmatprep.mubr.f32.mxu1 %v17806_v39 }
  0xfd   : > { %13844 = vmatmul.mubr.f32.gmra.mxu0 %v17807_v40 }
  0xfe   : > { %13846 = vmatprep.mubr.f32.mxu0 %v17808_v54 }
  0xff   : > { %13908 = vmatmul.mubr.f32.gmra.mxu1 %v17809_v10 }
 0x100   : > { %13910 = vmatprep.mubr.f32.mxu1 %v17810_v16  ;;  %v17849_v16 = vld [vmem:[#allocation40_spill] sm:$0xff] }
 0x101   : > { %13847 = vmatmul.mubr.f32.gmra.mxu0 %v17811_v19 }
 0x102   : > { %13849 = vmatprep.mubr.f32.mxu0 %v17812_v23  ;;  %v17850_v23 = vld [vmem:[#allocation42_spill] sm:$0xff] }
 0x103   : > { %13911 = vmatmul.mubr.f32.gmra.mxu1 %v17813_v24 }
 0x104   : > { %13913 = vmatprep.mubr.f32.mxu1 %v17814_v3 }
 0x105   : > { %13850 = vmatmul.mubr.f32.gmra.mxu0 %v17815_v25 }
 0x106   : > { %13852 = vmatprep.mubr.f32.mxu0 %v17816_v26 }
 0x107   : > { %13914 = vmatmul.mubr.f32.gmra.mxu1 %v17817_v4 }
 0x108   : > { %13916 = vmatprep.mubr.f32.mxu1 %v17818_v36 }
 0x109   : > { %13853 = vmatmul.mubr.f32.gmra.mxu0 %v15814_v43  ;;  %v17823_v43 = vand.u32 4294901760, %v15866_v33 }
 0x10a   : > { %13855 = vmatprep.mubr.f32.mxu0 %v15831_v35  ;;  %v17824_v35 = vand.u32 4294901760, %v15869_v29 }
 0x10b   : > { %13917 = vmatmul.mubr.f32.gmra.mxu1 %v17819_v37 }
 0x10c   : > { %13919 = vmatprep.mubr.f32.mxu1 %v17820_v38 }
 0x10d   : > { %13856 = vmatmul.mubr.f32.gmra.mxu0 %v15838_v42  ;;  %v17825_v42 = vand.u32 4294901760, %v15894_v20 }
 0x10e   : > { %13858 = vmatprep.mubr.f32.mxu0 %v15853_v34  ;;  %v17826_v34 = vand.u32 4294901760, %v15897_v46 }
 0x10f   : > { %13920 = vmatmul.mubr.f32.gmra.mxu1 %v17821_v21 }
 0x110   : > { %13922 = vmatprep.mubr.f32.mxu1 %v17822_v22 }
 0x111   : > { %13859 = vmatmul.mubr.f32.gmra.mxu0 %v15866_v33  ;;  %v17827_v33 = vand.u32 4294901760, %v15924_v59 }
 0x112   : > { %13861 = vmatprep.mubr.f32.mxu0 %v15869_v29  ;;  %v17828_v29 = vand.u32 4294901760, %v15931_v51 }
 0x113   : > { %13923 = vmatmul.mubr.f32.gmra.mxu1 %v17823_v43 }
 0x114   : > { %13925 = vmatprep.mubr.f32.mxu1 %v17824_v35 }
 0x115   : > { %13862 = vmatmul.mubr.f32.gmra.mxu0 %v15894_v20  ;;  %v17829_v20 = vand.u32 4294901760, %v15955_v44 }
 0x116   : > { %13864 = vmatprep.mubr.f32.mxu0 %v15897_v46  ;;  %v17830_v46 = vld [vmem:[#allocation16_spill] sm:$0xff] }
 0x117   : > { %13926 = vmatmul.mubr.f32.gmra.mxu1 %v17825_v42 }
 0x118   : > { %13928 = vmatprep.mubr.f32.mxu1 %v17826_v34 }
 0x119   : > { %13865 = vmatmul.mubr.f32.gmra.mxu0 %v15924_v59  ;;  %v17831_v59 = vld [vmem:[#allocation17_spill] sm:$0xff] }
 0x11a   : > { %13867 = vmatprep.mubr.f32.mxu0 %v15931_v51  ;;  %v17832_v51 = vld [vmem:[#allocation18_spill] sm:$0xff] }
 0x11b   : > { %13929 = vmatmul.mubr.f32.gmra.mxu1 %v17827_v33 }
 0x11c   : > { %13931 = vmatprep.mubr.f32.mxu1 %v17828_v29 }
 0x11d   : > { %13868 = vmatmul.mubr.f32.gmra.mxu0 %v15949_v28  ;;  %v17833_v28 = vld [vmem:[#allocation19_spill] sm:$0xff] }
 0x11e   : > { %13870 = vmatprep.mubr.f32.mxu0 %v15955_v44  ;;  %v17836_v44 = vld [vmem:[#allocation22_spill] sm:$0xff] }
 0x11f   : > { %13932 = vmatmul.mubr.f32.gmra.mxu1 %v869_v5  ;;  %v17837_v5 = vld [vmem:[#allocation23_spill] sm:$0xff] }
 0x120   : > { %13934 = vmatprep.mubr.f32.mxu1 %v17829_v20 }
 0x121   : > { %13871 = vmatmul.mubr.f32.gmra.mxu0 %v15967_v50  ;;  %v17838_v50 = vld [vmem:[#allocation24_spill] sm:$0xff] }
 0x122   : > { %13873 = vmatprep.mubr.f32.mxu0 %v15976_v58  ;;  %v17839_v58 = vld [vmem:[#allocation25_spill] sm:$0xff] }
 0x123   : > { %13935 = vmatmul.mubr.f32.gmra.mxu1 %v889_v12  ;;  %v17840_v12 = vld [vmem:[#allocation26_spill] sm:$0xff] }
 0x124   : > { %13937 = vmatprep.mubr.f32.mxu1 %v899_v17  ;;  %v17834_v17 = vld [vmem:[#allocation20_spill] sm:$0xff] }
 0x125   : > { %13874 = vmatmul.mubr.f32.gmra.mxu0 %v15985_v60  ;;  %v17835_v60 = vld [vmem:[#allocation21_spill] sm:$0xff] }
 0x126   : > { %13944 = vmatprep.mubr.f32.mxu0 %v17830_v46 }
 0x127   : > { %13938 = vmatmul.mubr.f32.gmra.mxu1 %v909_v13  ;;  %v17841_v13 = vld [vmem:[#allocation27_spill] sm:$0xff] }
 0x128   : > { %14008 = vmatprep.mubr.f32.mxu1 %v17830_v46 }
 0x129   : > { %13945 = vmatmul.mubr.f32.vlgmr.msra.gmra.mxu0 %v17831_v59 }
 0x12a   : > { %13947 = vmatprep.mubr.f32.mxu0 %v17832_v51 }
 0x12b   : > { %14009 = vmatmul.mubr.f32.vlgmr.msra.gmra.mxu1 %v17831_v59 }
 0x12c   : > { %14011 = vmatprep.mubr.f32.mxu1 %v17832_v51 }
 0x12d   : > { %13948 = vmatmul.mubr.f32.gmra.mxu0 %v17833_v28 }
 0x12e   : > { %13950 = vmatprep.mubr.f32.mxu0 %v17834_v17 }
 0x12f   : > { %14012 = vmatmul.mubr.f32.gmra.mxu1 %v17833_v28 }
 0x130   : > { %14014 = vmatprep.mubr.f32.mxu1 %v17834_v17 }
 0x131   : > { %13951 = vmatmul.mubr.f32.gmra.mxu0 %v17835_v60 }
 0x132   : > { %13953 = vmatprep.mubr.f32.mxu0 %v17836_v44 }
 0x133   : > { %14015 = vmatmul.mubr.f32.gmra.mxu1 %v17835_v60 }
 0x134   : > { %14017 = vmatprep.mubr.f32.mxu1 %v17836_v44 }
 0x135   : > { %13954 = vmatmul.mubr.f32.gmra.mxu0 %v17837_v5 }
 0x136   : > { %13956 = vmatprep.mubr.f32.mxu0 %v17838_v50 }
 0x137   : > { %14018 = vmatmul.mubr.f32.gmra.mxu1 %v17837_v5 }
 0x138   : > { %14020 = vmatprep.mubr.f32.mxu1 %v17838_v50 }
 0x139   : > { %13957 = vmatmul.mubr.f32.gmra.mxu0 %v17839_v58 }
 0x13a   : > { %13959 = vmatprep.mubr.f32.mxu0 %v17840_v12 }
 0x13b   : > { %14021 = vmatmul.mubr.f32.gmra.mxu1 %v17839_v58 }
 0x13c   : > { %14023 = vmatprep.mubr.f32.mxu1 %v17840_v12 }
 0x13d   : > { %13960 = vmatmul.mubr.f32.gmra.mxu0 %v17841_v13 }
 0x13e   : > { %13962 = vmatprep.mubr.f32.mxu0 %v17842_v15 }
 0x13f   : > { %14024 = vmatmul.mubr.f32.gmra.mxu1 %v17841_v13 }
 0x140   : > { %14026 = vmatprep.mubr.f32.mxu1 %v17842_v15 }
 0x141   : > { %13963 = vmatmul.mubr.f32.gmra.mxu0 %v17843_v52 }
 0x142   : > { %13965 = vmatprep.mubr.f32.mxu0 %v17844_v53 }
 0x143   : > { %14027 = vmatmul.mubr.f32.gmra.mxu1 %v17843_v52 }
 0x144   : > { %14029 = vmatprep.mubr.f32.mxu1 %v17844_v53 }
 0x145   : > { %13966 = vmatmul.mubr.f32.gmra.mxu0 %v17845_v9 }
 0x146   : > { %13968 = vmatprep.mubr.f32.mxu0 %v17846_v11 }
 0x147   : > { %14030 = vmatmul.mubr.f32.gmra.mxu1 %v17845_v9 }
 0x148   : > { %14032 = vmatprep.mubr.f32.mxu1 %v17846_v11  ;;  %v13690_v41 = vpop.f32.mrf.mxu0 }
 0x149   : > { %13969 = vmatmul.mubr.f32.gmra.mxu0 %v17847_v2  ;;  %v13754_v39 = vpop.f32.mrf.mxu1 }
 0x14a   : > { %13971 = vmatprep.mubr.f32.mxu0 %v17848_v45  ;;  %v523_v56 = vpop.f32.mrf.mxu0  ;;  %v16173_v40 = vadd.f32 %v13754_v39, %v13690_v41 }
 0x14b   : > { %14033 = vmatmul.mubr.f32.gmra.mxu1 %v17847_v2  ;;  %v994_v10 = vpop.f32.mrf.mxu1 }
 0x14c   : > { %14035 = vmatprep.mubr.f32.mxu1 %v17848_v45  ;;  %v13693_v54 = vpop.f32.mrf.mxu0  ;;  %v16177_v19 = vadd.f32 %v994_v10, %v523_v56 }
 0x14d   : > { %13972 = vmatmul.mubr.f32.gmra.mxu0 %v17849_v16 }
 0x14e   : > { %13974 = vmatprep.mubr.f32.mxu0 %v17850_v23  ;;  %v543_v24 = vpop.f32.mrf.mxu0  ;;  %v13757_v3 = vpop.f32.mrf.mxu1 }
 0x14f   : > { %14036 = vmatmul.mubr.f32.gmra.mxu1 %v17849_v16  ;;  %v16181_v25 = vadd.f32 %v13757_v3, %v13693_v54 }
 0x150   : > { %14038 = vmatprep.mubr.f32.mxu1 %v17850_v23  ;;  %v13696_v26 = vpop.f32.mrf.mxu0  ;;  %v1006_v4 = vpop.f32.mrf.mxu1 }
 0x151   : > { %13975 = vmatmul.mubr.f32.gmra.mxu0 %v15746_v30  ;;  %v16185_v36 = vadd.f32 %v1006_v4, %v543_v24 }
 0x152   : > { %13977 = vmatprep.mubr.f32.mxu0 %v15752_v32  ;;  %v563_v37 = vpop.f32.mrf.mxu0 }
 0x153   : > { %v13760_v38 = vpop.f32.mrf.mxu1  ;;  %14039 = vmatmul.mubr.f32.gmra.mxu1 %v15746_v30 }
 0x154   : > { %v16189_v21 = vadd.f32 %v13760_v38, %v13696_v26  ;;  %14041 = vmatprep.mubr.f32.mxu1 %v15752_v32  ;;  %v13699_v22 = vpop.f32.mrf.mxu0 }
 0x155   : > { %v1018_v43 = vpop.f32.mrf.mxu1  ;;  %13978 = vmatmul.mubr.f32.gmra.mxu0 %v15770_v62 }
 0x156   : > { %v16193_v35 = vadd.f32 %v1018_v43, %v563_v37  ;;  %13980 = vmatprep.mubr.f32.mxu0 %v15785_v48  ;;  %v583_v42 = vpop.f32.mrf.mxu0 }
 0x157   : > { %v13763_v34 = vpop.f32.mrf.mxu1  ;;  %14042 = vmatmul.mubr.f32.gmra.mxu1 %v15770_v62 }
 0x158   : > { %v16197_v33 = vadd.f32 %v13763_v34, %v13699_v22  ;;  %14044 = vmatprep.mubr.f32.mxu1 %v15785_v48  ;;  %v13702_v30 = vpop.f32.mrf.mxu0 }
 0x159   : > { %v1030_v29 = vpop.f32.mrf.mxu1  ;;  %13981 = vmatmul.mubr.f32.gmra.mxu0 %v15798_v18 }
 0x15a   : > { %v16201_v32 = vadd.f32 %v1030_v29, %v583_v42  ;;  %13983 = vmatprep.mubr.f32.mxu0 %v15816_v49  ;;  %v16204_v20 = vpop.f32.mrf.mxu0 }
 0x15b   : > { %v13766_v46 = vpop.f32.mrf.mxu1  ;;  %14045 = vmatmul.mubr.f32.gmra.mxu1 %v15798_v18 }
 0x15c   : > { %v16207_v59 = vadd.f32 %v13766_v46, %v13702_v30  ;;  %14047 = vmatprep.mubr.f32.mxu1 %v15816_v49  ;;  %v13705_v62 = vpop.f32.mrf.mxu0 }
 0x15d   : > { %v16210_v51 = vpop.f32.mrf.mxu1  ;;  %13984 = vmatmul.mubr.f32.gmra.mxu0 %v15818_v61 }
 0x15e   : > { %13986 = vmatprep.mubr.f32.mxu0 %v15826_v27  ;;  %v16214_v48 = vpop.f32.mrf.mxu0 }
 0x15f   : > { %v13769_v28 = vpop.f32.mrf.mxu1  ;;  %14048 = vmatmul.mubr.f32.gmra.mxu1 %v15818_v61 }
 0x160   : > { %v16217_v17 = vadd.f32 %v13769_v28, %v13705_v62  ;;  %14050 = vmatprep.mubr.f32.mxu1 %v15826_v27  ;;  %v13708_v18 = vpop.f32.mrf.mxu0 }
 0x161   : > { %v16220_v60 = vpop.f32.mrf.mxu1  ;;  %13987 = vmatmul.mubr.f32.gmra.mxu0 %v15840_v47 }
 0x162   : > { %13989 = vmatprep.mubr.f32.mxu0 %v15855_v31  ;;  %v16224_v49 = vpop.f32.mrf.mxu0 }
 0x163   : > { %v13772_v44 = vpop.f32.mrf.mxu1  ;;  %14051 = vmatmul.mubr.f32.gmra.mxu1 %v15840_v47  ;;  %v303_v47 = vld [vmem:[#allocation8] sm:$0xff] }
 0x164   : > { %v16227_v5 = vadd.f32 %v13772_v44, %v13708_v18  ;;  %14053 = vmatprep.mubr.f32.mxu1 %v15855_v31  ;;  %v13711_v61 = vpop.f32.mrf.mxu0  ;;  %v2587_v31 = vsel %vm329_vm0, %v303_v47, 0 }
 0x165   : > { %v16230_v50 = vpop.f32.mrf.mxu1  ;;  %13990 = vmatmul.mubr.f32.gmra.mxu0 %v15871_v55  ;;  %v16245_v52 = vand.u32 4294901760, %v2587_v31 }
 0x166   : > { %13992 = vmatprep.mubr.f32.mxu0 %v15873_v8  ;;  %v16234_v27 = vpop.f32.mrf.mxu0 }
 0x167   : > { %v13775_v58 = vpop.f32.mrf.mxu1  ;;  %14054 = vmatmul.mubr.f32.gmra.mxu1 %v15871_v55 }
 0x168   : > { %v16237_v12 = vadd.f32 %v13775_v58, %v13711_v61  ;;  %14056 = vmatprep.mubr.f32.mxu1 %v15873_v8  ;;  %v13714_v13 = vpop.f32.mrf.mxu0  ;;  %v16254_v8 = vsub.f32 %v2587_v31, %v16245_v52 }
 0x169   : > { %v16240_v15 = vpop.f32.mrf.mxu1  ;;  %13993 = vmatmul.mubr.f32.gmra.mxu0 %v15899_v7 }
 0x16a   : > { %13995 = vmatprep.mubr.f32.mxu0 %v15907_v6  ;;  %v16247_v53 = vpop.f32.mrf.mxu0  ;;  %v16261_v2 = vand.u32 4294901760, %v16254_v8 }
 0x16b   : > { %17851 = vst [vmem:[#allocation30_spill] sm:$0xff] %v16247_v53  ;;  %v13778_v9 = vpop.f32.mrf.mxu1  ;;  %14057 = vmatmul.mubr.f32.gmra.mxu1 %v15899_v7 }
 0x16c   : > { %v16250_v55 = vadd.f32 %v13778_v9, %v13714_v13  ;;  %14059 = vmatprep.mubr.f32.mxu1 %v15907_v6  ;;  %v13717_v11 = vpop.f32.mrf.mxu0  ;;  %v2662_v6 = vsub.f32 %v16254_v8, %v16261_v2 }
 0x16d   : > { %v16256_v41 = vpop.f32.mrf.mxu1  ;;  %13996 = vmatmul.mubr.f32.gmra.mxu0 %v15926_v14 }
 0x16e   : > { %17852 = vst [vmem:[#allocation32_spill] sm:$0xff] %v16256_v41  ;;  %13998 = vmatprep.mubr.f32.mxu0 %v15933_v0  ;;  %v16263_v45 = vpop.f32.mrf.mxu0  ;;  %v16275_v10 = vand.u32 4294901760, %v2662_v6 }
 0x16f   : > { %17853 = vst [vmem:[#allocation35_spill] sm:$0xff] %v16263_v45  ;;  %v13781_v7 = vpop.f32.mrf.mxu1  ;;  %14060 = vmatmul.mubr.f32.gmra.mxu1 %v15926_v14 }
 0x170   : > { %v16266_v56 = vadd.f32 %v13781_v7, %v13717_v11  ;;  %14062 = vmatprep.mubr.f32.mxu1 %v15933_v0  ;;  %v13720_v39 = vpop.f32.mrf.mxu0 }
 0x171   : > { %v16271_v54 = vpop.f32.mrf.mxu1  ;;  %13999 = vmatmul.mubr.f32.gmra.mxu0 %v15951_v63 }
 0x172   : > { %17854 = vst [vmem:[#allocation36_spill] sm:$0xff] %v16271_v54  ;;  %14001 = vmatprep.mubr.f32.mxu0 %v15957_v1  ;;  %v16277_v16 = vpop.f32.mrf.mxu0 }
 0x173   : > { %17855 = vst [vmem:[#allocation38_spill] sm:$0xff] %v16277_v16  ;;  %v13784_v23 = vpop.f32.mrf.mxu1  ;;  %14063 = vmatmul.mubr.f32.gmra.mxu1 %v15951_v63 }
 0x174   : > { %v16280_v14 = vadd.f32 %v13784_v23, %v13720_v39  ;;  %14065 = vmatprep.mubr.f32.mxu1 %v15957_v1  ;;  %v13723_v0 = vpop.f32.mrf.mxu0 }
 0x175   : > { %v16283_v24 = vpop.f32.mrf.mxu1  ;;  %14002 = vmatmul.mubr.f32.gmra.mxu0 %v15969_v57 }
 0x176   : > { %17856 = vst [vmem:[#allocation41_spill] sm:$0xff] %v16283_v24  ;;  %14072 = vmatprep.mubr.f32.mxu0 %v16275_v10  ;;  %v16287_v3 = vpop.f32.mrf.mxu0 }
 0x177   : > { %17857 = vst [vmem:[#allocation43_spill] sm:$0xff] %v16287_v3  ;;  %v13787_v26 = vpop.f32.mrf.mxu1  ;;  %14066 = vmatmul.mubr.f32.gmra.mxu1 %v15969_v57 }
 0x178   : > { %v16290_v4 = vadd.f32 %v13787_v26, %v13723_v0  ;;  %14079 = vmatprep.mubr.f32.mxu1 %v16245_v52  ;;  %v13726_v63 = vpop.f32.mrf.mxu0 }
 0x179   : > { %v16293_v37 = vpop.f32.mrf.mxu1 }
 0x17a   : > { %17858 = vst [vmem:[#allocation44_spill] sm:$0xff] %v16293_v37  ;;  %v16295_v1 = vpop.f32.mrf.mxu0 }
 0x17b   : > { %17859 = vst [vmem:[#allocation45_spill] sm:$0xff] %v16295_v1  ;;  %v13790_v38 = vpop.f32.mrf.mxu1 }
 0x17c   : > { %v16297_v22 = vadd.f32 %v13790_v38, %v13726_v63  ;;  %v13729_v43 = vpop.f32.mrf.mxu0 }
 0x17d   : > { %v16299_v42 = vpop.f32.mrf.mxu1 }
 0x17e   : > { %17860 = vst [vmem:[#allocation46_spill] sm:$0xff] %v16299_v42  ;;  %v16301_v34 = vpop.f32.mrf.mxu0 }
 0x17f   : > { %17861 = vst [vmem:[#allocation47_spill] sm:$0xff] %v16301_v34  ;;  %v13793_v30 = vpop.f32.mrf.mxu1 }
 0x180   : > { %v16303_v29 = vadd.f32 %v13793_v30, %v13729_v43  ;;  %v13732_v57 = vpop.f32.mrf.mxu0 }
 0x181   : > { %v16305_v46 = vpop.f32.mrf.mxu1 }
 0x182   : > { %17862 = vst [vmem:[#allocation48_spill] sm:$0xff] %v16305_v46  ;;  %v16307_v62 = vpop.f32.mrf.mxu0 }
 0x183   : > { %17863 = vst [vmem:[#allocation16_spill] sm:$0xff] %v16307_v62  ;;  %v13796_v28 = vpop.f32.mrf.mxu1 }
 0x184   : > { %v16309_v18 = vadd.f32 %v13796_v28, %v13732_v57  ;;  %v13735_v44 = vpop.f32.mrf.mxu0 }
 0x185   : > { %v16311_v61 = vpop.f32.mrf.mxu1 }
 0x186   : > { %17864 = vst [vmem:[#allocation17_spill] sm:$0xff] %v16311_v61  ;;  %v16313_v58 = vpop.f32.mrf.mxu0 }
 0x187   : > { %17865 = vst [vmem:[#allocation18_spill] sm:$0xff] %v16313_v58  ;;  %v13799_v47 = vpop.f32.mrf.mxu1 }
 0x188   : > { %v16315_v13 = vadd.f32 %v13799_v47, %v13735_v44  ;;  %v13738_v31 = vpop.f32.mrf.mxu0 }
 0x189   : > { %v16317_v9 = vpop.f32.mrf.mxu1 }
 0x18a   : > { %17866 = vst [vmem:[#allocation19_spill] sm:$0xff] %v16317_v9  ;;  %v16319_v11 = vpop.f32.mrf.mxu0 }
 0x18b   : > { %17867 = vst [vmem:[#allocation20_spill] sm:$0xff] %v16319_v11  ;;  %v13802_v7 = vpop.f32.mrf.mxu1 }
 0x18c   : > { %v16321_v6 = vadd.f32 %v13802_v7, %v13738_v31  ;;  %v13741_v39 = vpop.f32.mrf.mxu0 }
 0x18d   : > { %v16323_v23 = vpop.f32.mrf.mxu1 }
 0x18e   : > { %17868 = vst [vmem:[#allocation21_spill] sm:$0xff] %v16323_v23  ;;  %v16325_v0 = vpop.f32.mrf.mxu0 }
 0x18f   : > { %17869 = vst [vmem:[#allocation22_spill] sm:$0xff] %v16325_v0  ;;  %v13805_v26 = vpop.f32.mrf.mxu1 }
 0x190   : > { %v16327_v63 = vadd.f32 %v13805_v26, %v13741_v39  ;;  %v13744_v38 = vpop.f32.mrf.mxu0 }
 0x191   : > { %v16329_v43 = vpop.f32.mrf.mxu1 }
 0x192   : > { %17870 = vst [vmem:[#allocation23_spill] sm:$0xff] %v16329_v43  ;;  %v16331_v30 = vpop.f32.mrf.mxu0 }
 0x193   : > { %17871 = vst [vmem:[#allocation24_spill] sm:$0xff] %v16331_v30  ;;  %v13808_v57 = vpop.f32.mrf.mxu1 }
 0x194   : > { %v16333_v28 = vadd.f32 %v13808_v57, %v13744_v38  ;;  %v13747_v44 = vpop.f32.mrf.mxu0 }
 0x195   : > { %v16335_v47 = vpop.f32.mrf.mxu1 }
 0x196   : > { %17872 = vst [vmem:[#allocation25_spill] sm:$0xff] %v16335_v47  ;;  %v16337_v31 = vpop.f32.mrf.mxu0 }
 0x197   : > { %17873 = vst [vmem:[#allocation26_spill] sm:$0xff] %v16337_v31  ;;  %v13811_v7 = vpop.f32.mrf.mxu1 }
 0x198   : > { %v16339_v23 = vadd.f32 %v13811_v7, %v13747_v44  ;;  %v13818_v39 = vpop.f32.mrf.mxu0 }
 0x199   : > { %v16341_v0 = vpop.f32.mrf.mxu1  ;;  %v1312_v26 = vadd.f32 %v13818_v39, %v16173_v40 }
 0x19a   : > { %17874 = vst [vmem:[#allocation27_spill] sm:$0xff] %v16341_v0  ;;  %v16344_v11 = vpop.f32.mrf.mxu0 }
 0x19b   : > { %v13882_v43 = vpop.f32.mrf.mxu1 }
 0x19c   : > { %v16346_v30 = vadd.f32 %v13882_v43, %v1312_v26  ;;  %v13821_v38 = vpop.f32.mrf.mxu0 }
 0x19d   : > { %v16348_v57 = vpop.f32.mrf.mxu1  ;;  %v1326_v47 = vadd.f32 %v13821_v38, %v16181_v25 }
 0x19e   : > { %v16351_v9 = vpop.f32.mrf.mxu0 }
 0x19f   : > { %v13885_v31 = vpop.f32.mrf.mxu1 }
 0x1a0   : > { %v16353_v44 = vadd.f32 %v13885_v31, %v1326_v47 }
 0x1a1   : > { %v13824_v7 = vpop.f32.mrf.mxu0  ;;  %v16355_v0 = vpop.f32.mrf.mxu1 }
 0x1a2   : > { %v1340_v40 = vadd.f32 %v13824_v7, %v16189_v21 }
 0x1a3   : > { %v16358_v39 = vpop.f32.mrf.mxu0  ;;  %v13888_v58 = vpop.f32.mrf.mxu1 }
 0x1a4   : > { %v16360_v43 = vadd.f32 %v13888_v58, %v1340_v40 }
 0x1a5   : > { %v13827_v26 = vpop.f32.mrf.mxu0  ;;  %v16362_v61 = vpop.f32.mrf.mxu1 }
 0x1a6   : > { %v1354_v25 = vadd.f32 %v13827_v26, %v16197_v33 }
 0x1a7   : > { %v16365_v38 = vpop.f32.mrf.mxu0  ;;  %v13891_v62 = vpop.f32.mrf.mxu1 }
 0x1a8   : > { %v16367_v47 = vadd.f32 %v13891_v62, %v1354_v25 }
 0x1a9   : > { %v13830_v31 = vpop.f32.mrf.mxu0  ;;  %v16369_v46 = vpop.f32.mrf.mxu1 }
 0x1aa   : > { %v1368_v21 = vadd.f32 %v13830_v31, %v16207_v59 }
 0x1ab   : > { %v16372_v7 = vpop.f32.mrf.mxu0  ;;  %v13894_v34 = vpop.f32.mrf.mxu1 }
 0x1ac   : > { %v16374_v58 = vadd.f32 %v13894_v34, %v1368_v21 }
 0x1ad   : > { %v13833_v40 = vpop.f32.mrf.mxu0  ;;  %v16376_v42 = vpop.f32.mrf.mxu1 }
 0x1ae   : > { %v1382_v33 = vadd.f32 %v13833_v40, %v16217_v17 }
 0x1af   : > { %v16379_v26 = vpop.f32.mrf.mxu0  ;;  %v13897_v1 = vpop.f32.mrf.mxu1 }
 0x1b0   : > { %v16381_v62 = vadd.f32 %v13897_v1, %v1382_v33 }
 0x1b1   : > { %v13836_v25 = vpop.f32.mrf.mxu0  ;;  %v16383_v37 = vpop.f32.mrf.mxu1 }
 0x1b2   : > { %v1396_v59 = vadd.f32 %v13836_v25, %v16227_v5 }
 0x1b3   : > { %v16386_v31 = vpop.f32.mrf.mxu0  ;;  %v13900_v3 = vpop.f32.mrf.mxu1 }
 0x1b4   : > { %v16388_v34 = vadd.f32 %v13900_v3, %v1396_v59 }
 0x1b5   : > { %v13839_v21 = vpop.f32.mrf.mxu0  ;;  %v16390_v24 = vpop.f32.mrf.mxu1 }
 0x1b6   : > { %v1410_v17 = vadd.f32 %v13839_v21, %v16237_v12 }
 0x1b7   : > { %v16393_v40 = vpop.f32.mrf.mxu0  ;;  %v13903_v16 = vpop.f32.mrf.mxu1 }
 0x1b8   : > { %v16395_v1 = vadd.f32 %v13903_v16, %v1410_v17 }
 0x1b9   : > { %v13842_v33 = vpop.f32.mrf.mxu0  ;;  %v16397_v54 = vpop.f32.mrf.mxu1 }
 0x1ba   : > { %17875 = vst [vmem:[#allocation28_spill] sm:$0xff] %v16395_v1  ;;  %v1424_v5 = vadd.f32 %v13842_v33, %v16250_v55 }
 0x1bb   : > { %v16400_v25 = vpop.f32.mrf.mxu0  ;;  %v13906_v45 = vpop.f32.mrf.mxu1 }
 0x1bc   : > { %17876 = vst [vmem:[#allocation29_spill] sm:$0xff] %v16400_v25  ;;  %v16402_v3 = vadd.f32 %v13906_v45, %v1424_v5 }
 0x1bd   : > { %v13845_v59 = vpop.f32.mrf.mxu0  ;;  %v16404_v41 = vpop.f32.mrf.mxu1 }
 0x1be   : > { %17877 = vst [vmem:[#allocation31_spill] sm:$0xff] %v16402_v3  ;;  %v1438_v12 = vadd.f32 %v13845_v59, %v16266_v56 }
 0x1bf   : > { %v16407_v21 = vpop.f32.mrf.mxu0  ;;  %v13909_v53 = vpop.f32.mrf.mxu1 }
 0x1c0   : > { %17878 = vst [vmem:[#allocation33_spill] sm:$0xff] %v16407_v21  ;;  %v16409_v16 = vadd.f32 %v13909_v53, %v1438_v12 }
 0x1c1   : > { %v13848_v17 = vpop.f32.mrf.mxu0  ;;  %v16411_v1 = vpop.f32.mrf.mxu1 }
 0x1c2   : > { %17879 = vst [vmem:[#allocation34_spill] sm:$0xff] %v16409_v16  ;;  %v1452_v55 = vadd.f32 %v13848_v17, %v16280_v14 }
 0x1c3   : > { %v16414_v33 = vpop.f32.mrf.mxu0  ;;  %v13912_v25 = vpop.f32.mrf.mxu1 }
 0x1c4   : > { %17880 = vst [vmem:[#allocation37_spill] sm:$0xff] %v16414_v33  ;;  %v16416_v45 = vadd.f32 %v13912_v25, %v1452_v55 }
 0x1c5   : > { %v13851_v5 = vpop.f32.mrf.mxu0  ;;  %v16418_v3 = vpop.f32.mrf.mxu1 }
 0x1c6   : > { %17881 = vst [vmem:[#allocation39_spill] sm:$0xff] %v16416_v45  ;;  %v1466_v56 = vadd.f32 %v13851_v5, %v16290_v4 }
 0x1c7   : > { %v16421_v59 = vpop.f32.mrf.mxu0  ;;  %v13915_v21 = vpop.f32.mrf.mxu1 }
 0x1c8   : > { %17882 = vst [vmem:[#allocation40_spill] sm:$0xff] %v16421_v59  ;;  %v16423_v53 = vadd.f32 %v13915_v21, %v1466_v56 }
 0x1c9   : > { %v13854_v12 = vpop.f32.mrf.mxu0  ;;  %v16425_v16 = vpop.f32.mrf.mxu1 }
 0x1ca   : > { %17883 = vst [vmem:[#allocation42_spill] sm:$0xff] %v16423_v53  ;;  %v1480_v14 = vadd.f32 %v13854_v12, %v16297_v22 }
 0x1cb   : > { %v16428_v17 = vpop.f32.mrf.mxu0  ;;  %v13918_v33 = vpop.f32.mrf.mxu1 }
 0x1cc   : > { %17884 = vst [vmem:[#allocation49_spill] sm:$0xff] %v16428_v17  ;;  %v16430_v25 = vadd.f32 %v13918_v33, %v1480_v14 }
 0x1cd   : > { %v13857_v55 = vpop.f32.mrf.mxu0  ;;  %v16432_v45 = vpop.f32.mrf.mxu1 }
 0x1ce   : > { %17885 = vst [vmem:[#allocation50_spill] sm:$0xff] %v16430_v25  ;;  %v1494_v4 = vadd.f32 %v13857_v55, %v16303_v29 }
 0x1cf   : > { %v16435_v5 = vpop.f32.mrf.mxu0  ;;  %v13921_v59 = vpop.f32.mrf.mxu1 }
 0x1d0   : > { %17886 = vst [vmem:[#allocation51_spill] sm:$0xff] %v16435_v5  ;;  %v16437_v21 = vadd.f32 %v13921_v59, %v1494_v4 }
 0x1d1   : > { %v13860_v56 = vpop.f32.mrf.mxu0  ;;  %v16439_v53 = vpop.f32.mrf.mxu1 }
 0x1d2   : > { %17887 = vst [vmem:[#allocation52_spill] sm:$0xff] %v16437_v21  ;;  %v1508_v22 = vadd.f32 %v13860_v56, %v16309_v18  ;;  %v304_v56 = vld [vmem:[#allocation8 + $0x8] sm:$0xff] }
 0x1d3   : > { %v16442_v12 = vpop.f32.mrf.mxu0  ;;  %v13924_v17 = vpop.f32.mrf.mxu1 }
 0x1d4   : > { %17888 = vst [vmem:[#allocation53_spill] sm:$0xff] %v16442_v12  ;;  %v16444_v33 = vadd.f32 %v13924_v17, %v1508_v22 }
 0x1d5   : > { %v13863_v14 = vpop.f32.mrf.mxu0  ;;  %v16446_v25 = vpop.f32.mrf.mxu1 }
 0x1d6   : > { %17889 = vst [vmem:[#allocation54_spill] sm:$0xff] %v16444_v33  ;;  %17890 = vst [vmem:[#allocation55_spill] sm:$0xff] %v16446_v25  ;;  %v1522_v29 = vadd.f32 %v13863_v14, %v16315_v13  ;;  %v2590_v13 = vsel %vm329_vm0, %v304_v56, 0 }
 0x1d7   : > { %v16449_v55 = vpop.f32.mrf.mxu0  ;;  %v13927_v5 = vpop.f32.mrf.mxu1 }
 0x1d8   : > { %v16451_v59 = vadd.f32 %v13927_v5, %v1522_v29 }
 0x1d9   : > { %v13866_v4 = vpop.f32.mrf.mxu0  ;;  %v16453_v21 = vpop.f32.mrf.mxu1 }
 0x1da   : > { %17891 = vst [vmem:[#allocation56_spill] sm:$0xff] %v16451_v59  ;;  %17892 = vst [vmem:[#allocation57_spill] sm:$0xff] %v16453_v21  ;;  %v1536_v18 = vadd.f32 %v13866_v4, %v16321_v6  ;;  %v16468_v21 = vand.u32 4294901760, %v2590_v13 }
 0x1db   : > { %v16456_v12 = vpop.f32.mrf.mxu0  ;;  %v13930_v17 = vpop.f32.mrf.mxu1 }
 0x1dc   : > { %v16458_v22 = vadd.f32 %v13930_v17, %v1536_v18  ;;  %v16478_v56 = vsub.f32 %v2590_v13, %v16468_v21 }
 0x1dd   : > { %v13869_v33 = vpop.f32.mrf.mxu0  ;;  %v16460_v25 = vpop.f32.mrf.mxu1 }
 0x1de   : > { %17893 = vst [vmem:[#allocation58_spill] sm:$0xff] %v16458_v22  ;;  %17894 = vst [vmem:[#allocation59_spill] sm:$0xff] %v16460_v25  ;;  %v1550_v14 = vadd.f32 %v13869_v33, %v16327_v63 }
 0x1df   : > { %v16464_v5 = vpop.f32.mrf.mxu0  ;;  %v13933_v29 = vpop.f32.mrf.mxu1 }
 0x1e0   : > { %v16466_v59 = vadd.f32 %v13933_v29, %v1550_v14  ;;  %v1305_v14 = vadd.f32 %v16344_v11, %v16177_v19  ;;  %v1319_v19 = vadd.f32 %v16351_v9, %v16185_v36 }
 0x1e1   : > { %v13872_v6 = vpop.f32.mrf.mxu0  ;;  %v16470_v4 = vpop.f32.mrf.mxu1 }
 0x1e2   : > { %17895 = vst [vmem:[#allocation60_spill] sm:$0xff] %v16466_v59  ;;  %17896 = vst [vmem:[#allocation61_spill] sm:$0xff] %v16470_v4  ;;  %v1564_v18 = vadd.f32 %v13872_v6, %v16333_v28  ;;  %v16490_v6 = vand.u32 4294901760, %v16478_v56 }
 0x1e3   : > { %v16473_v17 = vpop.f32.mrf.mxu0  ;;  %v13936_v22 = vpop.f32.mrf.mxu1 }
 0x1e4   : > { %17897 = vst [vmem:[#allocation62_spill] sm:$0xff] %v16473_v17  ;;  %v16475_v25 = vadd.f32 %v13936_v22, %v1564_v18  ;;  %v1653_v18 = vadd.f32 %v16348_v57, %v1305_v14  ;;  %v1669_v17 = vadd.f32 %v16355_v0, %v1319_v19 }
 0x1e5   : > { %v13875_v63 = vpop.f32.mrf.mxu0  ;;  %v16480_v33 = vpop.f32.mrf.mxu1 }
 0x1e6   : > { %17898 = vst [vmem:[#allocation63_spill] sm:$0xff] %v16475_v25  ;;  %17899 = vst [vmem:[#allocation64_spill] sm:$0xff] %v16480_v33  ;;  %v1578_v29 = vadd.f32 %v13875_v63, %v16339_v23 }
 0x1e7   : > { %v16485_v59 = vpop.f32.mrf.mxu0  ;;  %v13939_v4 = vpop.f32.mrf.mxu1 }
 0x1e8   : > { %17900 = vst [vmem:[#allocation65_spill] sm:$0xff] %v16485_v59  ;;  %v16487_v28 = vadd.f32 %v13939_v4, %v1578_v29  ;;  %v2672_v4 = vsub.f32 %v16478_v56, %v16490_v6 }
 0x1e9   : > { %v16492_v22 = vpop.f32.mrf.mxu1  ;;  %v13946_v13 = vpop.f32.mrf.mxu0 }
 0x1ea   : > { %17901 = vst [vmem:[#allocation66_spill] sm:$0xff] %v16487_v28  ;;  %17902 = vst [vmem:[#allocation67_spill] sm:$0xff] %v16492_v22  ;;  %v2048_v25 = vadd.f32 %v13946_v13, %v16346_v30 }
 0x1eb   : > { %v2041_v11 = vpop.f32.mrf.mxu0  ;;  %v14010_v23 = vpop.f32.mrf.mxu1 }
 0x1ec   : > { %v2042_v63 = vadd.f32 %v2041_v11, %v1653_v18  ;;  %v2355_v59 = vadd.f32 %v14010_v23, %v2048_v25  ;;  %v16508_v25 = vand.u32 4294901760, %v2672_v4 }
 0x1ed   : > { %v13949_v29 = vpop.f32.mrf.mxu0  ;;  %v2348_v28 = vpop.f32.mrf.mxu1 }
 0x1ee   : > { %v16500_v33 = vand.u32 4294901760, %v2355_v59  ;;  %v2349_v22 = vadd.f32 %v2348_v28, %v2042_v63  ;;  %v2060_v57 = vadd.f32 %v13949_v29, %v16353_v44 }
 0x1ef   : > { %v2053_v30 = vpop.f32.mrf.mxu0  ;;  %v14013_v14 = vpop.f32.mrf.mxu1 }
 0x1f0   : > { %v2709_v36 = vsub.f32 %v2355_v59, %v16500_v33  ;;  %v16505_v9 = vand.u32 4294901760, %v2349_v22  ;;  %14068 = vmatprep.subr.mxu0 %v16500_v33  ;;  %v2054_v13 = vadd.f32 %v2053_v30, %v1669_v17  ;;  %v2367_v0 = vadd.f32 %v14013_v14, %v2060_v57 }
 0x1f1   : > { %14069 = vmatpush3.msra.mxu0 %v16500_v33  ;;  %v2360_v28 = vpop.f32.mrf.mxu1  ;;  %v13952_v57 = vpop.f32.mrf.mxu0  ;;  %v1333_v30 = vadd.f32 %v16358_v39, %v16193_v35 }
 0x1f2   : > { %v2716_v18 = vsub.f32 %v2349_v22, %v16505_v9  ;;  %14070 = vmatprep.subr.mxu0 %v16505_v9  ;;  %v2710_v44 = vand.u32 4294901760, %v2709_v36  ;;  %v2361_v59 = vadd.f32 %v2360_v28, %v2054_v13  ;;  %v16516_v11 = vand.u32 4294901760, %v2367_v0 }
 0x1f3   : > { %14071 = vmatpush3.msra.mxu0 %v16505_v9  ;;  %v2065_v13 = vpop.f32.mrf.mxu0  ;;  %v1685_v35 = vadd.f32 %v16362_v61, %v1333_v30  ;;  %v2072_v39 = vadd.f32 %v13952_v57, %v16360_v43 }
 0x1f4   : > { %14082 = vmatprep.subr.mxu0 %v2709_v36  ;;  %14073 = vmatmul.mubr.f32.vlgmr.msra.gmra.mxu0 %v16508_v25  ;;  %v2711_v19 = vsub.f32 %v2709_v36, %v2710_v44  ;;  %v2717_v17 = vand.u32 4294901760, %v2716_v18  ;;  %v16519_v63 = vand.u32 4294901760, %v2361_v59  ;;  %v3211_v29 = vsub.f32 %v2367_v0, %v16516_v11 }
 0x1f5   : > { %14083 = vmatpush3.msra.mxu0 %v2709_v36  ;;  %14086 = vmatprep.mubr.f32.mxu0 %v16254_v8  ;;  %v2066_v0 = vadd.f32 %v2065_v13, %v1685_v35 }
 0x1f6   : > { %14084 = vmatprep.subr.mxu0 %v2716_v18  ;;  %v2712_v22 = vand.u32 4294901760, %v2711_v19  ;;  %v2718_v23 = vsub.f32 %v2716_v18, %v2717_v17  ;;  %v3218_v14 = vsub.f32 %v2361_v59, %v16519_v63  ;;  %v3212_v36 = vand.u32 4294901760, %v3211_v29 }
 0x1f7   : > { %14085 = vmatpush3.msra.mxu0 %v2716_v18  ;;  %v14016_v18 = vpop.f32.mrf.mxu1 }
 0x1f8   : > { %14096 = vmatprep.subr.mxu0 %v2710_v44  ;;  %14087 = vmatmul.mubr.f32.vlgmr.msra.gmra.mxu0 %v16478_v56  ;;  %v2719_v4 = vand.u32 4294901760, %v2718_v23  ;;  %v3219_v28 = vand.u32 4294901760, %v3218_v14  ;;  %v2379_v61 = vadd.f32 %v14016_v18, %v2072_v39 }
 0x1f9   : > { %14075 = vmatprep.subr.mxu1 %v2712_v22  ;;  %14097 = vmatpush3.msra.mxu0 %v2710_v44  ;;  %v3213_v44 = vsub.f32 %v3211_v29, %v3212_v36  ;;  %v2372_v59 = vpop.f32.mrf.mxu1 }
 0x1fa   : > { %14076 = vmatpush3.msra.mxu1 %v2712_v22  ;;  %14098 = vmatprep.subr.mxu0 %v2717_v17  ;;  %v3220_v43 = vsub.f32 %v3218_v14, %v3219_v28  ;;  %v2373_v19 = vadd.f32 %v2372_v59, %v2066_v0  ;;  %v16548_v22 = vand.u32 4294901760, %v2379_v61 }
 0x1fb   : > { %14077 = vmatprep.subr.mxu1 %v2719_v4  ;;  %14099 = vmatpush3.msra.mxu0 %v2717_v17  ;;  %v3214_v17 = vand.u32 4294901760, %v3213_v44 }
 0x1fc   : > { %14078 = vmatpush3.msra.mxu1 %v2719_v4  ;;  %14100 = vmatprep.mubr.f32.mxu0 %v16245_v52  ;;  %v16551_v23 = vand.u32 4294901760, %v2373_v19  ;;  %v13955_v4 = vpop.f32.mrf.mxu0 }
 0x1fd   : > { %14080 = vmatmul.mubr.f32.vlgmr.msra.gmra.mxu1 %v16468_v21  ;;  %14089 = vmatprep.subr.mxu1 %v16500_v33 }
 0x1fe   : > { %14110 = vmatprep.subr.mxu0 %v16516_v11  ;;  %14090 = vmatpush3.msra.mxu1 %v16500_v33  ;;  %v3720_v57 = vsub.f32 %v2373_v19, %v16551_v23 }
 0x1ff   : > { %14101 = vmatmul.mubr.f32.vlgmr.msra.gmra.mxu0 %v16468_v21  ;;  %14091 = vmatprep.subr.mxu1 %v16505_v9 }
 0x200   : > { %14111 = vmatpush3.msra.mxu0 %v16516_v11  ;;  %14092 = vmatpush3.msra.mxu1 %v16505_v9  ;;  %v3721_v13 = vand.u32 4294901760, %v3720_v57 }
 0x201   : > { %14112 = vmatprep.subr.mxu0 %v16519_v63  ;;  %14093 = vmatprep.mubr.f32.mxu1 %v16261_v2 }
 0x202   : > { %14113 = vmatpush3.msra.mxu0 %v16519_v63  ;;  %14094 = vmatmul.mubr.f32.vlgmr.msra.gmra.mxu1 %v16490_v6 }
 0x203   : > { %14103 = vmatprep.subr.mxu1 %v16500_v33  ;;  %14114 = vmatprep.mubr.f32.mxu0 %v16275_v10 }
 0x204   : > { %14124 = vmatprep.subr.mxu0 %v3211_v29  ;;  %14104 = vmatpush3.msra.mxu1 %v16500_v33  ;;  %v3221_v33 = vand.u32 4294901760, %v3220_v43 }
 0x205   : > { %14115 = vmatmul.mubr.f32.vlgmr.msra.gmra.mxu0 %v16508_v25  ;;  %14105 = vmatprep.subr.mxu1 %v16505_v9 }
 0x206   : > { %14125 = vmatpush3.msra.mxu0 %v3211_v29  ;;  %14106 = vmatpush3.msra.mxu1 %v16505_v9  ;;  %v3713_v9 = vsub.f32 %v2379_v61, %v16548_v22  ;;  %v1347_v29 = vadd.f32 %v16365_v38, %v16201_v32  ;;  %v2084_v38 = vadd.f32 %v13955_v4, %v16367_v47 }
 0x207   : > { %14126 = vmatprep.subr.mxu0 %v3218_v14  ;;  %14107 = vmatprep.mubr.f32.mxu1 %v16245_v52  ;;  %v3722_v47 = vsub.f32 %v3720_v57, %v3721_v13 }
 0x208   : > { %14127 = vmatpush3.msra.mxu0 %v3218_v14  ;;  %14108 = vmatmul.mubr.f32.vlgmr.msra.gmra.mxu1 %v16468_v21  ;;  %v3714_v30 = vand.u32 4294901760, %v3713_v9  ;;  %v2077_v14 = vpop.f32.mrf.mxu0  ;;  %v1701_v32 = vadd.f32 %v16369_v46, %v1347_v29 }
 0x209   : > { %14117 = vmatprep.subr.mxu1 %v3214_v17  ;;  %14128 = vmatprep.mubr.f32.mxu0 %v16254_v8 }
 0x20a   : > { %14138 = vmatprep.subr.mxu0 %v3212_v36  ;;  %14118 = vmatpush3.msra.mxu1 %v3214_v17  ;;  %v2078_v18 = vadd.f32 %v2077_v14, %v1701_v32  ;;  %v3715_v35 = vsub.f32 %v3713_v9, %v3714_v30  ;;  %v13958_v43 = vpop.f32.mrf.mxu0 }
 0x20b   : > { %14129 = vmatmul.mubr.f32.vlgmr.msra.gmra.mxu0 %v16478_v56  ;;  %14119 = vmatprep.subr.mxu1 %v3221_v33 }
 0x20c   : > { %14139 = vmatpush3.msra.mxu0 %v3212_v36  ;;  %14120 = vmatpush3.msra.mxu1 %v3221_v33  ;;  %v14019_v36 = vpop.f32.mrf.mxu1  ;;  %v3716_v0 = vand.u32 4294901760, %v3715_v35 }
 0x20d   : > { %14140 = vmatprep.subr.mxu0 %v3219_v28  ;;  %14121 = vmatprep.mubr.f32.mxu1 %v16245_v52  ;;  %v2391_v46 = vadd.f32 %v14019_v36, %v2084_v38 }
 0x20e   : > { %14141 = vmatpush3.msra.mxu0 %v3219_v28  ;;  %14122 = vmatmul.mubr.f32.vlgmr.msra.gmra.mxu1 %v16468_v21  ;;  %v2384_v39 = vpop.f32.mrf.mxu1 }
 0x20f   : > { %14131 = vmatprep.subr.mxu1 %v16516_v11  ;;  %14142 = vmatprep.mubr.f32.mxu0 %v16245_v52  ;;  %v2385_v28 = vadd.f32 %v2384_v39, %v2078_v18  ;;  %v16582_v44 = vand.u32 4294901760, %v2391_v46 }
 0x210   : > { %14152 = vmatprep.subr.mxu0 %v16548_v22  ;;  %14132 = vmatpush3.msra.mxu1 %v16516_v11  ;;  %v14022_v33 = vpop.f32.mrf.mxu1 }
 0x211   : > { %14143 = vmatmul.mubr.f32.vlgmr.msra.gmra.mxu0 %v16468_v21  ;;  %14133 = vmatprep.subr.mxu1 %v16519_v63  ;;  %v16585_v59 = vand.u32 4294901760, %v2385_v28  ;;  %v4215_v61 = vsub.f32 %v2391_v46, %v16582_v44 }
 0x212   : > { %14153 = vmatpush3.msra.mxu0 %v16548_v22  ;;  %14134 = vmatpush3.msra.mxu1 %v16519_v63 }
 0x213   : > { %14154 = vmatprep.subr.mxu0 %v16551_v23  ;;  %14135 = vmatprep.mubr.f32.mxu1 %v16261_v2  ;;  %v4222_v17 = vsub.f32 %v2385_v28, %v16585_v59 }
 0x214   : > { %14155 = vmatpush3.msra.mxu0 %v16551_v23  ;;  %14136 = vmatmul.mubr.f32.vlgmr.msra.gmra.mxu1 %v16490_v6 }
 0x215   : > { %14145 = vmatprep.subr.mxu1 %v16516_v11  ;;  %14156 = vmatprep.mubr.f32.mxu0 %v16275_v10  ;;  %v4223_v4 = vand.u32 4294901760, %v4222_v17 }
 0x216   : > { %14166 = vmatprep.subr.mxu0 %v3713_v9  ;;  %14146 = vmatpush3.msra.mxu1 %v16516_v11  ;;  %v3723_v11 = vand.u32 4294901760, %v3722_v47 }
 0x217   : > { %14157 = vmatmul.mubr.f32.vlgmr.msra.gmra.mxu0 %v16508_v25  ;;  %14147 = vmatprep.subr.mxu1 %v16519_v63 }
 0x218   : > { %14167 = vmatpush3.msra.mxu0 %v3713_v9  ;;  %14148 = vmatpush3.msra.mxu1 %v16519_v63  ;;  %v1043_v63 = vadd.f32 %v16210_v51, %v16204_v20  ;;  %v4216_v20 = vand.u32 4294901760, %v4215_v61  ;;  %v2089_v51 = vpop.f32.mrf.mxu0  ;;  %v2096_v9 = vadd.f32 %v13958_v43, %v16374_v58  ;;  %v4224_v58 = vsub.f32 %v4222_v17, %v4223_v4 }
 0x219   : > { %14168 = vmatprep.subr.mxu0 %v3720_v57  ;;  %14149 = vmatprep.mubr.f32.mxu1 %v16245_v52 }
 0x21a   : > { %14169 = vmatpush3.msra.mxu0 %v3720_v57  ;;  %14150 = vmatmul.mubr.f32.vlgmr.msra.gmra.mxu1 %v16468_v21  ;;  %v1361_v19 = vadd.f32 %v16372_v7, %v1043_v63  ;;  %v4217_v57 = vsub.f32 %v4215_v61, %v4216_v20  ;;  %v13961_v18 = vpop.f32.mrf.mxu0 }
 0x21b   : > { %14159 = vmatprep.subr.mxu1 %v3716_v0  ;;  %14170 = vmatprep.mubr.f32.mxu0 %v16254_v8  ;;  %v2108_v47 = vadd.f32 %v13961_v18, %v16381_v62 }
 0x21c   : > { %14180 = vmatprep.subr.mxu0 %v3714_v30  ;;  %14160 = vmatpush3.msra.mxu1 %v3716_v0  ;;  %v1717_v7 = vadd.f32 %v16376_v42, %v1361_v19  ;;  %v2403_v42 = vadd.f32 %v14022_v33, %v2096_v9  ;;  %v4218_v36 = vand.u32 4294901760, %v4217_v57 }
 0x21d   : > { %14171 = vmatmul.mubr.f32.vlgmr.msra.gmra.mxu0 %v16478_v56  ;;  %14161 = vmatprep.subr.mxu1 %v3723_v11 }
 0x21e   : > { %14181 = vmatpush3.msra.mxu0 %v3714_v30  ;;  %14162 = vmatpush3.msra.mxu1 %v3723_v11  ;;  %v2090_v29 = vadd.f32 %v2089_v51, %v1717_v7  ;;  %v2396_v30 = vpop.f32.mrf.mxu1  ;;  %v16617_v32 = vand.u32 4294901760, %v2403_v42 }
 0x21f   : > { %14182 = vmatprep.subr.mxu0 %v3721_v13  ;;  %14163 = vmatprep.mubr.f32.mxu1 %v16245_v52 }
 0x220   : > { %14183 = vmatpush3.msra.mxu0 %v3721_v13  ;;  %14164 = vmatmul.mubr.f32.vlgmr.msra.gmra.mxu1 %v16468_v21  ;;  %v2397_v14 = vadd.f32 %v2396_v30, %v2090_v29  ;;  %v4717_v13 = vsub.f32 %v2403_v42, %v16617_v32  ;;  %v14025_v46 = vpop.f32.mrf.mxu1 }
 0x221   : > { %14173 = vmatprep.subr.mxu1 %v16548_v22  ;;  %14184 = vmatprep.mubr.f32.mxu0 %v16245_v52 }
 0x222   : > { %14194 = vmatprep.subr.mxu0 %v16582_v44  ;;  %14174 = vmatpush3.msra.mxu1 %v16548_v22  ;;  %v16620_v38 = vand.u32 4294901760, %v2397_v14  ;;  %v2408_v63 = vpop.f32.mrf.mxu1 }
 0x223   : > { %14185 = vmatmul.mubr.f32.vlgmr.msra.gmra.mxu0 %v16468_v21  ;;  %14175 = vmatprep.subr.mxu1 %v16551_v23 }
 0x224   : > { %14195 = vmatpush3.msra.mxu0 %v16582_v44  ;;  %14176 = vmatpush3.msra.mxu1 %v16551_v23  ;;  %v4724_v39 = vsub.f32 %v2397_v14, %v16620_v38  ;;  %v14028_v9 = vpop.f32.mrf.mxu1 }
 0x225   : > { %14196 = vmatprep.subr.mxu0 %v16585_v59  ;;  %14177 = vmatprep.mubr.f32.mxu1 %v16261_v2 }
 0x226   : > { %14197 = vmatpush3.msra.mxu0 %v16585_v59  ;;  %14178 = vmatmul.mubr.f32.vlgmr.msra.gmra.mxu1 %v16490_v6  ;;  %v4725_v28 = vand.u32 4294901760, %v4724_v39  ;;  %v2420_v42 = vpop.f32.mrf.mxu1 }
 0x227   : > { %14187 = vmatprep.subr.mxu1 %v16548_v22  ;;  %14198 = vmatprep.mubr.f32.mxu0 %v16275_v10 }
 0x228   : > { %14208 = vmatprep.subr.mxu0 %v4215_v61  ;;  %14188 = vmatpush3.msra.mxu1 %v16548_v22  ;;  %v4225_v22 = vand.u32 4294901760, %v4224_v58  ;;  %v4726_v62 = vsub.f32 %v4724_v39, %v4725_v28 }
 0x229   : > { %14199 = vmatmul.mubr.f32.vlgmr.msra.gmra.mxu0 %v16508_v25  ;;  %14189 = vmatprep.subr.mxu1 %v16551_v23 }
 0x22a   : > { %14209 = vmatpush3.msra.mxu0 %v4215_v61  ;;  %14190 = vmatpush3.msra.mxu1 %v16551_v23  ;;  %v1055_v23 = vadd.f32 %v16220_v60, %v16214_v48  ;;  %v4718_v48 = vand.u32 4294901760, %v4717_v13  ;;  %v2101_v60 = vpop.f32.mrf.mxu0 }
 0x22b   : > { %14210 = vmatprep.subr.mxu0 %v4222_v17  ;;  %14191 = vmatprep.mubr.f32.mxu1 %v16245_v52 }
 0x22c   : > { %14211 = vmatpush3.msra.mxu0 %v4222_v17  ;;  %14192 = vmatmul.mubr.f32.vlgmr.msra.gmra.mxu1 %v16468_v21  ;;  %v1375_v35 = vadd.f32 %v16379_v26, %v1055_v23  ;;  %v4719_v11 = vsub.f32 %v4717_v13, %v4718_v48  ;;  %v13964_v51 = vpop.f32.mrf.mxu0 }
 0x22d   : > { %14201 = vmatprep.subr.mxu1 %v4218_v36  ;;  %14212 = vmatprep.mubr.f32.mxu0 %v16254_v8 }
 0x22e   : > { %14222 = vmatprep.subr.mxu0 %v4216_v20  ;;  %14202 = vmatpush3.msra.mxu1 %v4218_v36  ;;  %v1733_v26 = vadd.f32 %v16383_v37, %v1375_v35  ;;  %v2415_v37 = vadd.f32 %v14025_v46, %v2108_v47  ;;  %v4720_v43 = vand.u32 4294901760, %v4719_v11  ;;  %v17903_v46 = vld [vmem:[#allocation28_spill] sm:$0xff] }
 0x22f   : > { %14213 = vmatmul.mubr.f32.vlgmr.msra.gmra.mxu0 %v16478_v56  ;;  %14203 = vmatprep.subr.mxu1 %v4225_v22 }
 0x230   : > { %14223 = vmatpush3.msra.mxu0 %v4216_v20  ;;  %14204 = vmatpush3.msra.mxu1 %v4225_v22  ;;  %v2102_v0 = vadd.f32 %v2101_v60, %v1733_v26  ;;  %v16652_v19 = vand.u32 4294901760, %v2415_v37  ;;  %v14031_v60 = vpop.f32.mrf.mxu1 }
 0x231   : > { %14224 = vmatprep.subr.mxu0 %v4223_v4  ;;  %14205 = vmatprep.mubr.f32.mxu1 %v16245_v52 }
 0x232   : > { %14225 = vmatpush3.msra.mxu0 %v4223_v4  ;;  %14206 = vmatmul.mubr.f32.vlgmr.msra.gmra.mxu1 %v16468_v21  ;;  %v2409_v61 = vadd.f32 %v2408_v63, %v2102_v0  ;;  %v5219_v20 = vsub.f32 %v2415_v37, %v16652_v19  ;;  %v2120_v4 = vadd.f32 %v13964_v51, %v16388_v34  ;;  %v2432_v47 = vpop.f32.mrf.mxu1 }
 0x233   : > { %14215 = vmatprep.subr.mxu1 %v16582_v44  ;;  %14226 = vmatprep.mubr.f32.mxu0 %v16245_v52 }
 0x234   : > { %14236 = vmatprep.subr.mxu0 %v16617_v32  ;;  %14216 = vmatpush3.msra.mxu1 %v16582_v44  ;;  %v16655_v17 = vand.u32 4294901760, %v2409_v61  ;;  %v14034_v37 = vpop.f32.mrf.mxu1 }
 0x235   : > { %14227 = vmatmul.mubr.f32.vlgmr.msra.gmra.mxu0 %v16468_v21  ;;  %14217 = vmatprep.subr.mxu1 %v16585_v59 }
 0x236   : > { %14237 = vmatpush3.msra.mxu0 %v16617_v32  ;;  %14218 = vmatpush3.msra.mxu1 %v16585_v59  ;;  %v5226_v7 = vsub.f32 %v2409_v61, %v16655_v17 }
 0x237   : > { %14238 = vmatprep.subr.mxu0 %v16620_v38  ;;  %14219 = vmatprep.mubr.f32.mxu1 %v16261_v2 }
 0x238   : > { %14239 = vmatpush3.msra.mxu0 %v16620_v38  ;;  %14220 = vmatmul.mubr.f32.vlgmr.msra.gmra.mxu1 %v16490_v6  ;;  %v5227_v29 = vand.u32 4294901760, %v5226_v7 }
 0x239   : > { %14229 = vmatprep.subr.mxu1 %v16582_v44  ;;  %14240 = vmatprep.mubr.f32.mxu0 %v16275_v10 }
 0x23a   : > { %14250 = vmatprep.subr.mxu0 %v4717_v13  ;;  %14230 = vmatpush3.msra.mxu1 %v16582_v44  ;;  %v4727_v44 = vand.u32 4294901760, %v4726_v62  ;;  %v5228_v34 = vsub.f32 %v5226_v7, %v5227_v29 }
 0x23b   : > { %14241 = vmatmul.mubr.f32.vlgmr.msra.gmra.mxu0 %v16508_v25  ;;  %14231 = vmatprep.subr.mxu1 %v16585_v59 }
 0x23c   : > { %14251 = vmatpush3.msra.mxu0 %v4717_v13  ;;  %14232 = vmatpush3.msra.mxu1 %v16585_v59  ;;  %v1067_v59 = vadd.f32 %v16230_v50, %v16224_v49  ;;  %v5220_v49 = vand.u32 4294901760, %v5219_v20  ;;  %v2113_v50 = vpop.f32.mrf.mxu0 }
 0x23d   : > { %14252 = vmatprep.subr.mxu0 %v4724_v39  ;;  %14233 = vmatprep.mubr.f32.mxu1 %v16245_v52 }
 0x23e   : > { %14253 = vmatpush3.msra.mxu0 %v4724_v39  ;;  %14234 = vmatmul.mubr.f32.vlgmr.msra.gmra.mxu1 %v16468_v21  ;;  %v1389_v33 = vadd.f32 %v16386_v31, %v1067_v59  ;;  %v5221_v30 = vsub.f32 %v5219_v20, %v5220_v49  ;;  %v13967_v58 = vpop.f32.mrf.mxu0  ;;  %v2444_v59 = vpop.f32.mrf.mxu1 }
 0x23f   : > { %14243 = vmatprep.subr.mxu1 %v4720_v43  ;;  %14254 = vmatprep.mubr.f32.mxu0 %v16254_v8  ;;  %v2132_v26 = vadd.f32 %v13967_v58, %v17903_v46  ;;  %v17908_v46 = vld [vmem:[#allocation35_spill] sm:$0xff] }
 0x240   : > { %14264 = vmatprep.subr.mxu0 %v4718_v48  ;;  %14244 = vmatpush3.msra.mxu1 %v4720_v43  ;;  %v1749_v31 = vadd.f32 %v16390_v24, %v1389_v33  ;;  %v2427_v24 = vadd.f32 %v14028_v9, %v2120_v4  ;;  %v5222_v36 = vand.u32 4294901760, %v5221_v30  ;;  %v2125_v23 = vpop.f32.mrf.mxu0  ;;  %v17904_v33 = vld [vmem:[#allocation30_spill] sm:$0xff]  ;;  %v16741_v9 = vpop.f32.mrf.mxu1 }
 0x241   : > { %14255 = vmatmul.mubr.f32.vlgmr.msra.gmra.mxu0 %v16478_v56  ;;  %14245 = vmatprep.subr.mxu1 %v4727_v44 }
 0x242   : > { %14265 = vmatpush3.msra.mxu0 %v4718_v48  ;;  %14246 = vmatpush3.msra.mxu1 %v4727_v44  ;;  %v2114_v57 = vadd.f32 %v2113_v50, %v1749_v31  ;;  %v16687_v22 = vand.u32 4294901760, %v2427_v24  ;;  %v16697_v35 = vpop.f32.mrf.mxu0  ;;  %v17906_v31 = vld [vmem:[#allocation29_spill] sm:$0xff]  ;;  %v16753_v30 = vpop.f32.mrf.mxu1 }
 0x243   : > { %14266 = vmatprep.subr.mxu0 %v4725_v28  ;;  %14247 = vmatprep.mubr.f32.mxu1 %v16245_v52 }
 0x244   : > { %14267 = vmatpush3.msra.mxu0 %v4725_v28  ;;  %14248 = vmatmul.mubr.f32.vlgmr.msra.gmra.mxu1 %v16468_v21  ;;  %v2421_v14 = vadd.f32 %v2420_v42, %v2114_v57  ;;  %v5721_v18 = vsub.f32 %v2427_v24, %v16687_v22 }
 0x245   : > { %14257 = vmatprep.subr.mxu1 %v16617_v32  ;;  %14268 = vmatprep.mubr.f32.mxu0 %v16245_v52 }
 0x246   : > { %14278 = vmatprep.subr.mxu0 %v16652_v19  ;;  %14258 = vmatpush3.msra.mxu1 %v16617_v32  ;;  %v16690_v13 = vand.u32 4294901760, %v2421_v14 }
 0x247   : > { %14269 = vmatmul.mubr.f32.vlgmr.msra.gmra.mxu0 %v16468_v21  ;;  %14259 = vmatprep.subr.mxu1 %v16620_v38 }
 0x248   : > { %14279 = vmatpush3.msra.mxu0 %v16652_v19  ;;  %14260 = vmatpush3.msra.mxu1 %v16620_v38  ;;  %v5728_v48 = vsub.f32 %v2421_v14, %v16690_v13 }
 0x249   : > { %14280 = vmatprep.subr.mxu0 %v16655_v17  ;;  %14261 = vmatprep.mubr.f32.mxu1 %v16261_v2 }
 0x24a   : > { %14281 = vmatpush3.msra.mxu0 %v16655_v17  ;;  %14262 = vmatmul.mubr.f32.vlgmr.msra.gmra.mxu1 %v16490_v6  ;;  %v5729_v28 = vand.u32 4294901760, %v5728_v48 }
 0x24b   : > { %14271 = vmatprep.subr.mxu1 %v16617_v32  ;;  %14282 = vmatprep.mubr.f32.mxu0 %v16275_v10 }
 0x24c   : > { %14292 = vmatprep.subr.mxu0 %v5219_v20  ;;  %14272 = vmatpush3.msra.mxu1 %v16617_v32  ;;  %v5229_v32 = vand.u32 4294901760, %v5228_v34  ;;  %v5730_v62 = vsub.f32 %v5728_v48, %v5729_v28  ;;  %v17907_v34 = vld [vmem:[#allocation31_spill] sm:$0xff] }
 0x24d   : > { %14283 = vmatmul.mubr.f32.vlgmr.msra.gmra.mxu0 %v16508_v25  ;;  %14273 = vmatprep.subr.mxu1 %v16620_v38  ;;  %v2144_v58 = vadd.f32 %v16697_v35, %v17907_v34 }
 0x24e   : > { %14293 = vmatpush3.msra.mxu0 %v5219_v20  ;;  %14274 = vmatpush3.msra.mxu1 %v16620_v38  ;;  %v1079_v38 = vadd.f32 %v16240_v15, %v16234_v27  ;;  %v5722_v27 = vand.u32 4294901760, %v5721_v18  ;;  %v16708_v15 = vpop.f32.mrf.mxu0  ;;  %v5731_v20 = vand.u32 4294901760, %v5730_v62 }
 0x24f   : > { %14294 = vmatprep.subr.mxu0 %v5226_v7  ;;  %14275 = vmatprep.mubr.f32.mxu1 %v16245_v52 }
 0x250   : > { %14295 = vmatpush3.msra.mxu0 %v5226_v7  ;;  %14276 = vmatmul.mubr.f32.vlgmr.msra.gmra.mxu1 %v16468_v21  ;;  %v1403_v39 = vadd.f32 %v16393_v40, %v1079_v38  ;;  %v5723_v11 = vsub.f32 %v5721_v18, %v5722_v27  ;;  %v16720_v63 = vpop.f32.mrf.mxu0  ;;  %v17905_v7 = vld [vmem:[#allocation32_spill] sm:$0xff]  ;;  %v2451_v38 = vadd.f32 %v14034_v37, %v2144_v58  ;;  %v17912_v58 = vld [vmem:[#allocation38_spill] sm:$0xff] }
 0x251   : > { %14285 = vmatprep.subr.mxu1 %v5222_v36  ;;  %14296 = vmatprep.mubr.f32.mxu0 %v16254_v8 }
 0x252   : > { %14306 = vmatprep.subr.mxu0 %v5220_v49  ;;  %14286 = vmatpush3.msra.mxu1 %v5222_v36  ;;  %v1765_v40 = vadd.f32 %v16397_v54, %v1403_v39  ;;  %v2439_v54 = vadd.f32 %v14031_v60, %v2132_v26  ;;  %v5724_v43 = vand.u32 4294901760, %v5723_v11  ;;  %v16727_v44 = vpop.f32.mrf.mxu0  ;;  %v17909_v26 = vld [vmem:[#allocation36_spill] sm:$0xff]  ;;  %v17910_v11 = vld [vmem:[#allocation33_spill] sm:$0xff] }
 0x253   : > { %14297 = vmatmul.mubr.f32.vlgmr.msra.gmra.mxu0 %v16478_v56  ;;  %14287 = vmatprep.subr.mxu1 %v5229_v32 }
 0x254   : > { %14307 = vmatpush3.msra.mxu0 %v5220_v49  ;;  %14288 = vmatpush3.msra.mxu1 %v5229_v32  ;;  %v2126_v0 = vadd.f32 %v2125_v23, %v1765_v40  ;;  %v16736_v51 = vpop.f32.mrf.mxu0  ;;  %v1091_v49 = vadd.f32 %v17905_v7, %v17904_v33  ;;  %v16769_v23 = vpop.f32.mrf.mxu1 }
 0x255   : > { %14308 = vmatprep.subr.mxu0 %v5227_v29  ;;  %14289 = vmatprep.mubr.f32.mxu1 %v16245_v52 }
 0x256   : > { %14309 = vmatpush3.msra.mxu0 %v5227_v29  ;;  %14290 = vmatmul.mubr.f32.vlgmr.msra.gmra.mxu1 %v16468_v21  ;;  %v2433_v61 = vadd.f32 %v2432_v47, %v2126_v0  ;;  %v1417_v4 = vadd.f32 %v17906_v31, %v1091_v49  ;;  %v16749_v57 = vpop.f32.mrf.mxu0  ;;  %v1103_v47 = vadd.f32 %v17909_v26, %v17908_v46 }
 0x257   : > { %14299 = vmatprep.subr.mxu1 %v16652_v19  ;;  %14310 = vmatprep.mubr.f32.mxu0 %v16245_v52 }
 0x258   : > { %14320 = vmatprep.subr.mxu0 %v16687_v22  ;;  %14300 = vmatpush3.msra.mxu1 %v16652_v19  ;;  %v1781_v24 = vadd.f32 %v16404_v41, %v1417_v4  ;;  %v16764_v36 = vpop.f32.mrf.mxu0 }
 0x259   : > { %14311 = vmatmul.mubr.f32.vlgmr.msra.gmra.mxu0 %v16468_v21  ;;  %14301 = vmatprep.subr.mxu1 %v16655_v17 }
 0x25a   : > { %14321 = vmatpush3.msra.mxu0 %v16687_v22  ;;  %14302 = vmatpush3.msra.mxu1 %v16655_v17  ;;  %v2138_v32 = vadd.f32 %v16708_v15, %v1781_v24  ;;  %v16776_v35 = vpop.f32.mrf.mxu0 }
 0x25b   : > { %14322 = vmatprep.subr.mxu0 %v16690_v13  ;;  %14303 = vmatprep.mubr.f32.mxu1 %v16261_v2 }
 0x25c   : > { %14323 = vmatpush3.msra.mxu0 %v16690_v13  ;;  %14304 = vmatmul.mubr.f32.vlgmr.msra.gmra.mxu1 %v16490_v6  ;;  %v2445_v39 = vadd.f32 %v2444_v59, %v2138_v32  ;;  %v16786_v15 = vpop.f32.mrf.mxu0 }
 0x25d   : > { %14313 = vmatprep.subr.mxu1 %v16652_v19  ;;  %14324 = vmatprep.mubr.f32.mxu0 %v16275_v10 }
 0x25e   : > { %14334 = vmatprep.subr.mxu0 %v5721_v18  ;;  %14314 = vmatpush3.msra.mxu1 %v16652_v19  ;;  %v16730_v19 = vand.u32 4294901760, %v2439_v54  ;;  %v16797_v0 = vpop.f32.mrf.mxu0 }
 0x25f   : > { %14325 = vmatmul.mubr.f32.vlgmr.msra.gmra.mxu0 %v16508_v25  ;;  %14315 = vmatprep.subr.mxu1 %v16655_v17 }
 0x260   : > { %14335 = vmatpush3.msra.mxu0 %v5721_v18  ;;  %14316 = vmatpush3.msra.mxu1 %v16655_v17  ;;  %v16733_v17 = vand.u32 4294901760, %v2433_v61  ;;  %v6223_v50 = vsub.f32 %v2439_v54, %v16730_v19  ;;  %v1431_v54 = vadd.f32 %v17910_v11, %v1103_v47 }
 0x261   : > { %14336 = vmatprep.subr.mxu0 %v5728_v48  ;;  %14317 = vmatprep.mubr.f32.mxu1 %v16245_v52 }
 0x262   : > { %14337 = vmatpush3.msra.mxu0 %v5728_v48  ;;  %14318 = vmatmul.mubr.f32.vlgmr.msra.gmra.mxu1 %v16468_v21  ;;  %v6230_v29 = vsub.f32 %v2433_v61, %v16733_v17  ;;  %v6224_v42 = vand.u32 4294901760, %v6223_v50  ;;  %v16779_v48 = vpop.f32.mrf.mxu1  ;;  %v1797_v59 = vadd.f32 %v16411_v1, %v1431_v54 }
 0x263   : > { %14327 = vmatprep.subr.mxu1 %v5724_v43  ;;  %14338 = vmatprep.mubr.f32.mxu0 %v16254_v8 }
 0x264   : > { %14348 = vmatprep.subr.mxu0 %v5722_v27  ;;  %14328 = vmatpush3.msra.mxu1 %v5724_v43  ;;  %v6231_v14 = vand.u32 4294901760, %v6230_v29  ;;  %v6225_v41 = vsub.f32 %v6223_v50, %v6224_v42  ;;  %v16790_v40 = vpop.f32.mrf.mxu1  ;;  %v16810_v43 = vpop.f32.mrf.mxu0 }
 0x265   : > { %14339 = vmatmul.mubr.f32.vlgmr.msra.gmra.mxu0 %v16478_v56  ;;  %14329 = vmatprep.subr.mxu1 %v5731_v20 }
 0x266   : > { %14349 = vmatpush3.msra.mxu0 %v5722_v27  ;;  %14330 = vmatpush3.msra.mxu1 %v5731_v20  ;;  %v6232_v18 = vsub.f32 %v6230_v29, %v6231_v14  ;;  %v6226_v60 = vand.u32 4294901760, %v6225_v41  ;;  %v16802_v62 = vpop.f32.mrf.mxu1  ;;  %v17911_v20 = vld [vmem:[#allocation34_spill] sm:$0xff]  ;;  %v16826_v31 = vpop.f32.mrf.mxu0 }
 0x267   : > { %14350 = vmatprep.subr.mxu0 %v5729_v28  ;;  %14331 = vmatprep.mubr.f32.mxu1 %v16245_v52  ;;  %v2156_v33 = vadd.f32 %v16720_v63, %v17911_v20 }
 0x268   : > { %14351 = vmatpush3.msra.mxu0 %v5729_v28  ;;  %14332 = vmatmul.mubr.f32.vlgmr.msra.gmra.mxu1 %v16468_v21  ;;  %v6233_v27 = vand.u32 4294901760, %v6232_v18  ;;  %v16817_v7 = vpop.f32.mrf.mxu1  ;;  %v16837_v24 = vpop.f32.mrf.mxu0  ;;  %v17914_v18 = vld [vmem:[#allocation37_spill] sm:$0xff] }
 0x269   : > { %14341 = vmatprep.subr.mxu1 %v16687_v22  ;;  %14352 = vmatprep.mubr.f32.mxu0 %v16245_v52  ;;  %v2463_v63 = vadd.f32 %v16741_v9, %v2156_v33 }
 0x26a   : > { %14362 = vmatprep.subr.mxu0 %v16730_v19  ;;  %14342 = vmatpush3.msra.mxu1 %v16687_v22  ;;  %v16830_v4 = vpop.f32.mrf.mxu1 }
 0x26b   : > { %14353 = vmatmul.mubr.f32.vlgmr.msra.gmra.mxu0 %v16468_v21  ;;  %14343 = vmatprep.subr.mxu1 %v16690_v13 }
 0x26c   : > { %14363 = vmatpush3.msra.mxu0 %v16730_v19  ;;  %14344 = vmatpush3.msra.mxu1 %v16690_v13  ;;  %v16842_v9 = vpop.f32.mrf.mxu1 }
 0x26d   : > { %14364 = vmatprep.subr.mxu0 %v16733_v17  ;;  %14345 = vmatprep.mubr.f32.mxu1 %v16261_v2 }
 0x26e   : > { %14365 = vmatpush3.msra.mxu0 %v16733_v17  ;;  %14346 = vmatmul.mubr.f32.vlgmr.msra.gmra.mxu1 %v16490_v6 }
 0x26f   : > { %14355 = vmatprep.subr.mxu1 %v16687_v22  ;;  %14366 = vmatprep.mubr.f32.mxu0 %v16275_v10 }
 0x270   : > { %14376 = vmatprep.subr.mxu0 %v6223_v50  ;;  %14356 = vmatpush3.msra.mxu1 %v16687_v22  ;;  %v16783_v22 = vand.u32 4294901760, %v2451_v38 }
 0x271   : > { %14367 = vmatmul.mubr.f32.vlgmr.msra.gmra.mxu0 %v16508_v25  ;;  %14357 = vmatprep.subr.mxu1 %v16690_v13 }
 0x272   : > { %14377 = vmatpush3.msra.mxu0 %v6223_v50  ;;  %14358 = vmatpush3.msra.mxu1 %v16690_v13  ;;  %v16788_v13 = vand.u32 4294901760, %v2445_v39  ;;  %v6725_v28 = vsub.f32 %v2451_v38, %v16783_v22  ;;  %v2150_v50 = vadd.f32 %v16727_v44, %v1797_v59  ;;  %v16853_v38 = vpop.f32.mrf.mxu1 }
 0x273   : > { %14378 = vmatprep.subr.mxu0 %v6230_v29  ;;  %14359 = vmatprep.mubr.f32.mxu1 %v16245_v52 }
 0x274   : > { %14379 = vmatpush3.msra.mxu0 %v6230_v29  ;;  %14360 = vmatmul.mubr.f32.vlgmr.msra.gmra.mxu1 %v16468_v21  ;;  %v6732_v37 = vsub.f32 %v2445_v39, %v16788_v13  ;;  %v6726_v61 = vand.u32 4294901760, %v6725_v28  ;;  %v2457_v44 = vadd.f32 %v16753_v30, %v2150_v50  ;;  %v16848_v30 = vpop.f32.mrf.mxu0  ;;  %v16865_v46 = vpop.f32.mrf.mxu1 }
 0x275   : > { %14369 = vmatprep.subr.mxu1 %v6226_v60  ;;  %14380 = vmatprep.mubr.f32.mxu0 %v16254_v8 }
 0x276   : > { %14390 = vmatprep.subr.mxu0 %v6224_v42  ;;  %14370 = vmatpush3.msra.mxu1 %v6226_v60  ;;  %v6733_v49 = vand.u32 4294901760, %v6732_v37  ;;  %v6727_v1 = vsub.f32 %v6725_v28, %v6726_v61  ;;  %v16881_v59 = vpop.f32.mrf.mxu1 }
 0x277   : > { %14381 = vmatmul.mubr.f32.vlgmr.msra.gmra.mxu0 %v16478_v56  ;;  %14371 = vmatprep.subr.mxu1 %v6233_v27 }
 0x278   : > { %14391 = vmatpush3.msra.mxu0 %v6224_v42  ;;  %14372 = vmatpush3.msra.mxu1 %v6233_v27  ;;  %v6734_v29 = vsub.f32 %v6732_v37, %v6733_v49  ;;  %v6728_v42 = vand.u32 4294901760, %v6727_v1  ;;  %v16861_v27 = vpop.f32.mrf.mxu0 }
 0x279   : > { %14392 = vmatprep.subr.mxu0 %v6231_v14  ;;  %14373 = vmatprep.mubr.f32.mxu1 %v16245_v52 }
 0x27a   : > { %14393 = vmatpush3.msra.mxu0 %v6231_v14  ;;  %14374 = vmatmul.mubr.f32.vlgmr.msra.gmra.mxu1 %v16468_v21  ;;  %v6735_v34 = vand.u32 4294901760, %v6734_v29  ;;  %v17913_v14 = vld [vmem:[#allocation41_spill] sm:$0xff]  ;;  %v17917_v29 = vld [vmem:[#allocation44_spill] sm:$0xff] }
 0x27b   : > { %14383 = vmatprep.subr.mxu1 %v16730_v19  ;;  %14394 = vmatprep.mubr.f32.mxu0 %v16245_v52  ;;  %v1115_v32 = vadd.f32 %v17913_v14, %v17912_v58  ;;  %v17918_v58 = vld [vmem:[#allocation40_spill] sm:$0xff] }
 0x27c   : > { %14404 = vmatprep.subr.mxu0 %v16783_v22  ;;  %14384 = vmatpush3.msra.mxu1 %v16730_v19 }
 0x27d   : > { %14395 = vmatmul.mubr.f32.vlgmr.msra.gmra.mxu0 %v16468_v21  ;;  %14385 = vmatprep.subr.mxu1 %v16733_v17  ;;  %v1445_v39 = vadd.f32 %v17914_v18, %v1115_v32 }
 0x27e   : > { %14405 = vmatpush3.msra.mxu0 %v16783_v22  ;;  %14386 = vmatpush3.msra.mxu1 %v16733_v17 }
 0x27f   : > { %14406 = vmatprep.subr.mxu0 %v16788_v13  ;;  %14387 = vmatprep.mubr.f32.mxu1 %v16261_v2  ;;  %v1813_v47 = vadd.f32 %v16418_v3, %v1445_v39 }
 0x280   : > { %14407 = vmatpush3.msra.mxu0 %v16788_v13  ;;  %14388 = vmatmul.mubr.f32.vlgmr.msra.gmra.mxu1 %v16490_v6 }
 0x281   : > { %14397 = vmatprep.subr.mxu1 %v16730_v19  ;;  %14408 = vmatprep.mubr.f32.mxu0 %v16275_v10 }
 0x282   : > { %14418 = vmatprep.subr.mxu0 %v6725_v28  ;;  %14398 = vmatpush3.msra.mxu1 %v16730_v19  ;;  %v16840_v19 = vand.u32 4294901760, %v2463_v63 }
 0x283   : > { %14409 = vmatmul.mubr.f32.vlgmr.msra.gmra.mxu0 %v16508_v25  ;;  %14399 = vmatprep.subr.mxu1 %v16733_v17 }
 0x284   : > { %14419 = vmatpush3.msra.mxu0 %v6725_v28  ;;  %14400 = vmatpush3.msra.mxu1 %v16733_v17  ;;  %v16845_v17 = vand.u32 4294901760, %v2457_v44  ;;  %v7227_v41 = vsub.f32 %v2463_v63, %v16840_v19  ;;  %v17915_v28 = vld [vmem:[#allocation39_spill] sm:$0xff] }
 0x285   : > { %14420 = vmatprep.subr.mxu0 %v6732_v37  ;;  %14401 = vmatprep.mubr.f32.mxu1 %v16245_v52  ;;  %v2168_v11 = vadd.f32 %v16736_v51, %v17915_v28  ;;  %v17916_v63 = vld [vmem:[#allocation43_spill] sm:$0xff] }
 0x286   : > { %14421 = vmatpush3.msra.mxu0 %v6732_v37  ;;  %14402 = vmatmul.mubr.f32.vlgmr.msra.gmra.mxu1 %v16468_v21  ;;  %v7234_v60 = vsub.f32 %v2457_v44, %v16845_v17  ;;  %v7228_v26 = vand.u32 4294901760, %v7227_v41  ;;  %v16876_v37 = vpop.f32.mrf.mxu0  ;;  %v1127_v44 = vadd.f32 %v17917_v29, %v17916_v63  ;;  %v17921_v63 = vld [vmem:[#allocation46_spill] sm:$0xff] }
 0x287   : > { %14411 = vmatprep.subr.mxu1 %v6728_v42  ;;  %14422 = vmatprep.mubr.f32.mxu0 %v16254_v8  ;;  %v2475_v51 = vadd.f32 %v16769_v23, %v2168_v11 }
 0x288   : > { %14432 = vmatprep.subr.mxu0 %v6726_v61  ;;  %14412 = vmatpush3.msra.mxu1 %v6728_v42  ;;  %v7235_v54 = vand.u32 4294901760, %v7234_v60  ;;  %v7229_v3 = vsub.f32 %v7227_v41, %v7228_v26  ;;  %v16889_v33 = vpop.f32.mrf.mxu0  ;;  %v1459_v14 = vadd.f32 %v17918_v58, %v1127_v44  ;;  %v17922_v58 = vld [vmem:[#allocation49_spill] sm:$0xff] }
 0x289   : > { %14423 = vmatmul.mubr.f32.vlgmr.msra.gmra.mxu0 %v16478_v56  ;;  %14413 = vmatprep.subr.mxu1 %v6735_v34  ;;  %v16897_v23 = vand.u32 4294901760, %v2475_v51 }
 0x28a   : > { %14433 = vmatpush3.msra.mxu0 %v6726_v61  ;;  %14414 = vmatpush3.msra.mxu1 %v6735_v34  ;;  %v2162_v61 = vadd.f32 %v16749_v57, %v1813_v47  ;;  %v7236_v20 = vsub.f32 %v7234_v60, %v7235_v54  ;;  %v16900_v1 = vpop.f32.mrf.mxu0 }
 0x28b   : > { %14434 = vmatprep.subr.mxu0 %v6733_v49  ;;  %14415 = vmatprep.mubr.f32.mxu1 %v16245_v52  ;;  %v7729_v42 = vsub.f32 %v2475_v51, %v16897_v23 }
 0x28c   : > { %14435 = vmatpush3.msra.mxu0 %v6733_v49  ;;  %14416 = vmatmul.mubr.f32.vlgmr.msra.gmra.mxu1 %v16468_v21  ;;  %v2469_v57 = vadd.f32 %v16779_v48, %v2162_v61  ;;  %v16893_v49 = vpop.f32.mrf.mxu1  ;;  %v7237_v50 = vand.u32 4294901760, %v7236_v20  ;;  %v16911_v34 = vpop.f32.mrf.mxu0 }
 0x28d   : > { %14425 = vmatprep.subr.mxu1 %v16783_v22  ;;  %14436 = vmatprep.mubr.f32.mxu0 %v16245_v52  ;;  %v7730_v18 = vand.u32 4294901760, %v7729_v42 }
 0x28e   : > { %14446 = vmatprep.subr.mxu0 %v16840_v19  ;;  %14426 = vmatpush3.msra.mxu1 %v16783_v22  ;;  %v16902_v48 = vand.u32 4294901760, %v2469_v57  ;;  %v16924_v39 = vpop.f32.mrf.mxu0 }
 0x28f   : > { %14437 = vmatmul.mubr.f32.vlgmr.msra.gmra.mxu0 %v16468_v21  ;;  %14427 = vmatprep.subr.mxu1 %v16788_v13 }
 0x290   : > { %14447 = vmatpush3.msra.mxu0 %v16840_v19  ;;  %14428 = vmatpush3.msra.mxu1 %v16788_v13  ;;  %v7736_v32 = vsub.f32 %v2469_v57, %v16902_v48  ;;  %v16940_v61 = vpop.f32.mrf.mxu0 }
 0x291   : > { %14448 = vmatprep.subr.mxu0 %v16845_v17  ;;  %14429 = vmatprep.mubr.f32.mxu1 %v16261_v2 }
 0x292   : > { %14449 = vmatpush3.msra.mxu0 %v16845_v17  ;;  %14430 = vmatmul.mubr.f32.vlgmr.msra.gmra.mxu1 %v16490_v6  ;;  %v7737_v11 = vand.u32 4294901760, %v7736_v32  ;;  %v16951_v57 = vpop.f32.mrf.mxu0 }
 0x293   : > { %14439 = vmatprep.subr.mxu1 %v16783_v22  ;;  %14450 = vmatprep.mubr.f32.mxu0 %v16275_v10 }
 0x294   : > { %14460 = vmatprep.subr.mxu0 %v7227_v41  ;;  %14440 = vmatpush3.msra.mxu1 %v16783_v22  ;;  %v7230_v22 = vand.u32 4294901760, %v7229_v3  ;;  %v7738_v51 = vsub.f32 %v7736_v32, %v7737_v11 }
 0x295   : > { %14451 = vmatmul.mubr.f32.vlgmr.msra.gmra.mxu0 %v16508_v25  ;;  %14441 = vmatprep.subr.mxu1 %v16788_v13 }
 0x296   : > { %14461 = vmatpush3.msra.mxu0 %v7227_v41  ;;  %14442 = vmatpush3.msra.mxu1 %v16788_v13  ;;  %v16904_v13 = vpop.f32.mrf.mxu1 }
 0x297   : > { %14462 = vmatprep.subr.mxu0 %v7234_v60  ;;  %14443 = vmatprep.mubr.f32.mxu1 %v16245_v52 }
 0x298   : > { %14463 = vmatpush3.msra.mxu0 %v7234_v60  ;;  %14444 = vmatmul.mubr.f32.vlgmr.msra.gmra.mxu1 %v16468_v21  ;;  %v16916_v41 = vpop.f32.mrf.mxu1  ;;  %v1829_v60 = vadd.f32 %v16425_v16, %v1459_v14  ;;  %v7731_v16 = vsub.f32 %v7729_v42, %v7730_v18 }
 0x299   : > { %14453 = vmatprep.subr.mxu1 %v7230_v22  ;;  %14464 = vmatprep.mubr.f32.mxu0 %v16254_v8 }
 0x29a   : > { %14474 = vmatprep.subr.mxu0 %v7228_v26  ;;  %14454 = vmatpush3.msra.mxu1 %v7230_v22  ;;  %v16931_v28 = vpop.f32.mrf.mxu1  ;;  %v7732_v20 = vand.u32 4294901760, %v7731_v16  ;;  %v7739_v22 = vand.u32 4294901760, %v7738_v51 }
 0x29b   : > { %14465 = vmatmul.mubr.f32.vlgmr.msra.gmra.mxu0 %v16478_v56  ;;  %14455 = vmatprep.subr.mxu1 %v7237_v50 }
 0x29c   : > { %14475 = vmatpush3.msra.mxu0 %v7228_v26  ;;  %14456 = vmatpush3.msra.mxu1 %v7237_v50  ;;  %v17919_v26 = vld [vmem:[#allocation42_spill] sm:$0xff]  ;;  %v16944_v3 = vpop.f32.mrf.mxu1  ;;  %v17920_v50 = vld [vmem:[#allocation45_spill] sm:$0xff] }
 0x29d   : > { %14476 = vmatprep.subr.mxu0 %v7235_v54  ;;  %14457 = vmatprep.mubr.f32.mxu1 %v16245_v52  ;;  %v2180_v47 = vadd.f32 %v16764_v36, %v17919_v26  ;;  %v1139_v29 = vadd.f32 %v17921_v63, %v17920_v50 }
 0x29e   : > { %14477 = vmatpush3.msra.mxu0 %v7235_v54  ;;  %14458 = vmatmul.mubr.f32.vlgmr.msra.gmra.mxu1 %v16468_v21  ;;  %v2174_v54 = vadd.f32 %v16776_v35, %v1829_v60 }
 0x29f   : > { %14467 = vmatprep.subr.mxu1 %v16840_v19  ;;  %14478 = vmatprep.mubr.f32.mxu0 %v16245_v52  ;;  %v2487_v36 = vadd.f32 %v16790_v40, %v2180_v47  ;;  %v1473_v14 = vadd.f32 %v17922_v58, %v1139_v29 }
 0x2a0   : > { %14488 = vmatprep.subr.mxu0 %v16897_v23  ;;  %14468 = vmatpush3.msra.mxu1 %v16840_v19  ;;  %v2481_v35 = vadd.f32 %v16802_v62, %v2174_v54  ;;  %v17923_v54 = vld [vmem:[#allocation50_spill] sm:$0xff] }
 0x2a1   : > { %14479 = vmatmul.mubr.f32.vlgmr.msra.gmra.mxu0 %v16468_v21  ;;  %14469 = vmatprep.subr.mxu1 %v16845_v17  ;;  %v16954_v40 = vand.u32 4294901760, %v2487_v36  ;;  %v2192_v16 = vadd.f32 %v16786_v15, %v17923_v54  ;;  %v17924_v54 = vld [vmem:[#allocation47_spill] sm:$0xff] }
 0x2a2   : > { %14489 = vmatpush3.msra.mxu0 %v16897_v23  ;;  %14470 = vmatpush3.msra.mxu1 %v16845_v17  ;;  %v16959_v62 = vand.u32 4294901760, %v2481_v35 }
 0x2a3   : > { %14490 = vmatprep.subr.mxu0 %v16902_v48  ;;  %14471 = vmatprep.mubr.f32.mxu1 %v16261_v2  ;;  %v8231_v44 = vsub.f32 %v2487_v36, %v16954_v40 }
 0x2a4   : > { %14491 = vmatpush3.msra.mxu0 %v16902_v48  ;;  %14472 = vmatmul.mubr.f32.vlgmr.msra.gmra.mxu1 %v16490_v6 }
 0x2a5   : > { %14481 = vmatprep.subr.mxu1 %v16840_v19  ;;  %14492 = vmatprep.mubr.f32.mxu0 %v16275_v10  ;;  %v8232_v26 = vand.u32 4294901760, %v8231_v44 }
 0x2a6   : > { %14502 = vmatprep.subr.mxu0 %v7729_v42  ;;  %14482 = vmatpush3.msra.mxu1 %v16840_v19  ;;  %v16956_v19 = vpop.f32.mrf.mxu1 }
 0x2a7   : > { %14493 = vmatmul.mubr.f32.vlgmr.msra.gmra.mxu0 %v16508_v25  ;;  %14483 = vmatprep.subr.mxu1 %v16845_v17 }
 0x2a8   : > { %14503 = vmatpush3.msra.mxu0 %v7729_v42  ;;  %14484 = vmatpush3.msra.mxu1 %v16845_v17  ;;  %v16962_v17 = vpop.f32.mrf.mxu0  ;;  %v16967_v42 = vpop.f32.mrf.mxu1 }
 0x2a9   : > { %14504 = vmatprep.subr.mxu0 %v7736_v32  ;;  %14485 = vmatprep.mubr.f32.mxu1 %v16245_v52 }
 0x2aa   : > { %14505 = vmatpush3.msra.mxu0 %v7736_v32  ;;  %14486 = vmatmul.mubr.f32.vlgmr.msra.gmra.mxu1 %v16468_v21  ;;  %v8238_v32 = vsub.f32 %v2481_v35, %v16959_v62  ;;  %v16979_v60 = vpop.f32.mrf.mxu1 }
 0x2ab   : > { %14495 = vmatprep.subr.mxu1 %v7732_v20  ;;  %14506 = vmatprep.mubr.f32.mxu0 %v16254_v8 }
 0x2ac   : > { %14516 = vmatprep.subr.mxu0 %v7730_v18  ;;  %14496 = vmatpush3.msra.mxu1 %v7732_v20  ;;  %v8239_v36 = vand.u32 4294901760, %v8238_v32  ;;  %v16995_v20 = vpop.f32.mrf.mxu1 }
 0x2ad   : > { %14507 = vmatmul.mubr.f32.vlgmr.msra.gmra.mxu0 %v16478_v56  ;;  %14497 = vmatprep.subr.mxu1 %v7739_v22 }
 0x2ae   : > { %14517 = vmatpush3.msra.mxu0 %v7730_v18  ;;  %14498 = vmatpush3.msra.mxu1 %v7739_v22  ;;  %v16975_v18 = vpop.f32.mrf.mxu0  ;;  %v2499_v22 = vadd.f32 %v16817_v7, %v2192_v16  ;;  %v8240_v50 = vsub.f32 %v8238_v32, %v8239_v36  ;;  %v17005_v63 = vpop.f32.mrf.mxu1  ;;  %v17925_v16 = vld [vmem:[#allocation48_spill] sm:$0xff] }
 0x2af   : > { %14518 = vmatprep.subr.mxu0 %v7737_v11  ;;  %14499 = vmatprep.mubr.f32.mxu1 %v16245_v52 }
 0x2b0   : > { %14519 = vmatpush3.msra.mxu0 %v7737_v11  ;;  %14500 = vmatmul.mubr.f32.vlgmr.msra.gmra.mxu1 %v16468_v21  ;;  %v1845_v11 = vadd.f32 %v16432_v45, %v1473_v14  ;;  %v8233_v45 = vsub.f32 %v8231_v44, %v8232_v26  ;;  %v17011_v7 = vand.u32 4294901760, %v2499_v22 }
 0x2b1   : > { %14509 = vmatprep.subr.mxu1 %v16897_v23  ;;  %14520 = vmatprep.mubr.f32.mxu0 %v16245_v52 }
 0x2b2   : > { %14530 = vmatprep.subr.mxu0 %v16954_v40  ;;  %14510 = vmatpush3.msra.mxu1 %v16897_v23  ;;  %v2186_v35 = vadd.f32 %v16797_v0, %v1845_v11  ;;  %v8234_v29 = vand.u32 4294901760, %v8233_v45  ;;  %v8733_v45 = vsub.f32 %v2499_v22, %v17011_v7 }
 0x2b3   : > { %14521 = vmatmul.mubr.f32.vlgmr.msra.gmra.mxu0 %v16468_v21  ;;  %14511 = vmatprep.subr.mxu1 %v16902_v48 }
 0x2b4   : > { %14531 = vmatpush3.msra.mxu0 %v16954_v40  ;;  %14512 = vmatpush3.msra.mxu1 %v16902_v48  ;;  %v14074_v47 = vpop.f32.mrf.mxu0  ;;  %v2493_v0 = vadd.f32 %v16830_v4, %v2186_v35  ;;  %v1151_v35 = vadd.f32 %v17925_v16, %v17924_v54 }
 0x2b5   : > { %14532 = vmatprep.subr.mxu0 %v16959_v62  ;;  %14513 = vmatprep.mubr.f32.mxu1 %v16261_v2 }
 0x2b6   : > { %14533 = vmatpush3.msra.mxu0 %v16959_v62  ;;  %14514 = vmatmul.mubr.f32.vlgmr.msra.gmra.mxu1 %v16490_v6  ;;  %v16992_v51 = vpop.f32.mrf.mxu0  ;;  %v17014_v58 = vand.u32 4294901760, %v2493_v0 }
 0x2b7   : > { %14523 = vmatprep.subr.mxu1 %v16897_v23  ;;  %14534 = vmatprep.mubr.f32.mxu0 %v16275_v10 }
 0x2b8   : > { %14544 = vmatprep.subr.mxu0 %v8231_v44  ;;  %14524 = vmatpush3.msra.mxu1 %v16897_v23  ;;  %v14088_v15 = vpop.f32.mrf.mxu0 }
 0x2b9   : > { %14535 = vmatmul.mubr.f32.vlgmr.msra.gmra.mxu0 %v16508_v25  ;;  %14525 = vmatprep.subr.mxu1 %v16902_v48 }
 0x2ba   : > { %14545 = vmatpush3.msra.mxu0 %v8231_v44  ;;  %14526 = vmatpush3.msra.mxu1 %v16902_v48  ;;  %v17008_v23 = vpop.f32.mrf.mxu0  ;;  %v8241_v44 = vand.u32 4294901760, %v8240_v50 }
 0x2bb   : > { %14546 = vmatprep.subr.mxu0 %v8238_v32  ;;  %14527 = vmatprep.mubr.f32.mxu1 %v16245_v52 }
 0x2bc   : > { %14547 = vmatpush3.msra.mxu0 %v8238_v32  ;;  %14528 = vmatmul.mubr.f32.vlgmr.msra.gmra.mxu1 %v16468_v21 }
 0x2bd   : > { %14537 = vmatprep.subr.mxu1 %v8234_v29  ;;  %14548 = vmatprep.mubr.f32.mxu0 %v16254_v8  ;;  %v14081_v48 = vpop.f32.mrf.mxu1 }
 0x2be   : > { %14558 = vmatprep.subr.mxu0 %v8232_v26  ;;  %14538 = vmatpush3.msra.mxu1 %v8234_v29  ;;  %v2763_v4 = vadd.f32 %v14081_v48, %v14074_v47  ;;  %v17927_v29 = vld [vmem:[#allocation51_spill] sm:$0xff] }
 0x2bf   : > { %14549 = vmatmul.mubr.f32.vlgmr.msra.gmra.mxu0 %v16478_v56  ;;  %14539 = vmatprep.subr.mxu1 %v8241_v44  ;;  %v17017_v14 = vpop.f32.mrf.mxu1  ;;  %v14102_v32 = vpop.f32.mrf.mxu0  ;;  %v1487_v48 = vadd.f32 %v17927_v29, %v1151_v35 }
 0x2c0   : > { %14559 = vmatpush3.msra.mxu0 %v8232_v26  ;;  %14540 = vmatpush3.msra.mxu1 %v8241_v44  ;;  %v2846_v11 = vadd.f32 %v14088_v15, %v2763_v4  ;;  %v8740_v26 = vsub.f32 %v2493_v0, %v17014_v58 }
 0x2c1   : > { %14560 = vmatprep.subr.mxu0 %v8239_v36  ;;  %14541 = vmatprep.mubr.f32.mxu1 %v16245_v52  ;;  %v17023_v47 = vpop.f32.mrf.mxu0  ;;  %v1861_v0 = vadd.f32 %v16439_v53, %v1487_v48 }
 0x2c2   : > { %17926 = vst [vmem:[#allocation28_spill] sm:$0xff] %v17023_v47  ;;  %14561 = vmatpush3.msra.mxu0 %v8239_v36  ;;  %14542 = vmatmul.mubr.f32.vlgmr.msra.gmra.mxu1 %v16468_v21  ;;  %v14095_v50 = vpop.f32.mrf.mxu1  ;;  %v8734_v36 = vand.u32 4294901760, %v8733_v45  ;;  %v8741_v16 = vand.u32 4294901760, %v8740_v26 }
 0x2c3   : > { %14551 = vmatprep.subr.mxu1 %v16954_v40  ;;  %14562 = vmatprep.mubr.f32.mxu0 %v16245_v52  ;;  %v2929_v15 = vadd.f32 %v14095_v50, %v2846_v11  ;;  %v17929_v11 = vld [vmem:[#allocation52_spill] sm:$0xff]  ;;  %v2198_v50 = vadd.f32 %v16826_v31, %v1861_v0 }
 0x2c4   : > { %14572 = vmatprep.subr.mxu0 %v17011_v7  ;;  %14552 = vmatpush3.msra.mxu1 %v16954_v40  ;;  %v17032_v22 = vpop.f32.mrf.mxu1  ;;  %v2204_v54 = vadd.f32 %v16810_v43, %v17929_v11  ;;  %v8735_v53 = vsub.f32 %v8733_v45, %v8734_v36 }
 0x2c5   : > { %17928 = vst [vmem:[#allocation30_spill] sm:$0xff] %v17032_v22  ;;  %14563 = vmatmul.mubr.f32.vlgmr.msra.gmra.mxu0 %v16468_v21  ;;  %14553 = vmatprep.subr.mxu1 %v16959_v62  ;;  %v3012_v44 = vadd.f32 %v14102_v32, %v2929_v15  ;;  %v14116_v4 = vpop.f32.mrf.mxu0  ;;  %v8742_v15 = vsub.f32 %v8740_v26, %v8741_v16 }
 0x2c6   : > { %14573 = vmatpush3.msra.mxu0 %v17011_v7  ;;  %14554 = vmatpush3.msra.mxu1 %v16959_v62  ;;  %v2511_v48 = vadd.f32 %v16842_v9, %v2204_v54  ;;  %v2505_v0 = vadd.f32 %v16853_v38, %v2198_v50 }
 0x2c7   : > { %14574 = vmatprep.subr.mxu0 %v17014_v58  ;;  %14555 = vmatprep.mubr.f32.mxu1 %v16261_v2  ;;  %v3167_v35 = vpop.f32.mrf.mxu0  ;;  %v8743_v54 = vand.u32 4294901760, %v8742_v15 }
 0x2c8   : > { %14575 = vmatpush3.msra.mxu0 %v17014_v58  ;;  %14556 = vmatmul.mubr.f32.vlgmr.msra.gmra.mxu1 %v16490_v6  ;;  %v14109_v32 = vpop.f32.mrf.mxu1  ;;  %v17060_v11 = vand.u32 4294901760, %v2511_v48  ;;  %v17063_v38 = vand.u32 4294901760, %v2505_v0 }
 0x2c9   : > { %14565 = vmatprep.subr.mxu1 %v16954_v40  ;;  %14576 = vmatprep.mubr.f32.mxu0 %v16275_v10  ;;  %v17048_v29 = vadd.f32 %v14109_v32, %v3012_v44  ;;  %v8736_v44 = vand.u32 4294901760, %v8735_v53  ;;  %v17931_v53 = vld [vmem:[#allocation16_spill] sm:$0xff] }
 0x2ca   : > { %14586 = vmatprep.subr.mxu0 %v8733_v45  ;;  %14566 = vmatpush3.msra.mxu1 %v16954_v40  ;;  %v17051_v43 = vpop.f32.mrf.mxu1  ;;  %v9235_v22 = vsub.f32 %v2511_v48, %v17060_v11 }
 0x2cb   : > { %17930 = vst [vmem:[#allocation32_spill] sm:$0xff] %v17051_v43  ;;  %14577 = vmatmul.mubr.f32.vlgmr.msra.gmra.mxu0 %v16508_v25  ;;  %14567 = vmatprep.subr.mxu1 %v16959_v62  ;;  %v14130_v31 = vpop.f32.mrf.mxu0  ;;  %v17932_v43 = vld [vmem:[#allocation17_spill] sm:$0xff] }
 0x2cc   : > { %14587 = vmatpush3.msra.mxu0 %v8733_v45  ;;  %14568 = vmatpush3.msra.mxu1 %v16959_v62  ;;  %v1163_v47 = vadd.f32 %v17932_v43, %v17931_v53 }
 0x2cd   : > { %14588 = vmatprep.subr.mxu0 %v8740_v26  ;;  %14569 = vmatprep.mubr.f32.mxu1 %v16245_v52  ;;  %v3340_v40 = vpop.f32.mrf.mxu0 }
 0x2ce   : > { %14589 = vmatpush3.msra.mxu0 %v8740_v26  ;;  %14570 = vmatmul.mubr.f32.vlgmr.msra.gmra.mxu1 %v16468_v21  ;;  %v14123_v9 = vpop.f32.mrf.mxu1 }
 0x2cf   : > { %14579 = vmatprep.subr.mxu1 %v8736_v44  ;;  %14590 = vmatprep.mubr.f32.mxu0 %v16254_v8  ;;  %v3265_v45 = vadd.f32 %v14123_v9, %v14116_v4  ;;  %v17933_v9 = vld [vmem:[#allocation53_spill] sm:$0xff] }
 0x2d0   : > { %14600 = vmatprep.subr.mxu0 %v8734_v36  ;;  %14580 = vmatpush3.msra.mxu1 %v8736_v44  ;;  %v3258_v62 = vpop.f32.mrf.mxu1 }
 0x2d1   : > { %14591 = vmatmul.mubr.f32.vlgmr.msra.gmra.mxu0 %v16478_v56  ;;  %14581 = vmatprep.subr.mxu1 %v8743_v54  ;;  %v3259_v32 = vadd.f32 %v3258_v62, %v3167_v35  ;;  %v3348_v26 = vadd.f32 %v14130_v31, %v3265_v45  ;;  %v14144_v50 = vpop.f32.mrf.mxu0  ;;  %v1501_v35 = vadd.f32 %v17933_v9, %v1163_v47  ;;  %v17935_v45 = vld [vmem:[#allocation54_spill] sm:$0xff] }
 0x2d2   : > { %14601 = vmatpush3.msra.mxu0 %v8734_v36  ;;  %14582 = vmatpush3.msra.mxu1 %v8743_v54  ;;  %v9242_v31 = vsub.f32 %v2505_v0, %v17063_v38  ;;  %v17934_v0 = vld [vmem:[#allocation55_spill] sm:$0xff]  ;;  %v2216_v62 = vadd.f32 %v16837_v24, %v17935_v45 }
 0x2d3   : > { %14602 = vmatprep.subr.mxu0 %v8741_v16  ;;  %14583 = vmatprep.mubr.f32.mxu1 %v16245_v52  ;;  %v3341_v4 = vadd.f32 %v3340_v40, %v3259_v32  ;;  %v3507_v15 = vpop.f32.mrf.mxu0  ;;  %v1877_v54 = vadd.f32 %v17934_v0, %v1501_v35 }
 0x2d4   : > { %14603 = vmatpush3.msra.mxu0 %v8741_v16  ;;  %14584 = vmatmul.mubr.f32.vlgmr.msra.gmra.mxu1 %v16468_v21  ;;  %v14137_v44 = vpop.f32.mrf.mxu1  ;;  %v9236_v16 = vand.u32 4294901760, %v9235_v22  ;;  %v9243_v32 = vand.u32 4294901760, %v9242_v31 }
 0x2d5   : > { %14593 = vmatprep.subr.mxu1 %v17011_v7  ;;  %14604 = vmatprep.mubr.f32.mxu0 %v16245_v52  ;;  %v3431_v36 = vadd.f32 %v14137_v44, %v3348_v26 }
 0x2d6   : > { %14614 = vmatprep.subr.mxu0 %v17060_v11  ;;  %14594 = vmatpush3.msra.mxu1 %v17011_v7  ;;  %v3422_v43 = vpop.f32.mrf.mxu1  ;;  %v9237_v44 = vsub.f32 %v9235_v22, %v9236_v16  ;;  %v9244_v35 = vsub.f32 %v9242_v31, %v9243_v32 }
 0x2d7   : > { %14605 = vmatmul.mubr.f32.vlgmr.msra.gmra.mxu0 %v16468_v21  ;;  %14595 = vmatprep.subr.mxu1 %v17014_v58  ;;  %v3423_v48 = vadd.f32 %v3422_v43, %v3341_v4  ;;  %v3514_v40 = vadd.f32 %v14144_v50, %v3431_v36  ;;  %v14158_v47 = vpop.f32.mrf.mxu0  ;;  %v2210_v4 = vadd.f32 %v16848_v30, %v1877_v54 }
 0x2d8   : > { %14615 = vmatpush3.msra.mxu0 %v17060_v11  ;;  %14596 = vmatpush3.msra.mxu1 %v17014_v58  ;;  %v9245_v0 = vand.u32 4294901760, %v9244_v35 }
 0x2d9   : > { %14616 = vmatprep.subr.mxu0 %v17063_v38  ;;  %14597 = vmatprep.mubr.f32.mxu1 %v16261_v2  ;;  %v3508_v26 = vadd.f32 %v3507_v15, %v3423_v48  ;;  %v3669_v53 = vpop.f32.mrf.mxu0  ;;  %v2523_v15 = vadd.f32 %v16865_v46, %v2216_v62  ;;  %v2517_v43 = vadd.f32 %v16881_v59, %v2210_v4  ;;  %v17936_v62 = vld [vmem:[#allocation18_spill] sm:$0xff] }
 0x2da   : > { %14617 = vmatpush3.msra.mxu0 %v17063_v38  ;;  %14598 = vmatmul.mubr.f32.vlgmr.msra.gmra.mxu1 %v16490_v6  ;;  %v14151_v50 = vpop.f32.mrf.mxu1 }
 0x2db   : > { %14607 = vmatprep.subr.mxu1 %v17011_v7  ;;  %14618 = vmatprep.mubr.f32.mxu0 %v16275_v10  ;;  %v17091_v24 = vadd.f32 %v14151_v50, %v3514_v40  ;;  %v17103_v40 = vand.u32 4294901760, %v2523_v15  ;;  %v17106_v59 = vand.u32 4294901760, %v2517_v43 }
 0x2dc   : > { %14628 = vmatprep.subr.mxu0 %v9235_v22  ;;  %14608 = vmatpush3.msra.mxu1 %v17011_v7  ;;  %v3586_v9 = vpop.f32.mrf.mxu1  ;;  %v9238_v7 = vand.u32 4294901760, %v9237_v44 }
 0x2dd   : > { %14619 = vmatmul.mubr.f32.vlgmr.msra.gmra.mxu0 %v16508_v25  ;;  %14609 = vmatprep.subr.mxu1 %v17014_v58  ;;  %v17097_v36 = vadd.f32 %v3586_v9, %v3508_v26  ;;  %v14172_v30 = vpop.f32.mrf.mxu0  ;;  %v17937_v26 = vld [vmem:[#allocation19_spill] sm:$0xff]  ;;  %v9737_v4 = vsub.f32 %v2523_v15, %v17103_v40  ;;  %v9744_v35 = vsub.f32 %v2517_v43, %v17106_v59  ;;  %v17938_v43 = vld [vmem:[#allocation57_spill] sm:$0xff] }
 0x2de   : > { %14629 = vmatpush3.msra.mxu0 %v9235_v22  ;;  %14610 = vmatpush3.msra.mxu1 %v17014_v58  ;;  %v1175_v50 = vadd.f32 %v17937_v26, %v17936_v62 }
 0x2df   : > { %14630 = vmatprep.subr.mxu0 %v9242_v31  ;;  %14611 = vmatprep.mubr.f32.mxu1 %v16245_v52  ;;  %v3842_v48 = vpop.f32.mrf.mxu0 }
 0x2e0   : > { %14631 = vmatpush3.msra.mxu0 %v9242_v31  ;;  %14612 = vmatmul.mubr.f32.vlgmr.msra.gmra.mxu1 %v16468_v21  ;;  %v14165_v46 = vpop.f32.mrf.mxu1 }
 0x2e1   : > { %14621 = vmatprep.subr.mxu1 %v9238_v7  ;;  %14632 = vmatprep.mubr.f32.mxu0 %v16254_v8  ;;  %v3767_v22 = vadd.f32 %v14165_v46, %v14158_v47  ;;  %v17939_v46 = vld [vmem:[#allocation56_spill] sm:$0xff] }
 0x2e2   : > { %14642 = vmatprep.subr.mxu0 %v9236_v16  ;;  %14622 = vmatpush3.msra.mxu1 %v9238_v7  ;;  %v3760_v58 = vpop.f32.mrf.mxu1 }
 0x2e3   : > { %14633 = vmatmul.mubr.f32.vlgmr.msra.gmra.mxu0 %v16478_v56  ;;  %14623 = vmatprep.subr.mxu1 %v9245_v0  ;;  %v3761_v54 = vadd.f32 %v3760_v58, %v3669_v53  ;;  %v3850_v31 = vadd.f32 %v14172_v30, %v3767_v22  ;;  %v14186_v45 = vpop.f32.mrf.mxu0  ;;  %v1515_v53 = vadd.f32 %v16449_v55, %v1175_v50  ;;  %v9745_v22 = vand.u32 4294901760, %v9744_v35 }
 0x2e4   : > { %14643 = vmatpush3.msra.mxu0 %v9236_v16  ;;  %14624 = vmatpush3.msra.mxu1 %v9245_v0  ;;  %v2228_v0 = vadd.f32 %v16861_v27, %v17939_v46 }
 0x2e5   : > { %14644 = vmatprep.subr.mxu0 %v9243_v32  ;;  %14625 = vmatprep.mubr.f32.mxu1 %v16245_v52  ;;  %v3843_v47 = vadd.f32 %v3842_v48, %v3761_v54  ;;  %v4009_v44 = vpop.f32.mrf.mxu0  ;;  %v1893_v48 = vadd.f32 %v17938_v43, %v1515_v53  ;;  %v17940_v43 = vld [vmem:[#allocation20_spill] sm:$0xff] }
 0x2e6   : > { %14645 = vmatpush3.msra.mxu0 %v9243_v32  ;;  %14626 = vmatmul.mubr.f32.vlgmr.msra.gmra.mxu1 %v16468_v21  ;;  %v14179_v9 = vpop.f32.mrf.mxu1  ;;  %v9738_v32 = vand.u32 4294901760, %v9737_v4  ;;  %v2535_v50 = vadd.f32 %v16893_v49, %v2228_v0 }
 0x2e7   : > { %14635 = vmatprep.subr.mxu1 %v17060_v11  ;;  %14646 = vmatprep.mubr.f32.mxu0 %v16245_v52  ;;  %v3933_v16 = vadd.f32 %v14179_v9, %v3850_v31 }
 0x2e8   : > { %14656 = vmatprep.subr.mxu0 %v17103_v40  ;;  %14636 = vmatpush3.msra.mxu1 %v17060_v11  ;;  %v3924_v15 = vpop.f32.mrf.mxu1  ;;  %v9739_v62 = vsub.f32 %v9737_v4, %v9738_v32 }
 0x2e9   : > { %14647 = vmatmul.mubr.f32.vlgmr.msra.gmra.mxu0 %v16468_v21  ;;  %14637 = vmatprep.subr.mxu1 %v17063_v38  ;;  %v3925_v30 = vadd.f32 %v3924_v15, %v3843_v47  ;;  %v4016_v7 = vadd.f32 %v14186_v45, %v3933_v16  ;;  %v14200_v55 = vpop.f32.mrf.mxu0  ;;  %v2222_v45 = vadd.f32 %v16876_v37, %v1893_v48  ;;  %v17146_v16 = vand.u32 4294901760, %v2535_v50  ;;  %v17941_v48 = vld [vmem:[#allocation21_spill] sm:$0xff] }
 0x2ea   : > { %14657 = vmatpush3.msra.mxu0 %v17103_v40  ;;  %14638 = vmatpush3.msra.mxu1 %v17063_v38  ;;  %v9746_v47 = vsub.f32 %v9744_v35, %v9745_v22  ;;  %v1187_v46 = vadd.f32 %v17941_v48, %v17940_v43 }
 0x2eb   : > { %14658 = vmatprep.subr.mxu0 %v17106_v59  ;;  %14639 = vmatprep.mubr.f32.mxu1 %v16261_v2  ;;  %v4010_v58 = vadd.f32 %v4009_v44, %v3925_v30  ;;  %v4171_v54 = vpop.f32.mrf.mxu0  ;;  %v2529_v9 = vadd.f32 %v16904_v13, %v2222_v45  ;;  %v10239_v0 = vsub.f32 %v2535_v50, %v17146_v16 }
 0x2ec   : > { %14659 = vmatpush3.msra.mxu0 %v17106_v59  ;;  %14640 = vmatmul.mubr.f32.vlgmr.msra.gmra.mxu1 %v16490_v6  ;;  %v14193_v31 = vpop.f32.mrf.mxu1  ;;  %v9747_v15 = vand.u32 4294901760, %v9746_v47  ;;  %v17942_v47 = vld [vmem:[#allocation59_spill] sm:$0xff] }
 0x2ed   : > { %14649 = vmatprep.subr.mxu1 %v17060_v11  ;;  %14660 = vmatprep.mubr.f32.mxu0 %v16275_v10  ;;  %v17134_v27 = vadd.f32 %v14193_v31, %v4016_v7  ;;  %v17149_v13 = vand.u32 4294901760, %v2529_v9  ;;  %v1529_v31 = vadd.f32 %v16456_v12, %v1187_v46  ;;  %v10240_v12 = vand.u32 4294901760, %v10239_v0 }
 0x2ee   : > { %14670 = vmatprep.subr.mxu0 %v9737_v4  ;;  %14650 = vmatpush3.msra.mxu1 %v17060_v11  ;;  %v4088_v26 = vpop.f32.mrf.mxu1  ;;  %v9740_v11 = vand.u32 4294901760, %v9739_v62 }
 0x2ef   : > { %14661 = vmatmul.mubr.f32.vlgmr.msra.gmra.mxu0 %v16508_v25  ;;  %14651 = vmatprep.subr.mxu1 %v17063_v38  ;;  %v17140_v44 = vadd.f32 %v4088_v26, %v4010_v58  ;;  %v14214_v37 = vpop.f32.mrf.mxu0  ;;  %v10246_v45 = vsub.f32 %v2529_v9, %v17149_v13  ;;  %v17943_v9 = vld [vmem:[#allocation58_spill] sm:$0xff] }
 0x2f0   : > { %14671 = vmatpush3.msra.mxu0 %v9737_v4  ;;  %14652 = vmatpush3.msra.mxu1 %v17063_v38 }
 0x2f1   : > { %14672 = vmatprep.subr.mxu0 %v9744_v35  ;;  %14653 = vmatprep.mubr.f32.mxu1 %v16245_v52  ;;  %v4344_v53 = vpop.f32.mrf.mxu0 }
 0x2f2   : > { %14673 = vmatpush3.msra.mxu0 %v9744_v35  ;;  %14654 = vmatmul.mubr.f32.vlgmr.msra.gmra.mxu1 %v16468_v21  ;;  %v14207_v49 = vpop.f32.mrf.mxu1 }
 0x2f3   : > { %14663 = vmatprep.subr.mxu1 %v9740_v11  ;;  %14674 = vmatprep.mubr.f32.mxu0 %v16254_v8  ;;  %v4269_v4 = vadd.f32 %v14207_v49, %v14200_v55 }
 0x2f4   : > { %14684 = vmatprep.subr.mxu0 %v9738_v32  ;;  %14664 = vmatpush3.msra.mxu1 %v9740_v11  ;;  %v4262_v38 = vpop.f32.mrf.mxu1  ;;  %v2240_v11 = vadd.f32 %v16889_v33, %v17943_v9 }
 0x2f5   : > { %14675 = vmatmul.mubr.f32.vlgmr.msra.gmra.mxu0 %v16478_v56  ;;  %14665 = vmatprep.subr.mxu1 %v9747_v15  ;;  %v4263_v30 = vadd.f32 %v4262_v38, %v4171_v54  ;;  %v4352_v35 = vadd.f32 %v14214_v37, %v4269_v4  ;;  %v14228_v7 = vpop.f32.mrf.mxu0  ;;  %v1909_v37 = vadd.f32 %v17942_v47, %v1529_v31 }
 0x2f6   : > { %14685 = vmatpush3.msra.mxu0 %v9738_v32  ;;  %14666 = vmatpush3.msra.mxu1 %v9747_v15 }
 0x2f7   : > { %14686 = vmatprep.subr.mxu0 %v9745_v22  ;;  %14667 = vmatprep.mubr.f32.mxu1 %v16245_v52  ;;  %v4345_v55 = vadd.f32 %v4344_v53, %v4263_v30  ;;  %v4511_v58 = vpop.f32.mrf.mxu0  ;;  %v10247_v53 = vand.u32 4294901760, %v10246_v45  ;;  %v2234_v4 = vadd.f32 %v16900_v1, %v1909_v37  ;;  %v10241_v30 = vsub.f32 %v10239_v0, %v10240_v12 }
 0x2f8   : > { %14687 = vmatpush3.msra.mxu0 %v9745_v22  ;;  %14668 = vmatmul.mubr.f32.vlgmr.msra.gmra.mxu1 %v16468_v21  ;;  %v14221_v54 = vpop.f32.mrf.mxu1 }
 0x2f9   : > { %14677 = vmatprep.subr.mxu1 %v17103_v40  ;;  %14688 = vmatprep.mubr.f32.mxu0 %v16245_v52  ;;  %v4435_v32 = vadd.f32 %v14221_v54, %v4352_v35  ;;  %v10248_v1 = vsub.f32 %v10246_v45, %v10247_v53  ;;  %v2541_v46 = vadd.f32 %v16931_v28, %v2234_v4 }
 0x2fa   : > { %14698 = vmatprep.subr.mxu0 %v17146_v16  ;;  %14678 = vmatpush3.msra.mxu1 %v17103_v40  ;;  %v4426_v62 = vpop.f32.mrf.mxu1 }
 0x2fb   : > { %14689 = vmatmul.mubr.f32.vlgmr.msra.gmra.mxu0 %v16468_v21  ;;  %14679 = vmatprep.subr.mxu1 %v17106_v59  ;;  %v4427_v22 = vadd.f32 %v4426_v62, %v4345_v55  ;;  %v4518_v26 = vadd.f32 %v14228_v7, %v4435_v32  ;;  %v14242_v50 = vpop.f32.mrf.mxu0  ;;  %v2547_v7 = vadd.f32 %v16916_v41, %v2240_v11  ;;  %v10249_v31 = vand.u32 4294901760, %v10248_v1  ;;  %v17944_v62 = vld [vmem:[#allocation22_spill] sm:$0xff] }
 0x2fc   : > { %14699 = vmatpush3.msra.mxu0 %v17146_v16  ;;  %14680 = vmatpush3.msra.mxu1 %v17106_v59  ;;  %v17192_v28 = vand.u32 4294901760, %v2541_v46 }
 0x2fd   : > { %14700 = vmatprep.subr.mxu0 %v17149_v13  ;;  %14681 = vmatprep.mubr.f32.mxu1 %v16261_v2  ;;  %v4512_v49 = vadd.f32 %v4511_v58, %v4427_v22  ;;  %v4673_v15 = vpop.f32.mrf.mxu0  ;;  %v17189_v58 = vand.u32 4294901760, %v2547_v7  ;;  %v17945_v22 = vld [vmem:[#allocation23_spill] sm:$0xff] }
 0x2fe   : > { %14701 = vmatpush3.msra.mxu0 %v17149_v13  ;;  %14682 = vmatmul.mubr.f32.vlgmr.msra.gmra.mxu1 %v16490_v6  ;;  %v14235_v38 = vpop.f32.mrf.mxu1  ;;  %v10748_v11 = vsub.f32 %v2541_v46, %v17192_v28 }
 0x2ff   : > { %14691 = vmatprep.subr.mxu1 %v17103_v40  ;;  %14702 = vmatprep.mubr.f32.mxu0 %v16275_v10  ;;  %v17177_v33 = vadd.f32 %v14235_v38, %v4518_v26  ;;  %v1199_v26 = vadd.f32 %v17945_v22, %v17944_v62  ;;  %v10741_v47 = vsub.f32 %v2547_v7, %v17189_v58  ;;  %v17947_v7 = vld [vmem:[#allocation60_spill] sm:$0xff] }
 0x300   : > { %14712 = vmatprep.subr.mxu0 %v10239_v0  ;;  %14692 = vmatpush3.msra.mxu1 %v17103_v40  ;;  %v4590_v35 = vpop.f32.mrf.mxu1  ;;  %v10242_v40 = vand.u32 4294901760, %v10241_v30  ;;  %v17946_v30 = vld [vmem:[#allocation61_spill] sm:$0xff]  ;;  %v2252_v1 = vadd.f32 %v16911_v34, %v17947_v7 }
 0x301   : > { %14703 = vmatmul.mubr.f32.vlgmr.msra.gmra.mxu0 %v16508_v25  ;;  %14693 = vmatprep.subr.mxu1 %v17106_v59  ;;  %v17183_v43 = vadd.f32 %v4590_v35, %v4512_v49  ;;  %v14256_v48 = vpop.f32.mrf.mxu0  ;;  %v1543_v9 = vadd.f32 %v16464_v5, %v1199_v26  ;;  %v10742_v5 = vand.u32 4294901760, %v10741_v47 }
 0x302   : > { %14713 = vmatpush3.msra.mxu0 %v10239_v0  ;;  %14694 = vmatpush3.msra.mxu1 %v17106_v59 }
 0x303   : > { %14714 = vmatprep.subr.mxu0 %v10246_v45  ;;  %14695 = vmatprep.mubr.f32.mxu1 %v16245_v52  ;;  %v4846_v55 = vpop.f32.mrf.mxu0  ;;  %v1925_v35 = vadd.f32 %v17946_v30, %v1543_v9  ;;  %v10743_v34 = vsub.f32 %v10741_v47, %v10742_v5 }
 0x304   : > { %14715 = vmatpush3.msra.mxu0 %v10246_v45  ;;  %14696 = vmatmul.mubr.f32.vlgmr.msra.gmra.mxu1 %v16468_v21  ;;  %v14249_v41 = vpop.f32.mrf.mxu1 }
 0x305   : > { %14705 = vmatprep.subr.mxu1 %v10242_v40  ;;  %14716 = vmatprep.mubr.f32.mxu0 %v16254_v8  ;;  %v4771_v54 = vadd.f32 %v14249_v41, %v14242_v50  ;;  %v10744_v22 = vand.u32 4294901760, %v10743_v34 }
 0x306   : > { %14726 = vmatprep.subr.mxu0 %v10240_v12  ;;  %14706 = vmatpush3.msra.mxu1 %v10242_v40  ;;  %v4764_v59 = vpop.f32.mrf.mxu1 }
 0x307   : > { %14717 = vmatmul.mubr.f32.vlgmr.msra.gmra.mxu0 %v16478_v56  ;;  %14707 = vmatprep.subr.mxu1 %v10249_v31  ;;  %v4765_v0 = vadd.f32 %v4764_v59, %v4673_v15  ;;  %v4854_v45 = vadd.f32 %v14256_v48, %v4771_v54  ;;  %v14270_v32 = vpop.f32.mrf.mxu0  ;;  %v10749_v48 = vand.u32 4294901760, %v10748_v11  ;;  %v2559_v54 = vadd.f32 %v16944_v3, %v2252_v1 }
 0x308   : > { %14727 = vmatpush3.msra.mxu0 %v10240_v12  ;;  %14708 = vmatpush3.msra.mxu1 %v10249_v31 }
 0x309   : > { %14728 = vmatprep.subr.mxu0 %v10247_v53  ;;  %14709 = vmatprep.mubr.f32.mxu1 %v16245_v52  ;;  %v4847_v50 = vadd.f32 %v4846_v55, %v4765_v0  ;;  %v5013_v37 = vpop.f32.mrf.mxu0  ;;  %v2246_v55 = vadd.f32 %v16924_v39, %v1925_v35  ;;  %v10750_v59 = vsub.f32 %v10748_v11, %v10749_v48 }
 0x30a   : > { %14729 = vmatpush3.msra.mxu0 %v10247_v53  ;;  %14710 = vmatmul.mubr.f32.vlgmr.msra.gmra.mxu1 %v16468_v21  ;;  %v14263_v49 = vpop.f32.mrf.mxu1  ;;  %v17224_v39 = vmul.f32 %v17048_v29, %v17048_v29 }
 0x30b   : > { %14719 = vmatprep.subr.mxu1 %v17146_v16  ;;  %14730 = vmatprep.mubr.f32.mxu0 %v16245_v52  ;;  %v4937_v12 = vadd.f32 %v14263_v49, %v4854_v45 }
 0x30c   : > { %14740 = vmatprep.subr.mxu0 %v17189_v58  ;;  %14720 = vmatpush3.msra.mxu1 %v17146_v16  ;;  %v4928_v15 = vpop.f32.mrf.mxu1 }
 0x30d   : > { %14731 = vmatmul.mubr.f32.vlgmr.msra.gmra.mxu0 %v16468_v21  ;;  %14721 = vmatprep.subr.mxu1 %v17149_v13  ;;  %v4929_v4 = vadd.f32 %v4928_v15, %v4847_v50  ;;  %v5020_v53 = vadd.f32 %v14270_v32, %v4937_v12  ;;  %v14284_v38 = vpop.f32.mrf.mxu0  ;;  %v17948_v12 = vld [vmem:[#allocation24_spill] sm:$0xff]  ;;  %v17949_v15 = vld [vmem:[#allocation25_spill] sm:$0xff] }
 0x30e   : > { %14741 = vmatpush3.msra.mxu0 %v17189_v58  ;;  %14722 = vmatpush3.msra.mxu1 %v17149_v13 }
 0x30f   : > { %14742 = vmatprep.subr.mxu0 %v17192_v28  ;;  %14723 = vmatprep.mubr.f32.mxu1 %v16261_v2  ;;  %v5014_v46 = vadd.f32 %v5013_v37, %v4929_v4  ;;  %v5175_v40 = vpop.f32.mrf.mxu0  ;;  %v17243_v37 = vand.u32 4294901760, %v2559_v54  ;;  %v1211_v4 = vadd.f32 %v17949_v15, %v17948_v12 }
 0x310   : > { %14743 = vmatpush3.msra.mxu0 %v17192_v28  ;;  %14724 = vmatmul.mubr.f32.vlgmr.msra.gmra.mxu1 %v16490_v6  ;;  %v14277_v41 = vpop.f32.mrf.mxu1 }
 0x311   : > { %14733 = vmatprep.subr.mxu1 %v17146_v16  ;;  %14744 = vmatprep.mubr.f32.mxu0 %v16275_v10  ;;  %v5099_v31 = vadd.f32 %v14277_v41, %v5020_v53  ;;  %v11243_v30 = vsub.f32 %v2559_v54, %v17243_v37  ;;  %v17951_v54 = vld [vmem:[#allocation64_spill] sm:$0xff] }
 0x312   : > { %14754 = vmatprep.subr.mxu0 %v10741_v47  ;;  %14734 = vmatpush3.msra.mxu1 %v17146_v16  ;;  %v5092_v0 = vpop.f32.mrf.mxu1  ;;  %v2553_v16 = vadd.f32 %v16956_v19, %v2246_v55  ;;  %v10751_v19 = vand.u32 4294901760, %v10750_v59 }
 0x313   : > { %14745 = vmatmul.mubr.f32.vlgmr.msra.gmra.mxu0 %v16508_v25  ;;  %14735 = vmatprep.subr.mxu1 %v17149_v13  ;;  %v17228_v45 = vmul.f32 %v5099_v31, %v5099_v31  ;;  %v17231_v32 = vmul.f32 %v5099_v31, %v17048_v29  ;;  %v17233_v62 = vadd.f32 %v5092_v0, %v5014_v46  ;;  %v14298_v3 = vpop.f32.mrf.mxu0  ;;  %v11244_v41 = vand.u32 4294901760, %v11243_v30  ;;  %v17952_v0 = vld [vmem:[#allocation63_spill] sm:$0xff] }
 0x314   : > { %14755 = vmatpush3.msra.mxu0 %v10741_v47  ;;  %14736 = vmatpush3.msra.mxu1 %v17149_v13  ;;  %v17246_v13 = vand.u32 4294901760, %v2553_v16 }
 0x315   : > { %14756 = vmatprep.subr.mxu0 %v10748_v11  ;;  %14737 = vmatprep.mubr.f32.mxu1 %v16245_v52  ;;  %v17240_v26 = vadd.f32 %v17228_v45, %v17224_v39  ;;  %v5348_v50 = vpop.f32.mrf.mxu0 }
 0x316   : > { %14757 = vmatpush3.msra.mxu0 %v10748_v11  ;;  %14738 = vmatmul.mubr.f32.vlgmr.msra.gmra.mxu1 %v16468_v21  ;;  %v14291_v29 = vpop.f32.mrf.mxu1  ;;  %v11250_v46 = vsub.f32 %v2553_v16, %v17246_v13 }
 0x317   : > { %14747 = vmatprep.subr.mxu1 %v10744_v22  ;;  %14758 = vmatprep.mubr.f32.mxu0 %v16254_v8  ;;  %v5273_v47 = vadd.f32 %v14291_v29, %v14284_v38  ;;  %v17950_v38 = vld [vmem:[#allocation62_spill] sm:$0xff] }
 0x318   : > { %14768 = vmatprep.subr.mxu0 %v10742_v5  ;;  %14748 = vmatpush3.msra.mxu1 %v10744_v22  ;;  %v5266_v9 = vpop.f32.mrf.mxu1  ;;  %v1557_v1 = vadd.f32 %v17950_v38, %v1211_v4  ;;  %v17267_v16 = vand.u32 4294901760, %v11250_v46 }
 0x319   : > { %14759 = vmatmul.mubr.f32.vlgmr.msra.gmra.mxu0 %v16478_v56  ;;  %14749 = vmatprep.subr.mxu1 %v10751_v19  ;;  %v5267_v49 = vadd.f32 %v5266_v9, %v5175_v40  ;;  %v14312_v11 = vpop.f32.mrf.mxu0  ;;  %v5356_v53 = vadd.f32 %v14298_v3, %v5273_v47  ;;  %v2264_v3 = vadd.f32 %v16940_v61, %v17952_v0 }
 0x31a   : > { %14769 = vmatpush3.msra.mxu0 %v10742_v5  ;;  %14750 = vmatpush3.msra.mxu1 %v10751_v19  ;;  %v1941_v59 = vadd.f32 %v17951_v54, %v1557_v1  ;;  %v11245_v61 = vsub.f32 %v11243_v30, %v11244_v41  ;;  %v17954_v54 = vld [vmem:[#allocation27_spill] sm:$0xff] }
 0x31b   : > { %14770 = vmatprep.subr.mxu0 %v10749_v48  ;;  %14751 = vmatprep.mubr.f32.mxu1 %v16245_v52  ;;  %v5349_v35 = vadd.f32 %v5348_v50, %v5267_v49  ;;  %v5515_v7 = vpop.f32.mrf.mxu0  ;;  %v2571_v9 = vadd.f32 %v16967_v42, %v2264_v3  ;;  %v11252_v49 = vsub.f32 %v11250_v46, %v17267_v16 }
 0x31c   : > { %14771 = vmatpush3.msra.mxu0 %v10749_v48  ;;  %14752 = vmatmul.mubr.f32.vlgmr.msra.gmra.mxu1 %v16468_v21  ;;  %v14305_v40 = vpop.f32.mrf.mxu1  ;;  %v2258_v29 = vadd.f32 %v16951_v57, %v1941_v59  ;;  %v17281_v57 = vmul.f32 %v17091_v24, %v17091_v24 }
 0x31d   : > { %14761 = vmatprep.subr.mxu1 %v17189_v58  ;;  %14772 = vmatprep.mubr.f32.mxu0 %v16245_v52  ;;  %v5439_v5 = vadd.f32 %v14305_v40, %v5356_v53  ;;  %v17294_v53 = vmul.f32 %v17097_v36, %v17097_v36  ;;  %v11253_v1 = vand.u32 4294901760, %v11252_v49 }
 0x31e   : > { %14782 = vmatprep.subr.mxu0 %v17243_v37  ;;  %14762 = vmatpush3.msra.mxu1 %v17189_v58  ;;  %v5430_v55 = vpop.f32.mrf.mxu1 }
 0x31f   : > { %14773 = vmatmul.mubr.f32.vlgmr.msra.gmra.mxu0 %v16468_v21  ;;  %14763 = vmatprep.subr.mxu1 %v17192_v28  ;;  %v5431_v34 = vadd.f32 %v5430_v55, %v5349_v35  ;;  %v5522_v48 = vadd.f32 %v14312_v11, %v5439_v5  ;;  %v14326_v31 = vpop.f32.mrf.mxu0  ;;  %v11246_v35 = vand.u32 4294901760, %v11245_v61 }
 0x320   : > { %14783 = vmatpush3.msra.mxu0 %v17243_v37  ;;  %14764 = vmatpush3.msra.mxu1 %v17192_v28 }
 0x321   : > { %14784 = vmatprep.subr.mxu0 %v17246_v13  ;;  %14765 = vmatprep.mubr.f32.mxu1 %v16261_v2  ;;  %v5516_v22 = vadd.f32 %v5515_v7, %v5431_v34  ;;  %v5677_v50 = vpop.f32.mrf.mxu0 }
 0x322   : > { %14785 = vmatpush3.msra.mxu0 %v17246_v13  ;;  %14766 = vmatmul.mubr.f32.vlgmr.msra.gmra.mxu1 %v16490_v6  ;;  %v14319_v19 = vpop.f32.mrf.mxu1 }
 0x323   : > { %14775 = vmatprep.subr.mxu1 %v17189_v58  ;;  %14786 = vmatprep.mubr.f32.mxu0 %v16275_v10  ;;  %v5601_v47 = vadd.f32 %v14319_v19, %v5522_v48  ;;  %v17953_v48 = vld [vmem:[#allocation26_spill] sm:$0xff] }
 0x324   : > { %14796 = vmatprep.subr.mxu0 %v11243_v30  ;;  %14776 = vmatpush3.msra.mxu1 %v17189_v58  ;;  %v5594_v11 = vpop.f32.mrf.mxu1  ;;  %v2565_v58 = vadd.f32 %v16979_v60, %v2258_v29  ;;  %v1223_v59 = vadd.f32 %v17954_v54, %v17953_v48  ;;  %v17955_v29 = vld [vmem:[#allocation65_spill] sm:$0xff] }
 0x325   : > { %14787 = vmatmul.mubr.f32.vlgmr.msra.gmra.mxu0 %v16508_v25  ;;  %14777 = vmatprep.subr.mxu1 %v17192_v28  ;;  %v17285_v12 = vmul.f32 %v5601_v47, %v5601_v47  ;;  %v17288_v15 = vmul.f32 %v5601_v47, %v17091_v24  ;;  %v5595_v42 = vadd.f32 %v5594_v11, %v5516_v22  ;;  %v14340_v4 = vpop.f32.mrf.mxu0 }
 0x326   : > { %14797 = vmatpush3.msra.mxu0 %v11243_v30  ;;  %14778 = vmatpush3.msra.mxu1 %v17192_v28  ;;  %v17307_v30 = vand.u32 4294901760, %v2571_v9  ;;  %v17314_v5 = vand.u32 4294901760, %v2565_v58  ;;  %v1571_v19 = vadd.f32 %v17955_v29, %v1223_v59 }
 0x327   : > { %14798 = vmatprep.subr.mxu0 %v11250_v46  ;;  %14779 = vmatprep.mubr.f32.mxu1 %v16245_v52  ;;  %v17299_v7 = vadd.f32 %v17285_v12, %v17281_v57  ;;  %v17301_v24 = vmul.f32 %v5595_v42, %v5595_v42  ;;  %v17304_v38 = vmul.f32 %v5595_v42, %v17097_v36  ;;  %v5850_v60 = vpop.f32.mrf.mxu0  ;;  %v17956_v42 = vld [vmem:[#allocation67_spill] sm:$0xff] }
 0x328   : > { %14799 = vmatpush3.msra.mxu0 %v11250_v46  ;;  %14780 = vmatmul.mubr.f32.vlgmr.msra.gmra.mxu1 %v16468_v21  ;;  %v14333_v28 = vpop.f32.mrf.mxu1  ;;  %v11745_v3 = vsub.f32 %v2571_v9, %v17307_v30  ;;  %v11752_v61 = vsub.f32 %v2565_v58, %v17314_v5  ;;  %v17957_v58 = vld [vmem:[#allocation66_spill] sm:$0xff] }
 0x329   : > { %14789 = vmatprep.subr.mxu1 %v11246_v35  ;;  %14800 = vmatprep.mubr.f32.mxu0 %v16254_v8  ;;  %v17312_v40 = vadd.f32 %v17301_v24, %v17294_v53  ;;  %v5775_v36 = vadd.f32 %v14333_v28, %v14326_v31 }
 0x32a   : > { %14810 = vmatprep.subr.mxu0 %v11244_v41  ;;  %14790 = vmatpush3.msra.mxu1 %v11246_v35  ;;  %v5768_v55 = vpop.f32.mrf.mxu1  ;;  %v11746_v9 = vand.u32 4294901760, %v11745_v3  ;;  %v2276_v35 = vadd.f32 %v16962_v17, %v17957_v58 }
 0x32b   : > { %14801 = vmatmul.mubr.f32.vlgmr.msra.gmra.mxu0 %v16478_v56  ;;  %14791 = vmatprep.subr.mxu1 %v11253_v1  ;;  %v5769_v46 = vadd.f32 %v5768_v55, %v5677_v50  ;;  %v14354_v34 = vpop.f32.mrf.mxu0  ;;  %v5858_v0 = vadd.f32 %v14340_v4, %v5775_v36  ;;  %v1957_v4 = vadd.f32 %v17956_v42, %v1571_v19 }
 0x32c   : > { %14811 = vmatpush3.msra.mxu0 %v11244_v41  ;;  %14792 = vmatpush3.msra.mxu1 %v11253_v1  ;;  %v11747_v17 = vsub.f32 %v11745_v3, %v11746_v9 }
 0x32d   : > { %14812 = vmatprep.subr.mxu0 %v17267_v16  ;;  %14793 = vmatprep.mubr.f32.mxu1 %v16245_v52  ;;  %v5851_v22 = vadd.f32 %v5850_v60, %v5769_v46  ;;  %v6017_v31 = vpop.f32.mrf.mxu0  ;;  %v11753_v60 = vand.u32 4294901760, %v11752_v61  ;;  %v2270_v36 = vadd.f32 %v16975_v18, %v1957_v4  ;;  %v17348_v18 = vmul.f32 %v17134_v27, %v17134_v27 }
 0x32e   : > { %14813 = vmatpush3.msra.mxu0 %v17267_v16  ;;  %14794 = vmatmul.mubr.f32.vlgmr.msra.gmra.mxu1 %v16468_v21  ;;  %v14347_v50 = vpop.f32.mrf.mxu1  ;;  %v11748_v29 = vand.u32 4294901760, %v11747_v17 }
 0x32f   : > { %14803 = vmatprep.subr.mxu1 %v17243_v37  ;;  %14814 = vmatprep.mubr.f32.mxu0 %v16245_v52  ;;  %v5941_v41 = vadd.f32 %v14347_v50, %v5858_v0  ;;  %v11754_v48 = vsub.f32 %v11752_v61, %v11753_v60 }
 0x330   : > { %14824 = vmatprep.subr.mxu0 %v17307_v30  ;;  %14804 = vmatpush3.msra.mxu1 %v17243_v37  ;;  %v5932_v47 = vpop.f32.mrf.mxu1 }
 0x331   : > { %14815 = vmatmul.mubr.f32.vlgmr.msra.gmra.mxu0 %v16468_v21  ;;  %14805 = vmatprep.subr.mxu1 %v17246_v13  ;;  %v5933_v49 = vadd.f32 %v5932_v47, %v5851_v22  ;;  %v6024_v16 = vadd.f32 %v14354_v34, %v5941_v41  ;;  %v14368_v11 = vpop.f32.mrf.mxu0  ;;  %v2583_v34 = vadd.f32 %v16995_v20, %v2276_v35  ;;  %v11755_v41 = vand.u32 4294901760, %v11754_v48 }
 0x332   : > { %14825 = vmatpush3.msra.mxu0 %v17307_v30  ;;  %14806 = vmatpush3.msra.mxu1 %v17246_v13 }
 0x333   : > { %14826 = vmatprep.subr.mxu0 %v17314_v5  ;;  %14807 = vmatprep.mubr.f32.mxu1 %v16261_v2  ;;  %v6018_v28 = vadd.f32 %v6017_v31, %v5933_v49  ;;  %v6179_v1 = vpop.f32.mrf.mxu0  ;;  %v2577_v31 = vadd.f32 %v17005_v63, %v2270_v36 }
 0x334   : > { %14827 = vmatpush3.msra.mxu0 %v17314_v5  ;;  %14808 = vmatmul.mubr.f32.vlgmr.msra.gmra.mxu1 %v16490_v6  ;;  %v14361_v55 = vpop.f32.mrf.mxu1 }
 0x335   : > { %14817 = vmatprep.subr.mxu1 %v17243_v37  ;;  %14828 = vmatprep.mubr.f32.mxu0 %v16275_v10  ;;  %v6103_v46 = vadd.f32 %v14361_v55, %v6024_v16  ;;  %v17381_v49 = vand.u32 4294901760, %v2577_v31 }
 0x336   : > { %14838 = vmatprep.subr.mxu0 %v11745_v3  ;;  %14818 = vmatpush3.msra.mxu1 %v17243_v37  ;;  %v6096_v54 = vpop.f32.mrf.mxu1  ;;  %v17361_v37 = vmul.f32 %v17140_v44, %v17140_v44 }
 0x337   : > { %14829 = vmatmul.mubr.f32.vlgmr.msra.gmra.mxu0 %v16508_v25  ;;  %14819 = vmatprep.subr.mxu1 %v17246_v13  ;;  %v17352_v59 = vmul.f32 %v6103_v46, %v6103_v46  ;;  %v17355_v0 = vmul.f32 %v6103_v46, %v17134_v27  ;;  %v6097_v22 = vadd.f32 %v6096_v54, %v6018_v28  ;;  %v14382_v20 = vpop.f32.mrf.mxu0 }
 0x338   : > { %14839 = vmatpush3.msra.mxu0 %v11745_v3  ;;  %14820 = vmatpush3.msra.mxu1 %v17246_v13  ;;  %v17374_v3 = vand.u32 4294901760, %v2583_v34  ;;  %v12254_v36 = vsub.f32 %v2577_v31, %v17381_v49 }
 0x339   : > { %14840 = vmatprep.subr.mxu0 %v11752_v61  ;;  %14821 = vmatprep.mubr.f32.mxu1 %v16245_v52  ;;  %v17366_v19 = vadd.f32 %v17352_v59, %v17348_v18  ;;  %v17368_v27 = vmul.f32 %v6097_v22, %v6097_v22  ;;  %v17371_v50 = vmul.f32 %v6097_v22, %v17140_v44  ;;  %v6352_v63 = vpop.f32.mrf.mxu0 }
 0x33a   : > { %14841 = vmatpush3.msra.mxu0 %v11752_v61  ;;  %14822 = vmatmul.mubr.f32.vlgmr.msra.gmra.mxu1 %v16468_v21  ;;  %v14375_v13 = vpop.f32.mrf.mxu1  ;;  %v12247_v58 = vsub.f32 %v2583_v34, %v17374_v3  ;;  %v12255_v34 = vand.u32 4294901760, %v12254_v36 }
 0x33b   : > { %14831 = vmatprep.subr.mxu1 %v11748_v29  ;;  %14842 = vmatprep.mubr.f32.mxu0 %v16254_v8  ;;  %v17379_v47 = vadd.f32 %v17368_v27, %v17361_v37  ;;  %v6277_v44 = vadd.f32 %v14375_v13, %v14368_v11 }
 0x33c   : > { %14852 = vmatprep.subr.mxu0 %v11746_v9  ;;  %14832 = vmatpush3.msra.mxu1 %v11748_v29  ;;  %v6270_v16 = vpop.f32.mrf.mxu1  ;;  %v12248_v55 = vand.u32 4294901760, %v12247_v58  ;;  %v12256_v29 = vsub.f32 %v12254_v36, %v12255_v34 }
 0x33d   : > { %14843 = vmatmul.mubr.f32.vlgmr.msra.gmra.mxu0 %v16478_v56  ;;  %14833 = vmatprep.subr.mxu1 %v11755_v41  ;;  %v6271_v61 = vadd.f32 %v6270_v16, %v6179_v1  ;;  %v14396_v42 = vpop.f32.mrf.mxu0  ;;  %v6360_v4 = vadd.f32 %v14382_v20, %v6277_v44 }
 0x33e   : > { %14853 = vmatpush3.msra.mxu0 %v11746_v9  ;;  %14834 = vmatpush3.msra.mxu1 %v11755_v41  ;;  %v12249_v20 = vsub.f32 %v12247_v58, %v12248_v55 }
 0x33f   : > { %14854 = vmatprep.subr.mxu0 %v11753_v60  ;;  %14835 = vmatprep.mubr.f32.mxu1 %v16245_v52  ;;  %v6353_v35 = vadd.f32 %v6352_v63, %v6271_v61  ;;  %v6519_v28 = vpop.f32.mrf.mxu0  ;;  %v17405_v63 = vmul.f32 %v17177_v33, %v17177_v33 }
 0x340   : > { %14855 = vmatpush3.msra.mxu0 %v11753_v60  ;;  %14836 = vmatmul.mubr.f32.vlgmr.msra.gmra.mxu1 %v16468_v21  ;;  %v14389_v11 = vpop.f32.mrf.mxu1 }
 0x341   : > { %14845 = vmatprep.subr.mxu1 %v17307_v30  ;;  %14856 = vmatprep.mubr.f32.mxu0 %v16245_v52  ;;  %v6443_v9 = vadd.f32 %v14389_v11, %v6360_v4 }
 0x342   : > { %14866 = vmatprep.subr.mxu0 %v17374_v3  ;;  %14846 = vmatpush3.msra.mxu1 %v17307_v30  ;;  %v6434_v1 = vpop.f32.mrf.mxu1 }
 0x343   : > { %14857 = vmatmul.mubr.f32.vlgmr.msra.gmra.mxu0 %v16468_v21  ;;  %14847 = vmatprep.subr.mxu1 %v17314_v5  ;;  %v6435_v17 = vadd.f32 %v6434_v1, %v6353_v35  ;;  %v6526_v60 = vadd.f32 %v14396_v42, %v6443_v9  ;;  %v14410_v46 = vpop.f32.mrf.mxu0 }
 0x344   : > { %14867 = vmatpush3.msra.mxu0 %v17374_v3  ;;  %14848 = vmatpush3.msra.mxu1 %v17314_v5 }
 0x345   : > { %14868 = vmatprep.subr.mxu0 %v17381_v49  ;;  %14849 = vmatprep.mubr.f32.mxu1 %v16261_v2  ;;  %v6520_v48 = vadd.f32 %v6519_v28, %v6435_v17  ;;  %v6681_v54 = vpop.f32.mrf.mxu0 }
 0x346   : > { %14869 = vmatpush3.msra.mxu0 %v17381_v49  ;;  %14850 = vmatmul.mubr.f32.vlgmr.msra.gmra.mxu1 %v16490_v6  ;;  %v14403_v22 = vpop.f32.mrf.mxu1 }
 0x347   : > { %14859 = vmatprep.subr.mxu1 %v17307_v30  ;;  %14870 = vmatprep.mubr.f32.mxu0 %v16275_v10  ;;  %v6605_v31 = vadd.f32 %v14403_v22, %v6526_v60 }
 0x348   : > { %14880 = vmatprep.subr.mxu0 %v12247_v58  ;;  %14860 = vmatpush3.msra.mxu1 %v17307_v30  ;;  %v6598_v13 = vpop.f32.mrf.mxu1  ;;  %v17417_v30 = vmul.f32 %v17183_v43, %v17183_v43 }
 0x349   : > { %14871 = vmatmul.mubr.f32.vlgmr.msra.gmra.mxu0 %v16508_v25  ;;  %14861 = vmatprep.subr.mxu1 %v17314_v5  ;;  %v17409_v41 = vmul.f32 %v6605_v31, %v6605_v31  ;;  %v17412_v44 = vmul.f32 %v6605_v31, %v17177_v33  ;;  %v6599_v10 = vadd.f32 %v6598_v13, %v6520_v48  ;;  %v14424_v16 = vpop.f32.mrf.mxu0  ;;  %v12250_v25 = vand.u32 4294901760, %v12249_v20 }
 0x34a   : > { %14881 = vmatpush3.msra.mxu0 %v12247_v58  ;;  %14862 = vmatpush3.msra.mxu1 %v17314_v5  ;;  %v12257_v58 = vand.u32 4294901760, %v12256_v29 }
 0x34b   : > { %14882 = vmatprep.subr.mxu0 %v12254_v36  ;;  %14863 = vmatprep.mubr.f32.mxu1 %v16245_v52  ;;  %v17422_v61 = vadd.f32 %v17409_v41, %v17405_v63  ;;  %v17424_v42 = vmul.f32 %v6599_v10, %v6599_v10  ;;  %v17427_v33 = vmul.f32 %v6599_v10, %v17183_v43  ;;  %v6854_v4 = vpop.f32.mrf.mxu0 }
 0x34c   : > { %14883 = vmatpush3.msra.mxu0 %v12254_v36  ;;  %14864 = vmatmul.mubr.f32.vlgmr.msra.gmra.mxu1 %v16468_v21  ;;  %v14417_v5 = vpop.f32.mrf.mxu1 }
 0x34d   : > { %14873 = vmatprep.subr.mxu1 %v12250_v25  ;;  %14884 = vmatprep.mubr.f32.mxu0 %v16254_v8  ;;  %v17433_v35 = vadd.f32 %v17424_v42, %v17417_v30  ;;  %v6779_v28 = vadd.f32 %v14417_v5, %v14410_v46 }
 0x34e   : > { %14894 = vmatprep.subr.mxu0 %v12248_v55  ;;  %14874 = vmatpush3.msra.mxu1 %v12250_v25  ;;  %v6772_v11 = vpop.f32.mrf.mxu1 }
 0x34f   : > { %14885 = vmatmul.mubr.f32.vlgmr.msra.gmra.mxu0 %v16478_v56  ;;  %14875 = vmatprep.subr.mxu1 %v12257_v58  ;;  %v6773_v43 = vadd.f32 %v6772_v11, %v6681_v54  ;;  %v14438_v36 = vpop.f32.mrf.mxu0  ;;  %v6862_v9 = vadd.f32 %v14424_v16, %v6779_v28 }
 0x350   : > { %14895 = vmatpush3.msra.mxu0 %v12248_v55  ;;  %14876 = vmatpush3.msra.mxu1 %v12257_v58 }
 0x351   : > { %14896 = vmatprep.subr.mxu0 %v12255_v34  ;;  %14877 = vmatprep.mubr.f32.mxu1 %v16245_v52  ;;  %v6855_v8 = vadd.f32 %v6854_v4, %v6773_v43  ;;  %v7021_v1 = vpop.f32.mrf.mxu0 }
 0x352   : > { %14897 = vmatpush3.msra.mxu0 %v12255_v34  ;;  %14878 = vmatmul.mubr.f32.vlgmr.msra.gmra.mxu1 %v16468_v21  ;;  %v14431_v17 = vpop.f32.mrf.mxu1 }
 0x353   : > { %14887 = vmatprep.subr.mxu1 %v17374_v3  ;;  %14891 = vmatprep.mubr.f32.mxu1 %v16261_v2  ;;  %v6945_v56 = vadd.f32 %v14431_v17, %v6862_v9 }
 0x354   : > { %14888 = vmatpush3.msra.mxu1 %v17374_v3  ;;  %14898 = vmatprep.mubr.f32.mxu0 %v16245_v52  ;;  %v6936_v55 = vpop.f32.mrf.mxu1 }
 0x355   : > { %14889 = vmatprep.subr.mxu1 %v17381_v49  ;;  %14899 = vmatmul.mubr.f32.vlgmr.msra.gmra.mxu0 %v16468_v21  ;;  %v6937_v60 = vadd.f32 %v6936_v55, %v6855_v8  ;;  %v7028_v46 = vadd.f32 %v14438_v36, %v6945_v56  ;;  %v14452_v34 = vpop.f32.mrf.mxu0 }
 0x356   : > { %14890 = vmatpush3.msra.mxu1 %v17381_v49 }
 0x357   : > { %14892 = vmatmul.mubr.f32.vlgmr.msra.gmra.mxu1 %v16490_v6  ;;  %14901 = vmatprep.subr.mxu1 %v17374_v3  ;;  %v7022_v2 = vadd.f32 %v7021_v1, %v6937_v60  ;;  %v7183_v48 = vpop.f32.mrf.mxu0 }
 0x358   : > { %14902 = vmatpush3.msra.mxu1 %v17374_v3  ;;  %14905 = vmatprep.mubr.f32.mxu1 %v16245_v52  ;;  %v14445_v54 = vpop.f32.mrf.mxu1 }
 0x359   : > { %14903 = vmatprep.subr.mxu1 %v17381_v49  ;;  %v17450_v22 = vadd.f32 %v14445_v54, %v7028_v46 }
 0x35a   : > { %14904 = vmatpush3.msra.mxu1 %v17381_v49  ;;  %v7100_v20 = vpop.f32.mrf.mxu1 }
 0x35b   : > { %14906 = vmatmul.mubr.f32.vlgmr.msra.gmra.mxu1 %v16468_v21  ;;  %v12657_v6 = vsub.f32 %v17450_v22, %v17224_v39  ;;  %v17456_v31 = vadd.f32 %v7100_v20, %v7022_v2  ;;  %v14466_v29 = vpop.f32.mrf.mxu0 }
 0x35d   : > { %v7356_v13 = vpop.f32.mrf.mxu0 }
 0x35e   : > { %v14459_v3 = vpop.f32.mrf.mxu1 }
 0x35f   : > { %v7281_v10 = vadd.f32 %v14459_v3, %v14452_v34 }
 0x360   : > { %v7274_v52 = vpop.f32.mrf.mxu1 }
 0x361   : > { %v7275_v16 = vadd.f32 %v7274_v52, %v7183_v48  ;;  %v7364_v25 = vadd.f32 %v14466_v29, %v7281_v10  ;;  %v14480_v4 = vpop.f32.mrf.mxu0 }
 0x363   : > { %v7357_v5 = vadd.f32 %v7356_v13, %v7275_v16  ;;  %v7523_v58 = vpop.f32.mrf.mxu0 }
 0x364   : > { %v14473_v28 = vpop.f32.mrf.mxu1 }
 0x365   : > { %v7447_v49 = vadd.f32 %v14473_v28, %v7364_v25 }
 0x366   : > { %v7438_v11 = vpop.f32.mrf.mxu1 }
 0x367   : > { %v7439_v43 = vadd.f32 %v7438_v11, %v7357_v5  ;;  %v7530_v21 = vadd.f32 %v14480_v4, %v7447_v49  ;;  %v14494_v36 = vpop.f32.mrf.mxu0 }
 0x369   : > { %v7524_v9 = vadd.f32 %v7523_v58, %v7439_v43  ;;  %v7685_v8 = vpop.f32.mrf.mxu0 }
 0x36a   : > { %v14487_v1 = vpop.f32.mrf.mxu1 }
 0x36b   : > { %v17458_v17 = vadd.f32 %v14487_v1, %v7530_v21 }
 0x36c   : > { %v7602_v56 = vpop.f32.mrf.mxu1 }
 0x36d   : > { %v12659_v55 = vsub.f32 %v17458_v17, %v17281_v57  ;;  %v17462_v60 = vadd.f32 %v7602_v56, %v7524_v9  ;;  %v14508_v46 = vpop.f32.mrf.mxu0 }
 0x36f   : > { %v7858_v2 = vpop.f32.mrf.mxu0 }
 0x370   : > { %v14501_v48 = vpop.f32.mrf.mxu1 }
 0x371   : > { %v7783_v54 = vadd.f32 %v14501_v48, %v14494_v36 }
 0x372   : > { %v7776_v20 = vpop.f32.mrf.mxu1 }
 0x373   : > { %v7777_v29 = vadd.f32 %v7776_v20, %v7685_v8  ;;  %v7866_v13 = vadd.f32 %v14508_v46, %v7783_v54  ;;  %v14522_v3 = vpop.f32.mrf.mxu0 }
 0x375   : > { %v7859_v10 = vadd.f32 %v7858_v2, %v7777_v29  ;;  %v8025_v52 = vpop.f32.mrf.mxu0 }
 0x376   : > { %v14515_v16 = vpop.f32.mrf.mxu1 }
 0x377   : > { %v7949_v25 = vadd.f32 %v14515_v16, %v7866_v13 }
 0x378   : > { %v7940_v4 = vpop.f32.mrf.mxu1 }
 0x379   : > { %v7941_v5 = vadd.f32 %v7940_v4, %v7859_v10  ;;  %v8032_v58 = vadd.f32 %v14522_v3, %v7949_v25  ;;  %v14536_v28 = vpop.f32.mrf.mxu0 }
 0x37b   : > { %v8026_v49 = vadd.f32 %v8025_v52, %v7941_v5  ;;  %v8187_v11 = vpop.f32.mrf.mxu0 }
 0x37c   : > { %v14529_v43 = vpop.f32.mrf.mxu1 }
 0x37d   : > { %v17466_v21 = vadd.f32 %v14529_v43, %v8032_v58 }
 0x37e   : > { %v8104_v9 = vpop.f32.mrf.mxu1 }
 0x37f   : > { %v17470_v8 = vadd.f32 %v8104_v9, %v8026_v49  ;;  %v14550_v1 = vpop.f32.mrf.mxu0  ;;  %v2757_v9 = vadd.f32 %v17017_v14, %v16992_v51 }
 0x381   : > { %v8360_v46 = vpop.f32.mrf.mxu0 }
 0x382   : > { %v14543_v2 = vpop.f32.mrf.mxu1 }
 0x383   : > { %v8285_v48 = vadd.f32 %v14543_v2, %v14536_v28  ;;  %v2839_v2 = vadd.f32 %v17008_v23, %v2757_v9 }
 0x384   : > { %v8278_v54 = vpop.f32.mrf.mxu1 }
 0x385   : > { %v8279_v20 = vadd.f32 %v8278_v54, %v8187_v11  ;;  %v8368_v29 = vadd.f32 %v14550_v1, %v8285_v48  ;;  %v14564_v13 = vpop.f32.mrf.mxu0  ;;  %v17960_v48 = vld [vmem:[#allocation32_spill] sm:$0xff] }
 0x387   : > { %v8361_v3 = vadd.f32 %v8360_v46, %v8279_v20  ;;  %v8527_v10 = vpop.f32.mrf.mxu0 }
 0x388   : > { %v14557_v52 = vpop.f32.mrf.mxu1 }
 0x389   : > { %v8451_v16 = vadd.f32 %v14557_v52, %v8368_v29 }
 0x38a   : > { %v8442_v25 = vpop.f32.mrf.mxu1 }
 0x38b   : > { %v8443_v4 = vadd.f32 %v8442_v25, %v8361_v3  ;;  %v8534_v5 = vadd.f32 %v14564_v13, %v8451_v16  ;;  %v14578_v58 = vpop.f32.mrf.mxu0  ;;  %v17958_v13 = vld [vmem:[#allocation30_spill] sm:$0xff]  ;;  %v17959_v25 = vld [vmem:[#allocation28_spill] sm:$0xff] }
 0x38c   : > { %v2921_v51 = vadd.f32 %v17958_v13, %v2839_v2 }
 0x38d   : > { %v8528_v49 = vadd.f32 %v8527_v10, %v8443_v4  ;;  %v8689_v43 = vpop.f32.mrf.mxu0 }
 0x38e   : > { %v14571_v56 = vpop.f32.mrf.mxu1  ;;  %v3006_v4 = vadd.f32 %v17959_v25, %v2921_v51  ;;  %v12729_v25 = vadd.f32 0.0001, %v17240_v26 }
 0x38f   : > { %v17476_v36 = vadd.f32 %v14571_v56, %v8534_v5 }
 0x390   : > { %v8606_v28 = vpop.f32.mrf.mxu1  ;;  %v17488_v34 = vadd.f32 %v17960_v48, %v3006_v4 }
 0x391   : > { %v17480_v1 = vadd.f32 %v8606_v28, %v8528_v49  ;;  %v14592_v46 = vpop.f32.mrf.mxu0 }
 0x393   : > { %v8862_v54 = vpop.f32.mrf.mxu0 }
 0x394   : > { %v14585_v20 = vpop.f32.mrf.mxu1 }
 0x395   : > { %v8787_v29 = vadd.f32 %v14585_v20, %v14578_v58 }
 0x396   : > { %v8780_v14 = vpop.f32.mrf.mxu1 }
 0x397   : > { %v8781_v56 = vadd.f32 %v8780_v14, %v8689_v43  ;;  %v8870_v3 = vadd.f32 %v14592_v46, %v8787_v29  ;;  %v14606_v10 = vpop.f32.mrf.mxu0  ;;  %v12640_v43 = vmul.f32 %v17233_v62, %v17233_v62 }
 0x399   : > { %v8863_v52 = vadd.f32 %v8862_v54, %v8781_v56  ;;  %v9029_v16 = vpop.f32.mrf.mxu0  ;;  %v12632_v54 = vmul.f32 %v17488_v34, %v17488_v34 }
 0x39a   : > { %v14599_v5 = vpop.f32.mrf.mxu1 }
 0x39b   : > { %v8953_v49 = vadd.f32 %v14599_v5, %v8870_v3  ;;  %v12720_v56 = vadd.f32 %v12640_v43, %v12632_v54  ;;  %v12656_v3 = vsub.f32 %v17456_v31, %v12632_v54 }
 0x39c   : > { %v8944_v28 = vpop.f32.mrf.mxu1 }
 0x39d   : > { %v8945_v23 = vadd.f32 %v8944_v28, %v8863_v52  ;;  %v9036_v9 = vadd.f32 %v14606_v10, %v8953_v49  ;;  %v14620_v11 = vpop.f32.mrf.mxu0  ;;  %v12728_v28 = vadd.f32 0.0001, %v12720_v56 }
 0x39f   : > { %v9030_v58 = vadd.f32 %v9029_v16, %v8945_v23  ;;  %v9191_v20 = vpop.f32.mrf.mxu0 }
 0x3a0   : > { %v14613_v46 = vpop.f32.mrf.mxu1 }
 0x3a1   : > { %v9115_v2 = vadd.f32 %v14613_v46, %v9036_v9 }
 0x3a2   : > { %v9108_v29 = vpop.f32.mrf.mxu1 }
 0x3a3   : > { %v12665_v13 = vsub.f32 %v9115_v2, %v17228_v45  ;;  %v9109_v51 = vadd.f32 %v9108_v29, %v9030_v58  ;;  %v14634_v14 = vpop.f32.mrf.mxu0 }
 0x3a5   : > { %v12737_v48 = vadd.f32 %v12665_v13, %v12657_v6  ;;  %v12664_v10 = vsub.f32 %v9109_v51, %v12640_v43  ;;  %v9364_v52 = vpop.f32.mrf.mxu0 }
 0x3a6   : > { %v14627_v16 = vpop.f32.mrf.mxu1 }
 0x3a7   : > { %v12745_v4 = vadd.f32 0.0009, %v12737_v48  ;;  %v12736_v5 = vadd.f32 %v12664_v10, %v12656_v3  ;;  %v9289_v49 = vadd.f32 %v14627_v16, %v14620_v11 }
 0x3a8   : > { %v9282_v23 = vpop.f32.mrf.mxu1 }
 0x3a9   : > { %v17500_v45 = vmul.f32 %v12745_v4, %v12729_v25  ;;  %v12744_v9 = vadd.f32 0.0009, %v12736_v5  ;;  %v9283_v58 = vadd.f32 %v9282_v23, %v9191_v20  ;;  %v9372_v46 = vadd.f32 %v14634_v14, %v9289_v49  ;;  %v14648_v31 = vpop.f32.mrf.mxu0 }
 0x3aa   : > { %v12731_v5 = vadd.f32 0.0001, %v17299_v7 }
 0x3ab   : > { %v17502_v2 = vmul.f32 %v12744_v9, %v12728_v28  ;;  %v9365_v39 = vadd.f32 %v9364_v52, %v9283_v58  ;;  %v9531_v22 = vpop.f32.mrf.mxu0  ;;  %v17961_v28 = vsub.f32 %v17462_v60, %v17294_v53  ;;  %14984 = vrcp.f32 %v17500_v45 }
 0x3ac   : > { %v14641_v6 = vpop.f32.mrf.mxu1 }
 0x3ad   : > { %v9455_v43 = vadd.f32 %v14641_v6, %v9372_v46  ;;  %14986 = vrcp.f32 %v17502_v2 }
 0x3ae   : > { %v9446_v54 = vpop.f32.mrf.mxu1 }
 0x3af   : > { %v9447_v29 = vadd.f32 %v9446_v54, %v9365_v39  ;;  %v9538_v26 = vadd.f32 %v14648_v31, %v9455_v43  ;;  %v14662_v13 = vpop.f32.mrf.mxu0 }
 0x3b1   : > { %v9532_v51 = vadd.f32 %v9531_v22, %v9447_v29  ;;  %v9693_v11 = vpop.f32.mrf.mxu0 }
 0x3b2   : > { %v14655_v56 = vpop.f32.mrf.mxu1 }
 0x3b3   : > { %v9617_v3 = vadd.f32 %v14655_v56, %v9538_v26 }
 0x3b4   : > { %v9610_v48 = vpop.f32.mrf.mxu1 }
 0x3b5   : > { %v12667_v10 = vsub.f32 %v9617_v3, %v17285_v12  ;;  %v9611_v20 = vadd.f32 %v9610_v48, %v9532_v51  ;;  %v14676_v14 = vpop.f32.mrf.mxu0  ;;  %v12730_v12 = vadd.f32 0.0001, %v17312_v40  ;;  %v17962_v48 = vsub.f32 %v17466_v21, %v17348_v18 }
 0x3b7   : > { %v12739_v52 = vadd.f32 %v12667_v10, %v12659_v55  ;;  %v12666_v16 = vsub.f32 %v9611_v20, %v17301_v24  ;;  %v9866_v25 = vpop.f32.mrf.mxu0 }
 0x3b8   : > { %v14669_v4 = vpop.f32.mrf.mxu1 }
 0x3b9   : > { %v12747_v49 = vadd.f32 0.0009, %v12739_v52  ;;  %v12738_v23 = vadd.f32 %v12666_v16, %v17961_v28  ;;  %v9791_v9 = vadd.f32 %v14669_v4, %v14662_v13  ;;  %v12733_v16 = vadd.f32 0.0001, %v17366_v19 }
 0x3ba   : > { %v9784_v58 = vpop.f32.mrf.mxu1  ;;  %v17963_v4 = vsub.f32 %v17470_v8, %v17361_v37 }
 0x3bb   : > { %v17514_v46 = vmul.f32 %v12747_v49, %v12731_v5  ;;  %v12746_v31 = vadd.f32 0.0009, %v12738_v23  ;;  %v9785_v57 = vadd.f32 %v9784_v58, %v9693_v11  ;;  %v9874_v17 = vadd.f32 %v14676_v14, %v9791_v9  ;;  %v14690_v55 = vpop.f32.mrf.mxu0 }
 0x3bd   : > { %v17516_v24 = vmul.f32 %v12746_v31, %v12730_v12  ;;  %v9867_v39 = vadd.f32 %v9866_v25, %v9785_v57  ;;  %v10033_v22 = vpop.f32.mrf.mxu0  ;;  %14988 = vrcp.f32 %v17514_v46 }
 0x3be   : > { %v14683_v7 = vpop.f32.mrf.mxu1 }
 0x3bf   : > { %v9957_v6 = vadd.f32 %v14683_v7, %v9874_v17  ;;  %14990 = vrcp.f32 %v17516_v24 }
 0x3c0   : > { %v9948_v43 = vpop.f32.mrf.mxu1 }
 0x3c1   : > { %v9949_v54 = vadd.f32 %v9948_v43, %v9867_v39  ;;  %v10040_v53 = vadd.f32 %v14690_v55, %v9957_v6  ;;  %v14704_v60 = vpop.f32.mrf.mxu0 }
 0x3c3   : > { %v10034_v29 = vadd.f32 %v10033_v22, %v9949_v54  ;;  %v10195_v26 = vpop.f32.mrf.mxu0 }
 0x3c4   : > { %v14697_v40 = vpop.f32.mrf.mxu1 }
 0x3c5   : > { %v10119_v13 = vadd.f32 %v14697_v40, %v10040_v53 }
 0x3c6   : > { %v10112_v51 = vpop.f32.mrf.mxu1 }
 0x3c7   : > { %v12669_v56 = vsub.f32 %v10119_v13, %v17352_v59  ;;  %v10113_v11 = vadd.f32 %v10112_v51, %v10034_v29  ;;  %v14718_v3 = vpop.f32.mrf.mxu0  ;;  %v12732_v59 = vadd.f32 0.0001, %v17379_v47  ;;  %v12735_v51 = vadd.f32 0.0001, %v17422_v61 }
 0x3c9   : > { %v12741_v10 = vadd.f32 %v12669_v56, %v17962_v48  ;;  %v12668_v20 = vsub.f32 %v10113_v11, %v17368_v27  ;;  %v10368_v14 = vpop.f32.mrf.mxu0  ;;  %v17965_v11 = vsub.f32 %v17480_v1, %v17417_v30 }
 0x3ca   : > { %v14711_v52 = vpop.f32.mrf.mxu1 }
 0x3cb   : > { %v12749_v25 = vadd.f32 0.0009, %v12741_v10  ;;  %v12740_v5 = vadd.f32 %v12668_v20, %v17963_v4  ;;  %v10293_v49 = vadd.f32 %v14711_v52, %v14704_v60  ;;  %v17964_v60 = vsub.f32 %v17476_v36, %v17405_v63 }
 0x3cc   : > { %v10286_v28 = vpop.f32.mrf.mxu1 }
 0x3cd   : > { %v17528_v23 = vmul.f32 %v12749_v25, %v12733_v16  ;;  %v12748_v9 = vadd.f32 0.0009, %v12740_v5  ;;  %v10287_v18 = vadd.f32 %v10286_v28, %v10195_v26  ;;  %v10376_v21 = vadd.f32 %v14718_v3, %v10293_v49  ;;  %v14732_v12 = vpop.f32.mrf.mxu0 }
 0x3ce   : > { %v12648_v28 = vmul.f32 %v17233_v62, %v17488_v34 }
 0x3cf   : > { %v17530_v27 = vmul.f32 %v12748_v9, %v12732_v59  ;;  %v10369_v58 = vadd.f32 %v10368_v14, %v10287_v18  ;;  %v10535_v31 = vpop.f32.mrf.mxu0  ;;  %14992 = vrcp.f32 %v17528_v23 }
 0x3d0   : > { %v14725_v19 = vpop.f32.mrf.mxu1  ;;  %v12680_v45 = vmul.f32 2.0, %v12648_v28 }
 0x3d1   : > { %v10459_v57 = vadd.f32 %v14725_v19, %v10376_v21  ;;  %14994 = vrcp.f32 %v17530_v27 }
 0x3d2   : > { %v10450_v17 = vpop.f32.mrf.mxu1 }
 0x3d3   : > { %v10451_v55 = vadd.f32 %v10450_v17, %v10369_v58  ;;  %v10542_v37 = vadd.f32 %v14732_v12, %v10459_v57  ;;  %v14746_v8 = vpop.f32.mrf.mxu0  ;;  %v12681_v12 = vmul.f32 2.0, %v17231_v32 }
 0x3d5   : > { %v10536_v39 = vadd.f32 %v10535_v31, %v10451_v55  ;;  %v10697_v22 = vpop.f32.mrf.mxu0  ;;  %v12689_v2 = vadd.f32 0.0001, %v12681_v12 }
 0x3d6   : > { %v14739_v47 = vpop.f32.mrf.mxu1 }
 0x3d7   : > { %v10621_v7 = vadd.f32 %v14739_v47, %v10542_v37  ;;  %v12688_v47 = vadd.f32 0.0001, %v12680_v45 }
 0x3d8   : > { %v10614_v6 = vpop.f32.mrf.mxu1 }
 0x3d9   : > { %v12671_v43 = vsub.f32 %v10621_v7, %v17409_v41  ;;  %v10615_v54 = vadd.f32 %v10614_v6, %v10536_v39  ;;  %v14760_v53 = vpop.f32.mrf.mxu0  ;;  %v12734_v41 = vadd.f32 0.0001, %v17433_v35 }
 0x3db   : > { %v12743_v29 = vadd.f32 %v12671_v43, %v17964_v60  ;;  %v12670_v26 = vsub.f32 %v10615_v54, %v17424_v42  ;;  %v10870_v40 = vpop.f32.mrf.mxu0 }
 0x3dc   : > { %v14753_v13 = vpop.f32.mrf.mxu1 }
 0x3dd   : > { %v12751_v56 = vadd.f32 0.0009, %v12743_v29  ;;  %v12742_v3 = vadd.f32 %v12670_v26, %v17965_v11  ;;  %v10795_v48 = vadd.f32 %v14753_v13, %v14746_v8 }
 0x3de   : > { %v10788_v10 = vpop.f32.mrf.mxu1 }
 0x3df   : > { %v17542_v20 = vmul.f32 %v12751_v56, %v12735_v51  ;;  %v12750_v14 = vadd.f32 0.0009, %v12742_v3  ;;  %v10789_v63 = vadd.f32 %v10788_v10, %v10697_v22  ;;  %v10878_v36 = vadd.f32 %v14760_v53, %v10795_v48  ;;  %v14774_v52 = vpop.f32.mrf.mxu0  ;;  %v14985_v53 = vpop.eup %14984 }
 0x3e1   : > { %v17544_v42 = vmul.f32 %v12750_v14, %v12734_v41  ;;  %v10871_v16 = vadd.f32 %v10870_v40, %v10789_v63  ;;  %v11037_v25 = vpop.f32.mrf.mxu0  ;;  %v14987_v40 = vpop.eup %14986  ;;  %14996 = vrcp.f32 %v17542_v20 }
 0x3e2   : > { %v14767_v61 = vpop.f32.mrf.mxu1 }
 0x3e3   : > { %v10961_v4 = vadd.f32 %v14767_v61, %v10878_v36  ;;  %14998 = vrcp.f32 %v17544_v42  ;;  %v12686_v42 = vmul.f32 2.0, %v17427_v33 }
 0x3e4   : > { %v10952_v5 = vpop.f32.mrf.mxu1 }
 0x3e5   : > { %v10953_v30 = vadd.f32 %v10952_v5, %v10871_v16  ;;  %v11044_v1 = vadd.f32 %v14774_v52, %v10961_v4  ;;  %v14788_v49 = vpop.f32.mrf.mxu0  ;;  %v12683_v4 = vmul.f32 2.0, %v17288_v15 }
 0x3e7   : > { %v11038_v35 = vadd.f32 %v11037_v25, %v10953_v30  ;;  %v11199_v59 = vpop.f32.mrf.mxu0 }
 0x3e8   : > { %v14781_v9 = vpop.f32.mrf.mxu1 }
 0x3e9   : > { %v11123_v18 = vadd.f32 %v14781_v9, %v11044_v1  ;;  %v12682_v1 = vmul.f32 2.0, %v17304_v38  ;;  %v12691_v9 = vadd.f32 0.0001, %v12683_v4 }
 0x3ea   : > { %v11116_v21 = vpop.f32.mrf.mxu1 }
 0x3eb   : > { %v12673_v58 = vsub.f32 %v11123_v18, %v17231_v32  ;;  %v11117_v31 = vadd.f32 %v11116_v21, %v11038_v35  ;;  %v14802_v19 = vpop.f32.mrf.mxu0  ;;  %v12690_v12 = vadd.f32 0.0001, %v12682_v1 }
 0x3ed   : > { %v12697_v57 = vmul.f32 2.0, %v12673_v58  ;;  %v12672_v17 = vsub.f32 %v11117_v31, %v12648_v28  ;;  %v11372_v55 = vpop.f32.mrf.mxu0  ;;  %v14989_v31 = vpop.eup %14988 }
 0x3ee   : > { %v14795_v37 = vpop.f32.mrf.mxu1 }
 0x3ef   : > { %v12705_v8 = vadd.f32 0.0009, %v12697_v57  ;;  %v12696_v39 = vmul.f32 2.0, %v12672_v17  ;;  %v11297_v22 = vadd.f32 %v14795_v37, %v14788_v49 }
 0x3f0   : > { %v11290_v62 = vpop.f32.mrf.mxu1 }
 0x3f1   : > { %v12713_v34 = vmul.f32 %v12705_v8, %v12689_v2  ;;  %v12704_v7 = vadd.f32 0.0009, %v12696_v39  ;;  %v11291_v6 = vadd.f32 %v11290_v62, %v11199_v59  ;;  %v11380_v43 = vadd.f32 %v14802_v19, %v11297_v22  ;;  %v14816_v54 = vpop.f32.mrf.mxu0  ;;  %v14991_v39 = vpop.eup %14990 }
 0x3f3   : > { %v12769_v32 = vmul.f32 %v14985_v53, %v12713_v34  ;;  %v12712_v60 = vmul.f32 %v12704_v7, %v12688_v47  ;;  %v11373_v29 = vadd.f32 %v11372_v55, %v11291_v6  ;;  %v11539_v26 = vpop.f32.mrf.mxu0 }
 0x3f4   : > { %v14809_v13 = vpop.f32.mrf.mxu1 }
 0x3f5   : > { %v12768_v51 = vmul.f32 %v14987_v40, %v12712_v60  ;;  %v11463_v56 = vadd.f32 %v14809_v13, %v11380_v43  ;;  %v12777_v3 = vsel %vm329_vm0, %v12769_v32, 0.0 }
 0x3f6   : > { %v11454_v11 = vpop.f32.mrf.mxu1 }
 0x3f7   : > { %v12776_v48 = vsel %vm329_vm0, %v12768_v51, 0.0  ;;  %v11455_v41 = vadd.f32 %v11454_v11, %v11373_v29  ;;  %v11546_v10 = vadd.f32 %v14816_v54, %v11463_v56  ;;  %v14830_v14 = vpop.f32.mrf.mxu0  ;;  %v12685_v51 = vmul.f32 2.0, %v17355_v0 }
 0x3f8   : > { %v12778_v63 = vadd.f32 %v12777_v3, %v12776_v48  ;;  %v12684_v3 = vmul.f32 2.0, %v17371_v50 }
 0x3f9   : > { %v11540_v36 = vadd.f32 %v11539_v26, %v11455_v41  ;;  %v11701_v52 = vpop.f32.mrf.mxu0 }
 0x3fa   : > { %v14823_v16 = vpop.f32.mrf.mxu1 }
 0x3fb   : > { %v11625_v25 = vadd.f32 %v14823_v16, %v11546_v10  ;;  %v12693_v10 = vadd.f32 0.0001, %v12685_v51  ;;  %v12692_v16 = vadd.f32 0.0001, %v12684_v3 }
 0x3fc   : > { %v11618_v61 = vpop.f32.mrf.mxu1 }
 0x3fd   : > { %v12675_v46 = vsub.f32 %v11625_v25, %v17288_v15  ;;  %v11619_v5 = vadd.f32 %v11618_v61, %v11540_v36  ;;  %v14844_v30 = vpop.f32.mrf.mxu0 }
 0x3ff   : > { %v12699_v49 = vmul.f32 2.0, %v12675_v46  ;;  %v12674_v35 = vsub.f32 %v11619_v5, %v17304_v38  ;;  %v11874_v59 = vpop.f32.mrf.mxu0 }
 0x400   : > { %v14837_v28 = vpop.f32.mrf.mxu1 }
 0x401   : > { %v12707_v24 = vadd.f32 0.0009, %v12699_v49  ;;  %v12698_v18 = vmul.f32 2.0, %v12674_v35  ;;  %v11799_v21 = vadd.f32 %v14837_v28, %v14830_v14 }
 0x402   : > { %v11792_v58 = vpop.f32.mrf.mxu1 }
 0x403   : > { %v12715_v19 = vmul.f32 %v12707_v24, %v12691_v9  ;;  %v12706_v45 = vadd.f32 0.0009, %v12698_v18  ;;  %v11793_v57 = vadd.f32 %v11792_v58, %v11701_v52  ;;  %v11882_v15 = vadd.f32 %v14844_v30, %v11799_v21  ;;  %v14858_v17 = vpop.f32.mrf.mxu0 }
 0x405   : > { %v12771_v55 = vmul.f32 %v14989_v31, %v12715_v19  ;;  %v12714_v37 = vmul.f32 %v12706_v45, %v12690_v12  ;;  %v11875_v2 = vadd.f32 %v11874_v59, %v11793_v57  ;;  %v12041_v8 = vpop.f32.mrf.mxu0 }
 0x406   : > { %v14851_v38 = vpop.f32.mrf.mxu1 }
 0x407   : > { %v12770_v22 = vmul.f32 %v14991_v39, %v12714_v37  ;;  %v11965_v47 = vadd.f32 %v14851_v38, %v11882_v15  ;;  %v12781_v60 = vsel %vm329_vm0, %v12771_v55, 0.0  ;;  %v12687_v55 = vmul.f32 2.0, %v17412_v44 }
 0x408   : > { %v11956_v62 = vpop.f32.mrf.mxu1 }
 0x409   : > { %v12779_v34 = vsel %vm329_vm0, %v12770_v22, 0.0  ;;  %v11957_v7 = vadd.f32 %v11956_v62, %v11875_v2  ;;  %v12048_v6 = vadd.f32 %v14858_v17, %v11965_v47  ;;  %v14872_v43 = vpop.f32.mrf.mxu0  ;;  %v12695_v38 = vadd.f32 0.0001, %v12687_v55 }
 0x40a   : > { %v12780_v54 = vadd.f32 %v12779_v34, %v12778_v63  ;;  %v12694_v62 = vadd.f32 0.0001, %v12686_v42 }
 0x40b   : > { %v12042_v53 = vadd.f32 %v12041_v8, %v11957_v7  ;;  %v12203_v32 = vpop.f32.mrf.mxu0 }
 0x40c   : > { %v14865_v29 = vpop.f32.mrf.mxu1  ;;  %v12782_v26 = vadd.f32 %v12781_v60, %v12780_v54 }
 0x40d   : > { %v12127_v40 = vadd.f32 %v14865_v29, %v12048_v6 }
 0x40e   : > { %v12120_v13 = vpop.f32.mrf.mxu1 }
 0x40f   : > { %v12677_v23 = vsub.f32 %v12127_v40, %v17355_v0  ;;  %v12121_v56 = vadd.f32 %v12120_v13, %v12042_v53  ;;  %v14886_v11 = vpop.f32.mrf.mxu0  ;;  %v14993_v0 = vpop.eup %14992 }
 0x410   : > { %v14995_v28 = vpop.eup %14994 }
 0x411   : > { %v12701_v48 = vmul.f32 2.0, %v12677_v23  ;;  %v12676_v41 = vsub.f32 %v12121_v56, %v17371_v50  ;;  %v12376_v52 = vpop.f32.mrf.mxu0  ;;  %v14997_v6 = vpop.eup %14996 }
 0x412   : > { %v14879_v27 = vpop.f32.mrf.mxu1  ;;  %v14999_v53 = vpop.eup %14998 }
 0x413   : > { %v12709_v14 = vadd.f32 0.0009, %v12701_v48  ;;  %v12700_v63 = vmul.f32 2.0, %v12676_v41  ;;  %v12301_v36 = vadd.f32 %v14879_v27, %v14872_v43 }
 0x414   : > { %v12294_v25 = vpop.f32.mrf.mxu1 }
 0x415   : > { %v12717_v61 = vmul.f32 %v12709_v14, %v12693_v10  ;;  %v12708_v4 = vadd.f32 0.0009, %v12700_v63  ;;  %v12295_v46 = vadd.f32 %v12294_v25, %v12203_v32  ;;  %v12384_v5 = vadd.f32 %v14886_v11, %v12301_v36  ;;  %v14900_v35 = vpop.f32.mrf.mxu0 }
 0x417   : > { %v12716_v30 = vmul.f32 %v12708_v4, %v12692_v16  ;;  %v12377_v1 = vadd.f32 %v12376_v52, %v12295_v46  ;;  %v14893_v49 = vpop.f32.mrf.mxu1  ;;  %v12773_v59 = vmul.f32 %v14993_v0, %v12717_v61  ;;  %v12543_v12 = vpop.f32.mrf.mxu0 }
 0x418   : > { %v12467_v50 = vadd.f32 %v14893_v49, %v12384_v5 }
 0x419   : > { %v12772_v9 = vmul.f32 %v14995_v28, %v12716_v30  ;;  %v12458_v24 = vpop.f32.mrf.mxu1  ;;  %v12785_v17 = vsel %vm329_vm0, %v12773_v59, 0.0 }
 0x41a   : > { %v12459_v18 = vadd.f32 %v12458_v24, %v12377_v1  ;;  %v12550_v21 = vadd.f32 %v14900_v35, %v12467_v50 }
 0x41b   : > { %v14907_v58 = vpop.f32.mrf.mxu1  ;;  %v12783_v31 = vsel %vm329_vm0, %v12772_v9, 0.0 }
 0x41c   : > { %v12544_v19 = vadd.f32 %v12543_v12, %v12459_v18  ;;  %v12629_v45 = vadd.f32 %v14907_v58, %v12550_v21  ;;  %v12784_v57 = vadd.f32 %v12783_v31, %v12782_v26 }
 0x41d   : > { %v12622_v15 = vpop.f32.mrf.mxu1 }
 0x41e   : > { %v12679_v20 = vsub.f32 %v12629_v45, %v17412_v44  ;;  %v12623_v37 = vadd.f32 %v12622_v15, %v12544_v19  ;;  %v12786_v2 = vadd.f32 %v12785_v17, %v12784_v57 }
 0x420   : > { %v12703_v8 = vmul.f32 2.0, %v12679_v20  ;;  %v12678_v39 = vsub.f32 %v12623_v37, %v17427_v33 }
 0x422   : > { %v12711_v22 = vadd.f32 0.0009, %v12703_v8  ;;  %v12702_v47 = vmul.f32 2.0, %v12678_v39 }
 0x424   : > { %v12710_v34 = vadd.f32 0.0009, %v12702_v47  ;;  %v12719_v7 = vmul.f32 %v12711_v22, %v12695_v38 }
 0x426   : > { %v12718_v43 = vmul.f32 %v12710_v34, %v12694_v62  ;;  %v12775_v54 = vmul.f32 %v14997_v6, %v12719_v7 }
 0x428   : > { %v12774_v32 = vmul.f32 %v14999_v53, %v12718_v43  ;;  %v12789_v29 = vsel %vm329_vm0, %v12775_v54, 0.0 }
 0x42a   : > { %v12787_v44 = vsel %vm329_vm0, %v12774_v32, 0.0 }
 0x42b   : > { %v12788_v60 = vadd.f32 %v12787_v44, %v12786_v2 }
 0x42d   : > { %v12790_v26 = vadd.f32 %v12789_v29, %v12788_v60 }
 0x42f   : > { %12791 = vadd.xlane.f32.xlu0 %v12790_v26 }
 0x4b8   : > { %v12792_v33 = vpop.xlane.xlu0 %12791 }
 0x4b9   : > { %v12793_v40 = vrot.slane %v12792_v33, 4 }
 0x4bb   : > { %v12794_v13 = vadd.f32 %v12793_v40, %v12792_v33 }
 0x4bd   : > { %v12795_v51 = vrot.slane %v12794_v13, 2 }
 0x4bf   : > { %v12796_v23 = vadd.f32 %v12795_v51, %v12794_v13 }
 0x4c1   : > { %v12797_v56 = vrot.slane %v12796_v23, 1 }
 0x4c3   : > { %v12798_v11 = vadd.f32 %v12797_v56, %v12796_v23 }
 0x4c5   : > { %14908 = vpush %v12798_v11 }
 0x4f6   : > { %s14909_s10 = spop %14908 }
 0x4f7   : > { %v12800_v3 = vstv %s14909_s10 }
 0x4f8   : > { %12802 = vst [vmem:[%s284_s27] sm:$0xff] %v12800_v3 }
 0x4f9   : > { %15121 = shalt.err (!%p15118_p4)
}
 0x4fa   : > { %s15122_s24 = scalar_lea.hbm %s12815_s29, 128  ;;  %s15126_s8 = scalar_lea.hbm %s17624_s4, 256 }
 0x4fb   : > { %p15123_p5 = scmp.ne.s32.totalorder %s12815_s29, %s15122_s24  ;;  %p15127_p2 = scmp.lt.s32.totalorder %s12815_s29, %s17624_s4 }
 0x4fc   : > { %p15128_p6 = scmp.lt.s32.totalorder %s15126_s8, %s15122_s24 }
 0x4fd   : > { %p15124_p7 = pnand %p15123_p5, %p17966_p10 }
 0x4fe   : > { %p15129_p12 = por %p15128_p6, %p15127_p2 }
 0x4ff   : > { %p15125_p8 = pneg %p15124_p7 }
 0x501   : > { %p15130_p0 = pnand %p15129_p12, %p15125_p8 }
 0x503   : > { %15133 = shalt.err (!%p15130_p0)
}
 0x504   : > { %14922 = dma.vmem_to_hbm [thread:$0]  (%p17966_p10), %s17580_s30, 128, %s12815_s29, %s12804_s7  }
 0x505 PF: > { %s12829_s21 = sand.u32 1, %s15172_s15   ;;  %p17967_p3 = scmp.ne.s32.totalorder %s17723_s22, 0 }
 0x506   : > { %p17968_p11 = scmp.ge.s32.totalorder %s15184_s18, 2  ;;  %s12830_s27 = scalar_lea.sflag [#allocation4], %s12829_s21 }
 0x508   : > { %p14939_p9 = pnand %p17968_p11, %p17967_p3 }
 0x50a   : > { %p14940_p13 = pneg %p14939_p9 }
 0x50c   : > { %15167 = dma.done.wait (%p14940_p13), %s12830_s27, 128  }
 0x50d   : > { %15169 = vsyncadd (%p14940_p13), %s12830_s27, 4294967168  ;;  %p21_p1 = scmp.ge.s32.totalorder %s15296_s11, 4   ;;  %s17969_s15 = smov %s15176_s16 }
 0x50e   : > { %s17970_s16 = smov %s15180_s17  ;;  %s17971_s17 = smov %s15312_s20 }
 0x50f   : > { %s17972_s18 = smov %s15296_s11  ;;  %23 = sbr.rel (!%p21_p1) target bundleno = 10 (0xa), region = 102 }
 0x514   :  { %12835 = vsyncpa [#allocation3], 1 }
 0x515   :  { %12837 = vsyncpa [#allocation3 + $0x1], 1 }
 0x516   :  { %12838 = vsyncpa [#allocation6], 1 }
 0x517   :  { %12840 = vsyncpa [#allocation6 + $0x1], 1 }
 0x518   :  { %12841 = vsyncpa [#allocation9], 1 }
 0x519   :  { %12842 = vsyncpa [#allocation4], 1 }
 0x51a   :  { %12844 = vsyncpa [#allocation4 + $0x1], 1 }

</bundles_post_ra>
